<compile_context>
chip_gen: v7x
topology: tpu7x:2x2x1
jax: 0.10.0
libtpu: 0.0.40
codegen_flags: <defaults>
</compile_context>

<pallas_src>
import functools

import jax
import jax.numpy as jnp
from jax import lax
from jax.experimental import pallas as pl
from jax.experimental.pallas import tpu as pltpu


def _mha_kernel(x_ref, wqkv_ref, wp_ref, b_ref, o_ref, *, num_heads, head_size):
    # x_ref: (1, T, E); wqkv_ref: (E, 3*H*hs); wp_ref: (H*hs, E); b_ref: (1, E)
    HS = num_heads * head_size

    x = x_ref[0].astype(jnp.bfloat16)               # (T, E)
    wqkv = wqkv_ref[...].astype(jnp.bfloat16)       # (E, 3*HS)
    wp = wp_ref[...].astype(jnp.bfloat16)           # (HS, E)

    # One fused projection matmul producing Q, K and V for every head at once.
    qkv = jnp.dot(x, wqkv, preferred_element_type=jnp.float32)   # (T, 3*HS) f32

    T = qkv.shape[0]
    scale = head_size ** -0.5

    # Static, lane-aligned slices of the fused result (scale folded into Q once).
    q = (qkv[:, 0:HS] * scale).astype(jnp.bfloat16)              # (T, HS)
    k = qkv[:, HS:2 * HS].astype(jnp.bfloat16)
    v = qkv[:, 2 * HS:3 * HS].astype(jnp.bfloat16)

    row = lax.broadcasted_iota(jnp.int32, (T, T), 0)
    col = lax.broadcasted_iota(jnp.int32, (T, T), 1)
    causal = col <= row

    # Contract last dim of q with last dim of k — q @ k.T without a transpose.
    dn = (((1,), (1,)), ((), ()))

    head_outs = []
    for h in range(num_heads):           # static unroll; H is small
        lo = h * head_size
        qh = q[:, lo:lo + head_size]     # (T, hs)
        kh = k[:, lo:lo + head_size]
        vh = v[:, lo:lo + head_size]

        s = lax.dot_general(qh, kh, dn, preferred_element_type=jnp.float32)  # (T, T)
        s = jnp.where(causal, s, -jnp.inf)

        m = jnp.max(s, axis=-1, keepdims=True)        # f32 row max (diag always unmasked)
        p = jnp.exp(s - m)
        p = p * pl.reciprocal(jnp.sum(p, axis=-1, keepdims=True), approx=True)

        ho = jnp.dot(p.astype(jnp.bfloat16), vh,
                     preferred_element_type=jnp.float32)           # (T, hs)
        head_outs.append(ho.astype(jnp.bfloat16))

    concat = jnp.concatenate(head_outs, axis=-1)       # (T, HS) bf16

    out = jnp.dot(concat, wp, preferred_element_type=jnp.float32)  # (T, E) f32
    o_ref[0] = out + b_ref[...]                        # bias (1, E) broadcasts over T


def multiple_heads(x, wq, wk, wv, wp, bias):
    """x: (B,T,E); wq/wk/wv: (H,E,hs); wp: (H,hs,E); bias: (E,) -> out (B,T,E)."""
    B, T, E = x.shape
    H, _, hs = wq.shape
    HS = H * hs

    # Pack per-head weights into lane-dense slabs once, outside the kernel.
    wq_p = jnp.transpose(wq, (1, 0, 2)).reshape(E, HS)   # q_h = x @ wq_p[:, h*hs:(h+1)*hs]
    wk_p = jnp.transpose(wk, (1, 0, 2)).reshape(E, HS)
    wv_p = jnp.transpose(wv, (1, 0, 2)).reshape(E, HS)
    wqkv = jnp.concatenate([wq_p, wk_p, wv_p], axis=-1)  # (E, 3*HS) fused QKV slab
    wp_p = wp.reshape(HS, E)                             # concat(head_outs) @ wp_p
    bias2d = bias.reshape(1, E)

    kernel = functools.partial(_mha_kernel, num_heads=H, head_size=hs)

    return pl.pallas_call(
        kernel,
        out_shape=jax.ShapeDtypeStruct((B, T, E), jnp.float32),
        grid_spec=pltpu.PrefetchScalarGridSpec(
            num_scalar_prefetch=0,
            grid=(B,),
            in_specs=[
                pl.BlockSpec((1, T, E), lambda b: (b, 0, 0)),    # x (per-batch tile)
                pl.BlockSpec((E, 3 * HS), lambda b: (0, 0)),     # fused Wqkv
                pl.BlockSpec((HS, E), lambda b: (0, 0)),         # Wp packed
                pl.BlockSpec((1, E), lambda b: (0, 0)),          # bias
            ],
            out_specs=pl.BlockSpec((1, T, E), lambda b: (b, 0, 0)),
        ),
        compiler_params=pltpu.CompilerParams(
            dimension_semantics=("parallel",)),
    )(x, wqkv, wp_p, bias2d)


def _reference(x, wq, wk, wv, wp, bias):
    B, T, E = x.shape
    H, _, hs = wq.shape
    q = jnp.einsum("bte,hes->bhts", x, wq)
    k = jnp.einsum("bte,hes->bhts", x, wk)
    v = jnp.einsum("bte,hes->bhts", x, wv)
    s = jnp.einsum("bhts,bhus->bhtu", q, k) * (hs ** -0.5)
    mask = jnp.tril(jnp.ones((T, T), bool))
    s = jnp.where(mask, s, -jnp.inf)
    p = jax.nn.softmax(s, axis=-1)
    ho = jnp.einsum("bhtu,bhus->bhts", p, v)             # (B,H,T,hs)
    out = jnp.einsum("bhts,hse->bte", ho, wp) + bias
    return out


if __name__ == "__main__":
    # Small shapes consistent with the module: head_size * num_heads feeds projection.
    B, T, E, H = 2, 128, 128, 4
    hs = E // H   # 32; projection input = H*hs = 128 = E

    key = jax.random.PRNGKey(0)
    kx, kq, kk, kv, kp, kb = jax.random.split(key, 6)
    x = jax.random.normal(kx, (B, T, E), dtype=jnp.float32)
    wq = jax.random.normal(kq, (H, E, hs), dtype=jnp.float32) * 0.05
    wk = jax.random.normal(kk, (H, E, hs), dtype=jnp.float32) * 0.05
    wv = jax.random.normal(kv, (H, E, hs), dtype=jnp.float32) * 0.05
    wp = jax.random.normal(kp, (H, hs, E), dtype=jnp.float32) * 0.05
    bias = jax.random.normal(kb, (E,), dtype=jnp.float32) * 0.05

    out = jax.block_until_ready(multiple_heads(x, wq, wk, wv, wp, bias))

    ref = _reference(x, wq, wk, wv, wp, bias)
    assert out.shape == (B, T, E)
    # bf16 MXU operands (f32 accumulation) -> tolerance loosened vs pure-f32 reference.
    assert jnp.allclose(out, ref, atol=2e-2, rtol=2e-2), "mismatch vs reference"

    print("KERNEL_OK")
</pallas_src>

<mosaic_0001>
module attributes {stable_mosaic.version = 11 : i64} {
  func.func @_mha_kernel(%arg0: i32, %arg1: memref<1x128x128xf32, #tpu.memory_space<vmem>>, %arg2: memref<128x384xf32, #tpu.memory_space<vmem>>, %arg3: memref<128x128xf32, #tpu.memory_space<vmem>>, %arg4: memref<1x128xf32, #tpu.memory_space<vmem>>, %arg5: memref<1x128x128xf32, #tpu.memory_space<vmem>>) attributes {dimension_semantics = [#tpu.dimension_semantics<parallel>], iteration_bounds = array<i64: 2>, scalar_prefetch = 0 : i64, scratch_operands = 0 : i64, tpu.core_type = #tpu.core_type<tc>, window_params = [{transform_indices = @transform_0, window_bounds = array<i64: 1, 128, 128>}, {pipeline_mode = #tpu.pipeline_mode<synchronous>, transform_indices = @transform_1, window_bounds = array<i64: 128, 384>}, {pipeline_mode = #tpu.pipeline_mode<synchronous>, transform_indices = @transform_2, window_bounds = array<i64: 128, 128>}, {pipeline_mode = #tpu.pipeline_mode<synchronous>, transform_indices = @transform_3, window_bounds = array<i64: 1, 128>}, {transform_indices = @transform_4, window_bounds = array<i64: 1, 128, 128>}]} {
    %c0 = arith.constant 0 : index
    %c0_0 = arith.constant 0 : index
    %c0_1 = arith.constant 0 : index
    %0 = vector.load %arg1[%c0, %c0_0, %c0_1] : memref<1x128x128xf32, #tpu.memory_space<vmem>>, vector<1x128x128xf32>
    %1 = vector.shape_cast %0 : vector<1x128x128xf32> to vector<128x128xf32>
    %2 = arith.truncf %1 : vector<128x128xf32> to vector<128x128xbf16>
    %c0_2 = arith.constant 0 : index
    %c0_3 = arith.constant 0 : index
    %3 = vector.load %arg2[%c0_2, %c0_3] : memref<128x384xf32, #tpu.memory_space<vmem>>, vector<128x384xf32>
    %4 = arith.truncf %3 : vector<128x384xf32> to vector<128x384xbf16>
    %c0_4 = arith.constant 0 : index
    %c0_5 = arith.constant 0 : index
    %5 = vector.load %arg3[%c0_4, %c0_5] : memref<128x128xf32, #tpu.memory_space<vmem>>, vector<128x128xf32>
    %6 = arith.truncf %5 : vector<128x128xf32> to vector<128x128xbf16>
    %cst = arith.constant dense<0.000000e+00> : vector<128x384xf32>
    %7 = tpu.matmul %2, %4, %cst {dimension_numbers = #tpu.dot_dimension_numbers<[1], [0], [0], [1], [0, 0, 1, 1], [], []>} : vector<128x128xbf16>, vector<128x384xbf16>, vector<128x384xf32> -> vector<128x384xf32>
    %8 = vector.extract_strided_slice %7 {offsets = [0, 0], sizes = [128, 128], strides = [1, 1]} : vector<128x384xf32> to vector<128x128xf32>
    %cst_6 = arith.constant 0.176776692 : f32
    %9 = vector.broadcast %cst_6 : f32 to vector<128x128xf32>
    %10 = arith.mulf %8, %9 : vector<128x128xf32>
    %11 = arith.truncf %10 : vector<128x128xf32> to vector<128x128xbf16>
    %12 = vector.extract_strided_slice %7 {offsets = [0, 128], sizes = [128, 128], strides = [1, 1]} : vector<128x384xf32> to vector<128x128xf32>
    %13 = arith.truncf %12 : vector<128x128xf32> to vector<128x128xbf16>
    %14 = vector.extract_strided_slice %7 {offsets = [0, 256], sizes = [128, 128], strides = [1, 1]} : vector<128x384xf32> to vector<128x128xf32>
    %15 = arith.truncf %14 : vector<128x128xf32> to vector<128x128xbf16>
    %16 = tpu.iota {dimensions = array<i32: 0>} : vector<128x128xi32>
    %17 = tpu.iota {dimensions = array<i32: 1>} : vector<128x128xi32>
    %18 = arith.cmpi sle, %17, %16 : vector<128x128xi32>
    %19 = vector.extract_strided_slice %11 {offsets = [0, 0], sizes = [128, 32], strides = [1, 1]} : vector<128x128xbf16> to vector<128x32xbf16>
    %20 = vector.extract_strided_slice %13 {offsets = [0, 0], sizes = [128, 32], strides = [1, 1]} : vector<128x128xbf16> to vector<128x32xbf16>
    %21 = vector.extract_strided_slice %15 {offsets = [0, 0], sizes = [128, 32], strides = [1, 1]} : vector<128x128xbf16> to vector<128x32xbf16>
    %cst_7 = arith.constant dense<0.000000e+00> : vector<128x128xf32>
    %22 = tpu.matmul %19, %20, %cst_7 {dimension_numbers = #tpu.dot_dimension_numbers<[1], [1], [0], [0], [0, 0, 1, 0], [], []>} : vector<128x32xbf16>, vector<128x32xbf16>, vector<128x128xf32> -> vector<128x128xf32>
    %cst_8 = arith.constant 0xFF800000 : f32
    %23 = vector.broadcast %cst_8 : f32 to vector<128x128xf32>
    %24 = arith.select %18, %22, %23 : vector<128x128xi1>, vector<128x128xf32>
    %cst_9 = arith.constant dense<0xFF800000> : vector<128xf32>
    %25 = vector.multi_reduction <maximumf>, %24, %cst_9 [1] : vector<128x128xf32> to vector<128xf32>
    %26 = vector.shape_cast %25 : vector<128xf32> to vector<128x1xf32>
    %27 = vector.broadcast %26 : vector<128x1xf32> to vector<128x128xf32>
    %28 = arith.subf %24, %27 : vector<128x128xf32>
    %29 = math.exp %28 : vector<128x128xf32>
    %cst_10 = arith.constant dense<0.000000e+00> : vector<128xf32>
    %30 = vector.multi_reduction <add>, %29, %cst_10 [1] : vector<128x128xf32> to vector<128xf32>
    %31 = vector.shape_cast %30 : vector<128xf32> to vector<128x1xf32>
    %32 = tpu.reciprocal %31 {approx = true} : vector<128x1xf32> -> vector<128x1xf32>
    %33 = vector.broadcast %32 : vector<128x1xf32> to vector<128x128xf32>
    %34 = arith.mulf %29, %33 : vector<128x128xf32>
    %35 = arith.truncf %34 : vector<128x128xf32> to vector<128x128xbf16>
    %cst_11 = arith.constant dense<0.000000e+00> : vector<128x32xf32>
    %36 = tpu.matmul %35, %21, %cst_11 {dimension_numbers = #tpu.dot_dimension_numbers<[1], [0], [0], [1], [0, 0, 1, 1], [], []>} : vector<128x128xbf16>, vector<128x32xbf16>, vector<128x32xf32> -> vector<128x32xf32>
    %37 = arith.truncf %36 : vector<128x32xf32> to vector<128x32xbf16>
    %38 = vector.extract_strided_slice %11 {offsets = [0, 32], sizes = [128, 32], strides = [1, 1]} : vector<128x128xbf16> to vector<128x32xbf16>
    %39 = vector.extract_strided_slice %13 {offsets = [0, 32], sizes = [128, 32], strides = [1, 1]} : vector<128x128xbf16> to vector<128x32xbf16>
    %40 = vector.extract_strided_slice %15 {offsets = [0, 32], sizes = [128, 32], strides = [1, 1]} : vector<128x128xbf16> to vector<128x32xbf16>
    %cst_12 = arith.constant dense<0.000000e+00> : vector<128x128xf32>
    %41 = tpu.matmul %38, %39, %cst_12 {dimension_numbers = #tpu.dot_dimension_numbers<[1], [1], [0], [0], [0, 0, 1, 0], [], []>} : vector<128x32xbf16>, vector<128x32xbf16>, vector<128x128xf32> -> vector<128x128xf32>
    %cst_13 = arith.constant 0xFF800000 : f32
    %42 = vector.broadcast %cst_13 : f32 to vector<128x128xf32>
    %43 = arith.select %18, %41, %42 : vector<128x128xi1>, vector<128x128xf32>
    %cst_14 = arith.constant dense<0xFF800000> : vector<128xf32>
    %44 = vector.multi_reduction <maximumf>, %43, %cst_14 [1] : vector<128x128xf32> to vector<128xf32>
    %45 = vector.shape_cast %44 : vector<128xf32> to vector<128x1xf32>
    %46 = vector.broadcast %45 : vector<128x1xf32> to vector<128x128xf32>
    %47 = arith.subf %43, %46 : vector<128x128xf32>
    %48 = math.exp %47 : vector<128x128xf32>
    %cst_15 = arith.constant dense<0.000000e+00> : vector<128xf32>
    %49 = vector.multi_reduction <add>, %48, %cst_15 [1] : vector<128x128xf32> to vector<128xf32>
    %50 = vector.shape_cast %49 : vector<128xf32> to vector<128x1xf32>
    %51 = tpu.reciprocal %50 {approx = true} : vector<128x1xf32> -> vector<128x1xf32>
    %52 = vector.broadcast %51 : vector<128x1xf32> to vector<128x128xf32>
    %53 = arith.mulf %48, %52 : vector<128x128xf32>
    %54 = arith.truncf %53 : vector<128x128xf32> to vector<128x128xbf16>
    %cst_16 = arith.constant dense<0.000000e+00> : vector<128x32xf32>
    %55 = tpu.matmul %54, %40, %cst_16 {dimension_numbers = #tpu.dot_dimension_numbers<[1], [0], [0], [1], [0, 0, 1, 1], [], []>} : vector<128x128xbf16>, vector<128x32xbf16>, vector<128x32xf32> -> vector<128x32xf32>
    %56 = arith.truncf %55 : vector<128x32xf32> to vector<128x32xbf16>
    %57 = vector.extract_strided_slice %11 {offsets = [0, 64], sizes = [128, 32], strides = [1, 1]} : vector<128x128xbf16> to vector<128x32xbf16>
    %58 = vector.extract_strided_slice %13 {offsets = [0, 64], sizes = [128, 32], strides = [1, 1]} : vector<128x128xbf16> to vector<128x32xbf16>
    %59 = vector.extract_strided_slice %15 {offsets = [0, 64], sizes = [128, 32], strides = [1, 1]} : vector<128x128xbf16> to vector<128x32xbf16>
    %cst_17 = arith.constant dense<0.000000e+00> : vector<128x128xf32>
    %60 = tpu.matmul %57, %58, %cst_17 {dimension_numbers = #tpu.dot_dimension_numbers<[1], [1], [0], [0], [0, 0, 1, 0], [], []>} : vector<128x32xbf16>, vector<128x32xbf16>, vector<128x128xf32> -> vector<128x128xf32>
    %cst_18 = arith.constant 0xFF800000 : f32
    %61 = vector.broadcast %cst_18 : f32 to vector<128x128xf32>
    %62 = arith.select %18, %60, %61 : vector<128x128xi1>, vector<128x128xf32>
    %cst_19 = arith.constant dense<0xFF800000> : vector<128xf32>
    %63 = vector.multi_reduction <maximumf>, %62, %cst_19 [1] : vector<128x128xf32> to vector<128xf32>
    %64 = vector.shape_cast %63 : vector<128xf32> to vector<128x1xf32>
    %65 = vector.broadcast %64 : vector<128x1xf32> to vector<128x128xf32>
    %66 = arith.subf %62, %65 : vector<128x128xf32>
    %67 = math.exp %66 : vector<128x128xf32>
    %cst_20 = arith.constant dense<0.000000e+00> : vector<128xf32>
    %68 = vector.multi_reduction <add>, %67, %cst_20 [1] : vector<128x128xf32> to vector<128xf32>
    %69 = vector.shape_cast %68 : vector<128xf32> to vector<128x1xf32>
    %70 = tpu.reciprocal %69 {approx = true} : vector<128x1xf32> -> vector<128x1xf32>
    %71 = vector.broadcast %70 : vector<128x1xf32> to vector<128x128xf32>
    %72 = arith.mulf %67, %71 : vector<128x128xf32>
    %73 = arith.truncf %72 : vector<128x128xf32> to vector<128x128xbf16>
    %cst_21 = arith.constant dense<0.000000e+00> : vector<128x32xf32>
    %74 = tpu.matmul %73, %59, %cst_21 {dimension_numbers = #tpu.dot_dimension_numbers<[1], [0], [0], [1], [0, 0, 1, 1], [], []>} : vector<128x128xbf16>, vector<128x32xbf16>, vector<128x32xf32> -> vector<128x32xf32>
    %75 = arith.truncf %74 : vector<128x32xf32> to vector<128x32xbf16>
    %76 = vector.extract_strided_slice %11 {offsets = [0, 96], sizes = [128, 32], strides = [1, 1]} : vector<128x128xbf16> to vector<128x32xbf16>
    %77 = vector.extract_strided_slice %13 {offsets = [0, 96], sizes = [128, 32], strides = [1, 1]} : vector<128x128xbf16> to vector<128x32xbf16>
    %78 = vector.extract_strided_slice %15 {offsets = [0, 96], sizes = [128, 32], strides = [1, 1]} : vector<128x128xbf16> to vector<128x32xbf16>
    %cst_22 = arith.constant dense<0.000000e+00> : vector<128x128xf32>
    %79 = tpu.matmul %76, %77, %cst_22 {dimension_numbers = #tpu.dot_dimension_numbers<[1], [1], [0], [0], [0, 0, 1, 0], [], []>} : vector<128x32xbf16>, vector<128x32xbf16>, vector<128x128xf32> -> vector<128x128xf32>
    %cst_23 = arith.constant 0xFF800000 : f32
    %80 = vector.broadcast %cst_23 : f32 to vector<128x128xf32>
    %81 = arith.select %18, %79, %80 : vector<128x128xi1>, vector<128x128xf32>
    %cst_24 = arith.constant dense<0xFF800000> : vector<128xf32>
    %82 = vector.multi_reduction <maximumf>, %81, %cst_24 [1] : vector<128x128xf32> to vector<128xf32>
    %83 = vector.shape_cast %82 : vector<128xf32> to vector<128x1xf32>
    %84 = vector.broadcast %83 : vector<128x1xf32> to vector<128x128xf32>
    %85 = arith.subf %81, %84 : vector<128x128xf32>
    %86 = math.exp %85 : vector<128x128xf32>
    %cst_25 = arith.constant dense<0.000000e+00> : vector<128xf32>
    %87 = vector.multi_reduction <add>, %86, %cst_25 [1] : vector<128x128xf32> to vector<128xf32>
    %88 = vector.shape_cast %87 : vector<128xf32> to vector<128x1xf32>
    %89 = tpu.reciprocal %88 {approx = true} : vector<128x1xf32> -> vector<128x1xf32>
    %90 = vector.broadcast %89 : vector<128x1xf32> to vector<128x128xf32>
    %91 = arith.mulf %86, %90 : vector<128x128xf32>
    %92 = arith.truncf %91 : vector<128x128xf32> to vector<128x128xbf16>
    %cst_26 = arith.constant dense<0.000000e+00> : vector<128x32xf32>
    %93 = tpu.matmul %92, %78, %cst_26 {dimension_numbers = #tpu.dot_dimension_numbers<[1], [0], [0], [1], [0, 0, 1, 1], [], []>} : vector<128x128xbf16>, vector<128x32xbf16>, vector<128x32xf32> -> vector<128x32xf32>
    %94 = arith.truncf %93 : vector<128x32xf32> to vector<128x32xbf16>
    %95 = tpu.concatenate %37, %56, %75, %94 in 1 : vector<128x32xbf16>, vector<128x32xbf16>, vector<128x32xbf16>, vector<128x32xbf16> -> vector<128x128xbf16>
    %cst_27 = arith.constant dense<0.000000e+00> : vector<128x128xf32>
    %96 = tpu.matmul %95, %6, %cst_27 {dimension_numbers = #tpu.dot_dimension_numbers<[1], [0], [0], [1], [0, 0, 1, 1], [], []>} : vector<128x128xbf16>, vector<128x128xbf16>, vector<128x128xf32> -> vector<128x128xf32>
    %c0_28 = arith.constant 0 : index
    %c0_29 = arith.constant 0 : index
    %97 = vector.load %arg4[%c0_28, %c0_29] : memref<1x128xf32, #tpu.memory_space<vmem>>, vector<1x128xf32>
    %98 = vector.broadcast %97 : vector<1x128xf32> to vector<128x128xf32>
    %99 = arith.addf %96, %98 : vector<128x128xf32>
    %c0_30 = arith.constant 0 : index
    %c0_31 = arith.constant 0 : index
    %c0_32 = arith.constant 0 : index
    %100 = vector.load %arg5[%c0_30, %c0_31, %c0_32] : memref<1x128x128xf32, #tpu.memory_space<vmem>>, vector<1x128x128xf32>
    %101 = vector.shape_cast %100 : vector<1x128x128xf32> to vector<128x128xf32>
    %102 = vector.shape_cast %99 : vector<128x128xf32> to vector<1x128x128xf32>
    tpu.vector_store %arg5[%c0_30, %c0_31, %c0_32], %102 {strides = array<i32>} : memref<1x128x128xf32, #tpu.memory_space<vmem>>, vector<1x128x128xf32>,
    return
  }
  func.func @transform_0(%arg0: i32) -> (i32, i32, i32) {
    %c0_i32 = arith.constant 0 : i32
    %c0_i32_0 = arith.constant 0 : i32
    %c0_i32_1 = arith.constant 0 : i32
    return %arg0, %c0_i32, %c0_i32_0 : i32, i32, i32
  }
  func.func @transform_1(%arg0: i32) -> (i32, i32) {
    %c0_i32 = arith.constant 0 : i32
    %c0_i32_0 = arith.constant 0 : i32
    %c0_i32_1 = arith.constant 0 : i32
    return %c0_i32, %c0_i32_0 : i32, i32
  }
  func.func @transform_2(%arg0: i32) -> (i32, i32) {
    %c0_i32 = arith.constant 0 : i32
    %c0_i32_0 = arith.constant 0 : i32
    %c0_i32_1 = arith.constant 0 : i32
    return %c0_i32, %c0_i32_0 : i32, i32
  }
  func.func @transform_3(%arg0: i32) -> (i32, i32) {
    %c0_i32 = arith.constant 0 : i32
    %c0_i32_0 = arith.constant 0 : i32
    %c0_i32_1 = arith.constant 0 : i32
    return %c0_i32, %c0_i32_0 : i32, i32
  }
  func.func @transform_4(%arg0: i32) -> (i32, i32, i32) {
    %c0_i32 = arith.constant 0 : i32
    %c0_i32_0 = arith.constant 0 : i32
    %c0_i32_1 = arith.constant 0 : i32
    return %arg0, %c0_i32, %c0_i32_0 : i32, i32, i32
  }
}

</mosaic_0001>

<bundles_post_ra>
// kernel: tpu_custom_call.1
= control target key start
LH: loop header
LB: loop body
LE: loop exit
PB: predicated region body
PF: predicated region fallthrough
CT: control target
= control target key end

     0   :  { %9 = vsyncpa [#allocation3], 0  ;;  %s5632_s0 = inlined_call_operand.hbm [shape: f32[2,128,128], index: 0, kind: input, shape index: {}]   ;;  %s5633_s1 = inlined_call_operand.hbm [shape: f32[128,384], index: 1, kind: input, shape index: {}]   ;;  %s5634_s2 = inlined_call_operand.hbm [shape: f32[128,128], index: 2, kind: input, shape index: {}]   ;;  %s5635_s3 = inlined_call_operand.vmem [shape: f32[1,128], index: 3, kind: input, shape index: {}]   ;;  %s5636_s4 = inlined_call_operand.hbm [shape: f32[2,128,128], index: 4, kind: output, shape index: {}]  }
   0x1   :  { %11 = vsyncpa [#allocation3 + $0x1], 0 }
   0x2   :  { %12 = vsyncpa [#allocation6], 0 }
   0x3   :  { %13 = vsyncpa [#allocation4], 0 }
   0x4   :  { %15 = vsyncpa [#allocation4 + $0x1], 0  ;;  %s3991_s15 = smov 0   ;;  %s3993_s16 = smov 0  }
   0x5   :  { %s3995_s17 = smov 0   ;;  %s3997_s18 = smov 0  }
   0x6 LB: > { %s4012_s19 = sadd.s32 4294967295, %s3950_s18   ;;  %s2880_s20 = sadd.s32 4294967294, %s3950_s18   ;;  %s3950_s18 = sphi %s3997_s18, %s5861_s18   ;;  %s3946_s17 = sphi %s3995_s17, %s5860_s17   ;;  %s3942_s16 = sphi %s3993_s16, %s5859_s16   ;;  %s3938_s15 = sphi %s3991_s15, %s5858_s15  }
   0x7   : > { %p41_p0 = scmp.ne.s32.totalorder %s3942_s16, %s3938_s15  ;;  %p5637_p1 = scmp.eq.s32.totalorder %s4012_s19, 0 }
   0x8   : > { %p134_p3 = scmp.eq.s32.totalorder %s2880_s20, 1  ;;  %p2881_p5 = scmp.ge.s32.totalorder %s3950_s18, 1 }
   0x9   : > { %p4021_p4 = por %p5637_p1, %p41_p0  ;;  %p141_p7 = scmp.lt.s32.totalorder %s3950_s18, 3 }
   0xa   : > { %p4026_p6 = por %p134_p3, %p41_p0  ;;  %s3952_s24 = smov [#allocation5]  }
   0xb   : > { %s5707_s21 = scalar_select %p4021_p4, 1, 0 }
   0xc   : > { %s5708_s22 = scalar_select %p4026_p6, 1, 0 }
   0xd   : > { %p4031_p8 = pnand %p2881_p5, %p141_p7  ;;  %s153_s25 = sshll.u32 %s3952_s24, 4  ;;  %s4035_s25 = int_to_ptr.vmem [resolvable:$true] %s153_s25 }
   0xe   : > { %s3953_s27 = smov [#allocation7]   ;;  %s3794_s5 = scalar_lea.hbm %s5633_s1, 6144 }
   0xf   : > { %p3473_p9 = pneg %p4031_p8  ;;  %s166_s28 = sshll.u32 %s3953_s27, 4  ;;  %s4046_s28 = int_to_ptr.vmem [resolvable:$true] %s166_s28 }
  0x10   : > { %p3795_p12 = scmp.ne.s32.totalorder %s5633_s1, %s3794_s5  ;;  %p3801_p5 = scmp.lt.u32.totalorder %s3794_s5, %s5633_s1 }
  0x11   : > { %p4042_p11 = pnand %p3473_p9, %p5637_p1 }
  0x13   : > { %p3796_p13 = pneg %p4042_p11 }
  0x15   : > { %p3797_p0 = pnand %p3796_p13, %p3795_p12 }
  0x17   : > { %p3798_p3 = pneg %p3797_p0 }
  0x19   : > { %p3803_p7 = pnand %p3801_p5, %p3798_p3 }
  0x1b   : > { %3806 = shalt.err (!%p3803_p7)
}
  0x1c   : > { %s3807_s10 = scalar_lea.vmem %s4035_s25, 6144  ;;  %p3815_p2 = scmp.lt.s32.totalorder %s4035_s25, %s4035_s25 }
  0x1d   : > { %p3808_p9 = scmp.ne.s32.totalorder %s4035_s25, %s3807_s10  ;;  %p3816_p12 = scmp.lt.s32.totalorder %s3807_s10, %s3807_s10 }
  0x1f   : > { %p3810_p10 = pnand %p3808_p9, %p3796_p13  ;;  %p3817_p0 = por %p3816_p12, %p3815_p2 }
  0x21   : > { %p3811_p1 = pneg %p3810_p10 }
  0x23   : > { %p3818_p6 = pnand %p3817_p0, %p3811_p1 }
  0x25   : > { %3821 = shalt.err (!%p3818_p6)
}
  0x26   : > { %s3954_s11 = smov 384   ;;  %s3955_s12 = smov 24  }
  0x27   : > { %3476 = dma.hbm_to_vmem [thread:$0]  (!%p4042_p11), %s5633_s1, 6144, %s4035_s25, [#allocation6], %s3954_s11, %s3954_s11, %s3955_s12  }
  0x28   : > { %s3822_s27 = scalar_lea.hbm %s5634_s2, 2048 }
  0x29   : > { %p3823_p2 = scmp.ne.s32.totalorder %s5634_s2, %s3822_s27  ;;  %p3829_p10 = scmp.lt.u32.totalorder %s3822_s27, %s5634_s2 }
  0x2b   : > { %p3825_p1 = pnand %p3823_p2, %p3796_p13 }
  0x2d   : > { %p3826_p6 = pneg %p3825_p1 }
  0x2f   : > { %p3831_p3 = pnand %p3829_p10, %p3826_p6 }
  0x31   : > { %3834 = shalt.err (!%p3831_p3)
}
  0x32   : > { %s3835_s25 = scalar_lea.vmem %s4046_s28, 2048  ;;  %p3843_p12 = scmp.lt.s32.totalorder %s4046_s28, %s4046_s28 }
  0x33   : > { %p3836_p5 = scmp.ne.s32.totalorder %s4046_s28, %s3835_s25  ;;  %p3844_p0 = scmp.lt.s32.totalorder %s3835_s25, %s3835_s25 }
  0x35   : > { %p3838_p7 = pnand %p3836_p5, %p3796_p13  ;;  %p3845_p2 = por %p3844_p0, %p3843_p12 }
  0x37   : > { %p3839_p9 = pneg %p3838_p7 }
  0x39   : > { %p3846_p1 = pnand %p3845_p2, %p3839_p9 }
  0x3b   : > { %3849 = shalt.err (!%p3846_p1)
}
  0x3c   : > { %s3956_s7 = smov 128   ;;  %s3957_s8 = smov 8  }
  0x3d   : > { %3479 = dma.hbm_to_vmem [thread:$0]  (!%p4042_p11), %s5634_s2, 2048, %s4046_s28, [#allocation6], %s3956_s7, %s3956_s7, %s3957_s8  }
  0x3e   : > { %s4104_s11 = sadd.s32 1, %s3950_s18   ;;  %s28_s13 = sadd.s32 1, %s3946_s17 }
  0x3f   : > { %s25_s12 = ssub.s32 %s3950_s18, %s4104_s11  ;;  %p35_p6 = scmp.ne.s32.totalorder %s3946_s17, %s3942_s16 }
  0x40   : > { %p26_p13 = scmp.eq.s32.totalorder %s25_s12, 0  ;;  %p36_p10 = scmp.eq.s32.totalorder %s3950_s18, 0 }
  0x41   : > { %p5711_p5 = scmp.eq.s32.totalorder %s4012_s19, 1  ;;  %p3490_p9 = scmp.lt.s32.totalorder %s3950_s18, 2 }
  0x42   : > { %s4113_s14 = scalar_select %p26_p13, %s3946_s17, %s28_s13  }
  0x43   : > { %p37_p3 = por %p36_p10, %p35_p6  ;;  %p4117_p7 = por %p5711_p5, %p35_p6 }
  0x44   : > { %s183_s20 = sand.u32 1, %s3946_s17   ;;  %s2931_s28 = sshll.u32 %s3950_s18, 11 }
  0x45   : > { %s5712_s26 = scalar_select %p4117_p7, 1, 0 }
  0x46   : > { %s2885_s24 = sshll.u32 %s183_s20, 7  ;;  %s4127_s30 = scalar_lea.hbm %s5632_s0, %s2931_s28 }
  0x47   : > { %s187_s5 = scalar_lea.vmem [#allocation2], %s2885_s24  ;;  %p4131_p11 = pnand %p3490_p9, %p37_p3 }
  0x48   : > { %s194_s6 = sshll.u32 %s187_s5, 4  ;;  %s4135_s9 = scalar_lea.sflag [#allocation3], %s183_s20  ;;  %s4129_s6 = int_to_ptr.vmem [resolvable:$true] %s194_s6 }
  0x49   : > { %s3850_s10 = scalar_lea.hbm %s4127_s30, 2048  ;;  %p3852_p0 = pneg %p4131_p11 }
  0x4a   : > { %p3851_p12 = scmp.ne.s32.totalorder %s4127_s30, %s3850_s10  ;;  %s3855_s24 = scalar_lea.hbm %s5632_s0, 4096 }
  0x4b   : > { %p3856_p13 = scmp.lt.u32.totalorder %s4127_s30, %s5632_s0  ;;  %p3857_p6 = scmp.lt.u32.totalorder %s3855_s24, %s3850_s10 }
  0x4c   : > { %p3853_p2 = pnand %p3852_p0, %p3851_p12  ;;  %p3859_p3 = scmp.lt.u32.totalorder %s3850_s10, %s4127_s30 }
  0x4d   : > { %p3858_p10 = por %p3857_p6, %p3856_p13 }
  0x4e   : > { %p3854_p1 = pneg %p3853_p2 }
  0x4f   : > { %p3860_p5 = por %p3859_p3, %p3858_p10 }
  0x51   : > { %p3861_p9 = pnand %p3860_p5, %p3854_p1 }
  0x53   : > { %3864 = shalt.err (!%p3861_p9)
}
  0x54   : > { %s3865_s20 = scalar_lea.vmem %s4129_s6, 2048  ;;  %s3958_s29 = smov [#allocation2]  }
  0x55   : > { %p3866_p12 = scmp.ne.s32.totalorder %s4129_s6, %s3865_s20  ;;  %s3870_s5 = sshll.u32 %s3958_s29, 4  ;;  %s3871_s5 = int_to_ptr.vmem [resolvable:$false] %s3870_s5 }
  0x56   : > { %s3872_s12 = scalar_lea.vmem %s3871_s5, 4096  ;;  %p3873_p4 = scmp.lt.s32.totalorder %s4129_s6, %s3871_s5 }
  0x57   : > { %p3868_p2 = pnand %p3866_p12, %p3852_p0  ;;  %p3874_p13 = scmp.lt.s32.totalorder %s3872_s12, %s3865_s20 }
  0x59   : > { %p3869_p7 = pneg %p3868_p2  ;;  %p3875_p6 = por %p3874_p13, %p3873_p4 }
  0x5b   : > { %p3876_p10 = pnand %p3875_p6, %p3869_p7 }
  0x5d   : > { %3879 = shalt.err (!%p3876_p10)
}
  0x5e   : > { %3483 = dma.hbm_to_vmem [thread:$0]  (!%p4131_p11), %s4127_s30, 2048, %s4129_s6, %s4135_s9, %s3956_s7, %s3956_s7, %s3957_s8  }
  0x5f   : > { %206 = sbr.rel (%p4031_p8) target bundleno = 3477 (0xd95), region = 36 }
  0x66   : > { %s4169_s10 = sand.u32 1, %s3942_s16   ;;  %p5714_p4 = scmp.ne.s32.totalorder %s5707_s21, 0 }
  0x67   : > { %s2889_s13 = sshll.u32 %s4169_s10, 7  ;;  %s209_s24 = scalar_lea.sflag [#allocation3], %s4169_s10 }
  0x68   : > { %s4175_s25 = scalar_lea.vmem [#allocation2], %s2889_s13 }
  0x69   : > { %3925 = dma.done.wait (%p5714_p4), %s209_s24, 2048  }
  0x6a   : > { %3927 = vsyncadd (%p5714_p4), %s209_s24, 4294965248  ;;  %p5715_p7 = scmp.eq.s32.totalorder %s4012_s19, 0 }
  0x6c   : > { %3929 = dma.done.wait (%p5715_p7), [#allocation6], 8192   ;;  %p5716_p8 = pmov %p5715_p7 }
  0x6d   : > { %v3959_v0 = vmov 0   ;;  %v271_v1 = vld [vmem:[#allocation5 + $0x8] sm:$0xff]  ;;  %v274_v2 = vld [vmem:[#allocation5 + $0x20] sm:$0xff]  ;;  %v273_v5 = vld [vmem:[#allocation5 + $0x18] sm:$0xff]  ;;  %vm651_vm0 = vcmask 261120   ;;  %s3960_s21 = smov 96  }
  0x6e   : > { %3931 = vsyncadd (%p5716_p8), [#allocation6], 4294959104  ;;  %398 = vmatprep.mubr.bf16.mxu0 %v3959_v0  ;;  %v270_v3 = vld [vmem:[#allocation5] sm:$0xff]  ;;  %v319_v4 = vpack.c.bf16 %v274_v2, %v271_v1  ;;  %v277_v6 = vld [vmem:[#allocation5 + $0x38] sm:$0xff]  ;;  %s3961_s23 = smov 64   ;;  %s3962_s7 = smov 32  }
  0x6f   : > { %v280_v7 = vld [vmem:[#allocation5 + $0x50] sm:$0xff]  ;;  %v318_v8 = vpack.c.bf16 %v273_v5, %v270_v3  ;;  %v279_v11 = vld [vmem:[#allocation5 + $0x48] sm:$0xff]  ;;  %v286_v13 = vld [vmem:[#allocation5 + $0x80] sm:$0xff]  ;;  %s5563_s6 = scalar_lea.vmem [#allocation8], %s2889_s13  ;;  %s2932_s9 = sshll.u32 %s4012_s19, 11 }
  0x70   : > { %v322_v9 = vpack.c.bf16 %v280_v7, %v277_v6  ;;  %v276_v10 = vld [vmem:[#allocation5 + $0x30] sm:$0xff]  ;;  %v283_v12 = vld [vmem:[#allocation5 + $0x68] sm:$0xff]  ;;  %366 = vmatprep.subr.bf16.mxu0 %v319_v4  ;;  %v282_v16 = vld [vmem:[#allocation5 + $0x60] sm:$0xff]  ;;  %s2788_s28 = sshll.u32 %s5563_s6, 4  ;;  %s5583_s29 = scalar_lea.hbm %s5636_s4, %s2932_s9  ;;  %s5585_s28 = int_to_ptr.vmem [resolvable:$true] %s2788_s28 }
  0x71   : > { %367 = vmatpush1.bf16.msra.mxu0 %v318_v8  ;;  %v321_v14 = vpack.c.bf16 %v279_v11, %v276_v10  ;;  %v325_v15 = vpack.c.bf16 %v286_v13, %v283_v12  ;;  %v285_v17 = vld [vmem:[#allocation5 + $0x78] sm:$0xff]  ;;  %v292_v19 = vld [vmem:[#allocation5 + $0xb0] sm:$0xff]  ;;  %v291_v23 = vld [vmem:[#allocation5 + $0xa8] sm:$0xff]  ;;  %s2775_s19 = scalar_lea.sflag [#allocation4], %s4169_s10  ;;  %s3880_s5 = scalar_lea.vmem %s5585_s28, 2048 }
  0x72   : > { %368 = vmatprep.subr.bf16.mxu0 %v322_v9  ;;  %v289_v18 = vld [vmem:[#allocation5 + $0x98] sm:$0xff]  ;;  %v324_v20 = vpack.c.bf16 %v285_v17, %v282_v16  ;;  %v288_v22 = vld [vmem:[#allocation5 + $0x90] sm:$0xff]  ;;  %v295_v24 = vld [vmem:[#allocation5 + $0xc8] sm:$0xff]  ;;  %p3881_p11 = scmp.ne.s32.totalorder %s5585_s28, %s3880_s5  ;;  %p5855_p0 = scmp.ne.s32.totalorder %s5712_s26, 0 }
  0x73   : > { %v328_v21 = vpack.c.bf16 %v292_v19, %v289_v18  ;;  %v298_v25 = vld [vmem:[#allocation5 + $0xe0] sm:$0xff]  ;;  %v247_v27 = vld [vmem:[%s4175_s25 + $0x8] sm:$0xff]  ;;  %v327_v28 = vpack.c.bf16 %v291_v23, %v288_v22  ;;  %v297_v32 = vld [vmem:[#allocation5 + $0xd8] sm:$0xff]  ;;  %s3963_s12 = smov [#allocation8]  }
  0x74   : > { %v246_v26 = vld [vmem:[%s4175_s25] sm:$0xff]  ;;  %v331_v30 = vpack.c.bf16 %v298_v25, %v295_v24  ;;  %v301_v33 = vld [vmem:[#allocation5 + $0xf8] sm:$0xff]  ;;  %v304_v34 = vld [vmem:[#allocation5 + $0x110] sm:$0xff]  ;;  %p3882_p1 = pnand %p3881_p11, %p5855_p0  ;;  %s3884_s13 = sshll.u32 %s3963_s12, 4  ;;  %s3885_s13 = int_to_ptr.vmem [resolvable:$false] %s3884_s13 }
  0x75   : > { %369 = vmatpush1.bf16.msra.mxu0 %v321_v14  ;;  %v262_v29 = vpack.c.bf16 %v247_v27, %v246_v26  ;;  %v294_v31 = vld [vmem:[#allocation5 + $0xc0] sm:$0xff]  ;;  %v272_v35 = vld [vmem:[#allocation5 + $0x10] sm:$0xff]  ;;  %v275_v36 = vld [vmem:[#allocation5 + $0x28] sm:$0xff]  ;;  %v334_v42 = vpack.c.bf16 %v304_v34, %v301_v33  ;;  %s3886_s24 = scalar_lea.vmem %s3885_s13, 4096  ;;  %p3887_p5 = scmp.lt.s32.totalorder %s5585_s28, %s3885_s13 }
  0x76   : > { %370 = vmatprep.subr.bf16.mxu0 %v325_v15  ;;  %v330_v37 = vpack.c.bf16 %v297_v32, %v294_v31  ;;  %v300_v38 = vld [vmem:[#allocation5 + $0xf0] sm:$0xff]  ;;  %v303_v39 = vld [vmem:[#allocation5 + $0x108] sm:$0xff]  ;;  %v320_v40 = vpack.c.bf16 %v275_v36, %v272_v35  ;;  %v278_v41 = vld [vmem:[#allocation5 + $0x40] sm:$0xff]  ;;  %p3883_p3 = pneg %p3882_p1  ;;  %p3888_p9 = scmp.lt.s32.totalorder %s3886_s24, %s3880_s5 }
  0x77   : > { %3109 = vmatprep.mubr.bf16.mxu1 %v262_v29  ;;  %v281_v43 = vld [vmem:[#allocation5 + $0x58] sm:$0xff]  ;;  %v284_v44 = vld [vmem:[#allocation5 + $0x70] sm:$0xff]  ;;  %v287_v45 = vld [vmem:[#allocation5 + $0x88] sm:$0xff]  ;;  %v333_v49 = vpack.c.bf16 %v303_v39, %v300_v38 }
  0x78   : > { %v307_v46 = vld [vmem:[#allocation5 + $0x128] sm:$0xff]  ;;  %v310_v47 = vld [vmem:[#allocation5 + $0x140] sm:$0xff]  ;;  %3093 = vmatprep.subr.bf16.mxu1 %v320_v40  ;;  %v323_v48 = vpack.c.bf16 %v281_v43, %v278_v41  ;;  %v326_v51 = vpack.c.bf16 %v287_v45, %v284_v44  ;;  %v309_v53 = vld [vmem:[#allocation5 + $0x138] sm:$0xff]  ;;  %p3889_p12 = por %p3888_p9, %p3887_p5 }
  0x79   : > { %371 = vmatpush1.bf16.msra.mxu0 %v324_v20  ;;  %3094 = vmatpush3.bf16.msra.mxu1 %v320_v40  ;;  %v306_v50 = vld [vmem:[#allocation5 + $0x120] sm:$0xff]  ;;  %v337_v52 = vpack.c.bf16 %v310_v47, %v307_v46  ;;  %v293_v55 = vld [vmem:[#allocation5 + $0xb8] sm:$0xff]  ;;  %v316_v57 = vld [vmem:[#allocation5 + $0x170] sm:$0xff] }
  0x7a   : > { %372 = vmatprep.subr.bf16.mxu0 %v328_v21  ;;  %3095 = vmatprep.subr.bf16.mxu1 %v323_v48  ;;  %v290_v54 = vld [vmem:[#allocation5 + $0xa0] sm:$0xff]  ;;  %v313_v56 = vld [vmem:[#allocation5 + $0x158] sm:$0xff]  ;;  %v336_v58 = vpack.c.bf16 %v309_v53, %v306_v50  ;;  %v312_v59 = vld [vmem:[#allocation5 + $0x150] sm:$0xff]  ;;  %p3890_p2 = pnand %p3889_p12, %p3883_p3 }
  0x7b   : > { %v329_v60 = vpack.c.bf16 %v293_v55, %v290_v54  ;;  %v340_v61 = vpack.c.bf16 %v316_v57, %v313_v56  ;;  %v315_v62 = vld [vmem:[#allocation5 + $0x168] sm:$0xff]  ;;  %v296_v63 = vld [vmem:[#allocation5 + $0xd0] sm:$0xff]  ;;  %v302_v4 = vld [vmem:[#allocation5 + $0x100] sm:$0xff] }
  0x7c   : > { %v299_v1 = vld [vmem:[#allocation5 + $0xe8] sm:$0xff]  ;;  %v339_v2 = vpack.c.bf16 %v315_v62, %v312_v59  ;;  %v305_v5 = vld [vmem:[#allocation5 + $0x118] sm:$0xff]  ;;  %v308_v7 = vld [vmem:[#allocation5 + $0x130] sm:$0xff] }
  0x7d   : > { %373 = vmatpush1.bf16.msra.mxu0 %v327_v28  ;;  %3096 = vmatpush3.bf16.msra.mxu1 %v323_v48  ;;  %v332_v3 = vpack.c.bf16 %v299_v1, %v296_v63  ;;  %v335_v6 = vpack.c.bf16 %v305_v5, %v302_v4  ;;  %v311_v8 = vld [vmem:[#allocation5 + $0x148] sm:$0xff]  ;;  %v248_v9 = vld [vmem:[%s4175_s25 + $0x10] sm:$0xff]  ;;  %v249_v10 = vld [vmem:[%s4175_s25 + $0x18] sm:$0xff] }
  0x7e   : > { %374 = vmatprep.subr.bf16.mxu0 %v331_v30  ;;  %3097 = vmatprep.subr.bf16.mxu1 %v326_v51  ;;  %v338_v11 = vpack.c.bf16 %v311_v8, %v308_v7  ;;  %v314_v12 = vld [vmem:[#allocation5 + $0x160] sm:$0xff]  ;;  %v317_v13 = vld [vmem:[#allocation5 + $0x178] sm:$0xff]  ;;  %v263_v14 = vpack.c.bf16 %v249_v10, %v248_v9  ;;  %v251_v17 = vld [vmem:[%s4175_s25 + $0x28] sm:$0xff] }
  0x7f   : > { %v341_v15 = vpack.c.bf16 %v317_v13, %v314_v12  ;;  %v250_v16 = vld [vmem:[%s4175_s25 + $0x20] sm:$0xff]  ;;  %v252_v19 = vld [vmem:[%s4175_s25 + $0x30] sm:$0xff]  ;;  %v253_v20 = vld [vmem:[%s4175_s25 + $0x38] sm:$0xff] }
  0x80   : > { %v264_v18 = vpack.c.bf16 %v251_v17, %v250_v16  ;;  %v254_v21 = vld [vmem:[%s4175_s25 + $0x40] sm:$0xff]  ;;  %v255_v22 = vld [vmem:[%s4175_s25 + $0x48] sm:$0xff]  ;;  %v265_v23 = vpack.c.bf16 %v253_v20, %v252_v19  ;;  %v256_v25 = vld [vmem:[%s4175_s25 + $0x50] sm:$0xff] }
  0x81   : > { %375 = vmatpush1.bf16.msra.mxu0 %v330_v37  ;;  %3098 = vmatpush3.bf16.msra.mxu1 %v326_v51  ;;  %v266_v24 = vpack.c.bf16 %v255_v22, %v254_v21  ;;  %v257_v26 = vld [vmem:[%s4175_s25 + $0x58] sm:$0xff]  ;;  %v258_v27 = vld [vmem:[%s4175_s25 + $0x60] sm:$0xff]  ;;  %v259_v28 = vld [vmem:[%s4175_s25 + $0x68] sm:$0xff] }
  0x82   : > { %376 = vmatprep.subr.bf16.mxu0 %v334_v42  ;;  %3099 = vmatprep.subr.bf16.mxu1 %v329_v60  ;;  %v268_v30 = vpack.c.bf16 %v259_v28, %v258_v27  ;;  %v260_v31 = vld [vmem:[%s4175_s25 + $0x70] sm:$0xff]  ;;  %v261_v32 = vld [vmem:[%s4175_s25 + $0x78] sm:$0xff] }
  0x83   : > { %v269_v33 = vpack.c.bf16 %v261_v32, %v260_v31 }
  0x85   : > { %377 = vmatpush1.bf16.msra.mxu0 %v333_v49  ;;  %3100 = vmatpush3.bf16.msra.mxu1 %v329_v60 }
  0x86   : > { %378 = vmatprep.subr.bf16.mxu0 %v337_v52  ;;  %3101 = vmatprep.subr.bf16.mxu1 %v332_v3 }
  0x89   : > { %379 = vmatpush1.bf16.msra.mxu0 %v336_v58  ;;  %3102 = vmatpush3.bf16.msra.mxu1 %v332_v3 }
  0x8a   : > { %380 = vmatprep.subr.bf16.mxu0 %v340_v61  ;;  %3103 = vmatprep.subr.bf16.mxu1 %v335_v6 }
  0x8d   : > { %381 = vmatpush1.bf16.msra.mxu0 %v339_v2  ;;  %3104 = vmatpush3.bf16.msra.mxu1 %v335_v6 }
  0x8e   : > { %3105 = vmatprep.subr.bf16.mxu1 %v338_v11 }
  0x90   : > { %399 = vmatmul.mubr.bf16.vlgmr.msra.gmra.mrb[0].mxu0 %v262_v29  ;;  %v267_v29 = vpack.c.bf16 %v257_v26, %v256_v25 }
  0x91   : > { %408 = vmatprep.mubr.bf16.mxu0 %v3959_v0  ;;  %3106 = vmatpush3.bf16.msra.mxu1 %v338_v11 }
  0x92   : > { %3107 = vmatprep.subr.bf16.mxu1 %v341_v15 }
  0x95   : > { %3108 = vmatpush3.bf16.msra.mxu1 %v341_v15 }
  0x98   : > { %409 = vmatmul.mubr.bf16.gmra.mrb[4].mxu0 %v263_v14  ;;  %3110 = vmatmul.mubr.bf16.vlgmr.msra.gmra.mrb[0].mxu1 %v263_v14 }
  0x99   : > { %418 = vmatprep.mubr.bf16.mxu0 %v3959_v0  ;;  %3113 = vmatprep.mubr.bf16.mxu1 %v264_v18 }
  0xa0   : > { %419 = vmatmul.mubr.bf16.gmra.mrb[8].mxu0 %v264_v18  ;;  %3114 = vmatmul.mubr.bf16.gmra.mrb[4].mxu1 %v265_v23 }
  0xa1   : > { %428 = vmatprep.mubr.bf16.mxu0 %v3959_v0  ;;  %3117 = vmatprep.mubr.bf16.mxu1 %v266_v24 }
  0xa8   : > { %429 = vmatmul.mubr.bf16.gmra.mrb[12].mxu0 %v265_v23  ;;  %3118 = vmatmul.mubr.bf16.gmra.mrb[8].mxu1 %v267_v29 }
  0xa9   : > { %438 = vmatprep.mubr.bf16.mxu0 %v3959_v0  ;;  %3121 = vmatprep.mubr.bf16.mxu1 %v268_v30 }
  0xb0   : > { %439 = vmatmul.mubr.bf16.gmra.mrb[16].mxu0 %v266_v24  ;;  %3122 = vmatmul.mubr.bf16.gmra.mrb[12].mxu1 %v269_v33 }
  0xb1   : > { %448 = vmatprep.mubr.bf16.mxu0 %v3959_v0 }
  0xb8   : > { %449 = vmatmul.mubr.bf16.gmra.mrb[20].mxu0 %v267_v29 }
  0xb9   : > { %458 = vmatprep.mubr.bf16.mxu0 %v3959_v0 }
  0xc0   : > { %459 = vmatmul.mubr.bf16.gmra.mrb[24].mxu0 %v268_v30 }
  0xc1   : > { %468 = vmatprep.mubr.bf16.mxu0 %v3959_v0 }
  0xc8   : > { %469 = vmatmul.mubr.bf16.gmra.mrb[28].mxu0 %v269_v33 }
 0x163   : > { %v400_v34 = vpop.f32.mrb[0].mxu0 }
 0x164   : > { %v402_v35 = vpop.f32.mrb[1].mxu0  ;;  %v576_v37 = vmul.f32 0.17677669, %v400_v34 }
 0x165   : > { %v404_v36 = vpop.f32.mrb[2].mxu0 }
 0x166   : > { %v577_v38 = vmul.f32 0.17677669, %v404_v36  ;;  %v406_v39 = vpop.f32.mrb[3].mxu0 }
 0x167   : > { %v4209_v40 = vpack.c.bf16 %v406_v39, %v402_v35 }
 0x168   : > { %v4211_v41 = vpack.c.bf16 %v577_v38, %v576_v37 }
 0x169   : > { %1102 = vrot.lane.b32.xlu0 %v4209_v40, %s3960_s21  ;;  %3429 = vmatprep.subr.msk.bf16.mxu0 %vm651_vm0, %v4209_v40  ;;  %v677_v0 = vsel %vm651_vm0, %v4209_v40, 0 }
 0x16a   : > { %3126 = vmatpush3.bf16.xpose.msra.mxu0 %v677_v0  ;;  %3141 = vmatprep.mubr.msk.bf16.mxu0 %vm651_vm0, %v4211_v41 }
 0x16b   : > { %v410_v42 = vpop.f32.mrb[4].mxu0  ;;  %v3111_v51 = vpop.f32.mrb[0].mxu1 }
 0x16c   : > { %v412_v43 = vpop.f32.mrb[5].mxu0  ;;  %v578_v45 = vmul.f32 0.17677669, %v410_v42  ;;  %v513_v53 = vpop.f32.mrb[1].mxu1 }
 0x16d   : > { %v414_v44 = vpop.f32.mrb[6].mxu0  ;;  %v3112_v55 = vpop.f32.mrb[2].mxu1 }
 0x16e   : > { %v579_v46 = vmul.f32 0.17677669, %v414_v44  ;;  %v416_v47 = vpop.f32.mrb[7].mxu0  ;;  %v4231_v57 = vpack.c.bf16 %v3112_v55, %v3111_v51  ;;  %v516_v58 = vpop.f32.mrb[3].mxu1 }
 0x16f   : > { %v4221_v48 = vpack.c.bf16 %v416_v47, %v412_v43  ;;  %v4233_v62 = vpack.c.bf16 %v516_v58, %v513_v53 }
 0x170   : > { %v4223_v49 = vpack.c.bf16 %v579_v46, %v578_v45 }
 0x171   : > { %1104 = vrot.lane.b32.xlu1 %v4221_v48, %s3960_s21  ;;  %3430 = vmatprep.subr.msk.bf16.mxu0 %vm651_vm0, %v4221_v48  ;;  %v680_v50 = vsel %vm651_vm0, %v4221_v48, 0 }
 0x172   : > { %3128 = vmatpush3.bf16.xpose.msra.mxu0 %v680_v50  ;;  %3157 = vmatprep.subr.bf16.mxu1 %v4233_v62 }
 0x173   : > { %v420_v52 = vpop.f32.mrb[8].mxu0  ;;  %3158 = vmatpush3.bf16.msra.mxu1 %v4233_v62  ;;  %v3115_v3 = vpop.f32.mrb[4].mxu1 }
 0x174   : > { %v422_v54 = vpop.f32.mrb[9].mxu0  ;;  %v580_v59 = vmul.f32 0.17677669, %v420_v52  ;;  %3159 = vmatprep.subr.bf16.mxu1 %v4231_v57  ;;  %v529_v5 = vpop.f32.mrb[5].mxu1 }
 0x175   : > { %v424_v56 = vpop.f32.mrb[10].mxu0  ;;  %v3116_v7 = vpop.f32.mrb[6].mxu1 }
 0x176   : > { %v581_v60 = vmul.f32 0.17677669, %v424_v56  ;;  %v426_v61 = vpop.f32.mrb[11].mxu0  ;;  %v4246_v9 = vpack.c.bf16 %v3116_v7, %v3115_v3  ;;  %v532_v10 = vpop.f32.mrb[7].mxu1 }
 0x177   : > { %v4235_v63 = vpack.c.bf16 %v426_v61, %v422_v54  ;;  %3160 = vmatpush3.bf16.msra.mxu1 %v4231_v57  ;;  %v4249_v14 = vpack.c.bf16 %v532_v10, %v529_v5 }
 0x178   : > { %v4237_v1 = vpack.c.bf16 %v581_v60, %v580_v59  ;;  %5718 = vst [vmem:[#allocation13_spill] sm:$0xff] %v4246_v9 }
 0x179   : > { %5717 = vst [vmem:[#allocation12_spill] sm:$0xff] %v4235_v63  ;;  %3431 = vmatprep.subr.msk.bf16.mxu0 %vm651_vm0, %v4235_v63  ;;  %v683_v2 = vsel %vm651_vm0, %v4235_v63, 0  ;;  %3161 = vmatprep.subr.bf16.mxu1 %v4249_v14 }
 0x17a   : > { %3130 = vmatpush3.bf16.xpose.msra.mxu0 %v683_v2 }
 0x17b   : > { %v430_v4 = vpop.f32.mrb[12].mxu0  ;;  %3162 = vmatpush3.bf16.msra.mxu1 %v4249_v14  ;;  %v3119_v18 = vpop.f32.mrb[8].mxu1 }
 0x17c   : > { %v432_v6 = vpop.f32.mrb[13].mxu0  ;;  %v582_v11 = vmul.f32 0.17677669, %v430_v4  ;;  %3163 = vmatprep.subr.bf16.mxu1 %v4246_v9  ;;  %v545_v20 = vpop.f32.mrb[9].mxu1 }
 0x17d   : > { %v434_v8 = vpop.f32.mrb[14].mxu0  ;;  %v3120_v22 = vpop.f32.mrb[10].mxu1 }
 0x17e   : > { %v583_v12 = vmul.f32 0.17677669, %v434_v8  ;;  %v436_v13 = vpop.f32.mrb[15].mxu0  ;;  %v4262_v24 = vpack.c.bf16 %v3120_v22, %v3119_v18  ;;  %v548_v25 = vpop.f32.mrb[11].mxu1 }
 0x17f   : > { %v4251_v15 = vpack.c.bf16 %v436_v13, %v432_v6  ;;  %3164 = vmatpush3.bf16.msra.mxu1 %v4246_v9  ;;  %v4265_v29 = vpack.c.bf16 %v548_v25, %v545_v20 }
 0x180   : > { %v4253_v16 = vpack.c.bf16 %v583_v12, %v582_v11  ;;  %5720 = vst [vmem:[#allocation15_spill] sm:$0xff] %v4262_v24  ;;  %v616_v12 = vlaneseq }
 0x181   : > { %5719 = vst [vmem:[#allocation14_spill] sm:$0xff] %v4251_v15  ;;  %3432 = vmatprep.subr.msk.bf16.mxu0 %vm651_vm0, %v4251_v15  ;;  %v686_v17 = vsel %vm651_vm0, %v4251_v15, 0  ;;  %5721 = vst [vmem:[#allocation16_spill] sm:$0xff] %v4265_v29  ;;  %3165 = vmatprep.subr.bf16.mxu1 %v4265_v29 }
 0x182   : > { %3132 = vmatpush3.bf16.xpose.msra.mxu0 %v686_v17  ;;  %v4329_v13 = vshrl.u32 %v616_v12, 7  ;;  %v4331_v17 = vand.u32 127, %v616_v12 }
 0x183   : > { %v440_v19 = vpop.f32.mrb[16].mxu0  ;;  %3166 = vmatpush3.bf16.msra.mxu1 %v4265_v29  ;;  %v3123_v33 = vpop.f32.mrb[12].mxu1 }
 0x184   : > { %v442_v21 = vpop.f32.mrb[17].mxu0  ;;  %v584_v26 = vmul.f32 0.17677669, %v440_v19  ;;  %3167 = vmatprep.subr.bf16.mxu1 %v4262_v24  ;;  %v561_v35 = vpop.f32.mrb[13].mxu1  ;;  %v4334_v18 = vadd.s32 120, %v4329_v13  ;;  %v4337_v19 = vadd.s32 104, %v4329_v13  ;;  %vm635_vm4 = vcmp.le.s32.totalorder %v4331_v17, %v4329_v13 }
 0x185   : > { %v444_v23 = vpop.f32.mrb[18].mxu0  ;;  %v3124_v37 = vpop.f32.mrb[14].mxu1  ;;  %v4344_v20 = vadd.s32 16, %v4329_v13  ;;  %v4354_v22 = vadd.s32 8, %v4329_v13 }
 0x186   : > { %v585_v27 = vmul.f32 0.17677669, %v444_v23  ;;  %v446_v28 = vpop.f32.mrb[19].mxu0  ;;  %v4278_v39 = vpack.c.bf16 %v3124_v37, %v3123_v33  ;;  %v564_v0 = vpop.f32.mrb[15].mxu1  ;;  %5726 = vst [vmem:[#allocation21_spill] sm:$0xff] %v4334_v18  ;;  %5727 = vst [vmem:[#allocation22_spill] sm:$0xff] %v4337_v19  ;;  %vm650_vm1 = vcmp.le.s32.totalorder %v4331_v17, %v4334_v18  ;;  %vm648_vm2 = vcmp.le.s32.totalorder %v4331_v17, %v4337_v19 }
 0x187   : > { %v4267_v30 = vpack.c.bf16 %v446_v28, %v442_v21  ;;  %3168 = vmatpush3.bf16.msra.mxu1 %v4262_v24  ;;  %v4281_v45 = vpack.c.bf16 %v564_v0, %v561_v35  ;;  %vm637_vm3 = vcmp.le.s32.totalorder %v4331_v17, %v4344_v20  ;;  %v4349_v21 = vadd.s32 24, %v4329_v13 }
 0x188   : > { %v4269_v31 = vpack.c.bf16 %v585_v27, %v584_v26  ;;  %5723 = vst [vmem:[#allocation18_spill] sm:$0xff] %v4278_v39  ;;  %vm636_vm6 = vcmp.le.s32.totalorder %v4331_v17, %v4354_v22  ;;  %v4393_v37 = vadd.s32 32, %v4329_v13  ;;  %v4398_v0 = vadd.s32 40, %v4329_v13 }
 0x189   : > { %5722 = vst [vmem:[#allocation17_spill] sm:$0xff] %v4267_v30  ;;  %3433 = vmatprep.subr.msk.bf16.mxu0 %vm651_vm0, %v4267_v30  ;;  %v689_v32 = vsel %vm651_vm0, %v4267_v30, 0  ;;  %5724 = vst [vmem:[#allocation19_spill] sm:$0xff] %v4281_v45  ;;  %3169 = vmatprep.subr.bf16.mxu1 %v4281_v45  ;;  %vm638_vm5 = vcmp.le.s32.totalorder %v4331_v17, %v4349_v21 }
 0x18a   : > { %3134 = vmatpush3.bf16.xpose.msra.mxu0 %v689_v32  ;;  %v4370_v32 = vadd.s32 48, %v4329_v13  ;;  %5728 = vst [vmem:[#allocation23_spill] sm:$0xff] %v4393_v37  ;;  %5729 = vst [vmem:[#allocation24_spill] sm:$0xff] %v4398_v0  ;;  %vm639_vm9 = vcmp.le.s32.totalorder %v4331_v17, %v4393_v37  ;;  %vm640_vm10 = vcmp.le.s32.totalorder %v4331_v17, %v4398_v0 }
 0x18b   : > { %v450_v34 = vpop.f32.mrb[20].mxu0  ;;  %3170 = vmatpush3.bf16.msra.mxu1 %v4281_v45 }
 0x18c   : > { %v452_v36 = vpop.f32.mrb[21].mxu0  ;;  %v586_v42 = vmul.f32 0.17677669, %v450_v34  ;;  %3171 = vmatprep.subr.bf16.mxu1 %v4278_v39  ;;  %v4376_v34 = vadd.s32 56, %v4329_v13  ;;  %vm641_vm7 = vcmp.le.s32.totalorder %v4331_v17, %v4370_v32 }
 0x18d   : > { %v454_v38 = vpop.f32.mrb[22].mxu0 }
 0x18e   : > { %v587_v43 = vmul.f32 0.17677669, %v454_v38  ;;  %v456_v44 = vpop.f32.mrb[23].mxu0  ;;  %vm642_vm8 = vcmp.le.s32.totalorder %v4331_v17, %v4376_v34 }
 0x18f   : > { %v4283_v46 = vpack.c.bf16 %v456_v44, %v452_v36  ;;  %3172 = vmatpush3.bf16.msra.mxu1 %v4278_v39 }
 0x190   : > { %v4285_v47 = vpack.c.bf16 %v587_v43, %v586_v42 }
 0x191   : > { %5725 = vst [vmem:[#allocation20_spill] sm:$0xff] %v4283_v46  ;;  %3434 = vmatprep.subr.msk.bf16.mxu0 %vm651_vm0, %v4283_v46  ;;  %v692_v50 = vsel %vm651_vm0, %v4283_v46, 0 }
 0x192   : > { %3136 = vmatpush3.bf16.xpose.msra.mxu0 %v692_v50  ;;  %v4406_v50 = vadd.s32 80, %v4329_v13 }
 0x193   : > { %v460_v51 = vpop.f32.mrb[24].mxu0 }
 0x194   : > { %v462_v52 = vpop.f32.mrb[25].mxu0  ;;  %v588_v54 = vmul.f32 0.17677669, %v460_v51  ;;  %5730 = vst [vmem:[#allocation25_spill] sm:$0xff] %v4406_v50  ;;  %vm645_vm11 = vcmp.le.s32.totalorder %v4331_v17, %v4406_v50 }
 0x195   : > { %v464_v53 = vpop.f32.mrb[26].mxu0 }
 0x196   : > { %v589_v55 = vmul.f32 0.17677669, %v464_v53  ;;  %v466_v56 = vpop.f32.mrb[27].mxu0  ;;  %v4420_v53 = vadd.s32 88, %v4329_v13 }
 0x197   : > { %v4295_v58 = vpack.c.bf16 %v466_v56, %v462_v52  ;;  %v4436_v56 = vadd.s32 64, %v4329_v13 }
 0x198   : > { %v4297_v59 = vpack.c.bf16 %v589_v55, %v588_v54  ;;  %5731 = vst [vmem:[#allocation26_spill] sm:$0xff] %v4420_v53  ;;  %vm5671_vm12 = vcmp.le.s32.totalorder %v4331_v17, %v4420_v53 }
 0x199   : > { %3435 = vmatprep.subr.msk.bf16.mxu0 %vm651_vm0, %v4295_v58  ;;  %v695_v60 = vsel %vm651_vm0, %v4295_v58, 0  ;;  %5732 = vst [vmem:[#allocation27_spill] sm:$0xff] %v4436_v56  ;;  %vm5640_vm13 = vcmp.le.s32.totalorder %v4331_v17, %v4436_v56 }
 0x19a   : > { %3138 = vmatpush3.bf16.xpose.msra.mxu0 %v695_v60 }
 0x19b   : > { %v470_v61 = vpop.f32.mrb[28].mxu0 }
 0x19c   : > { %v472_v2 = vpop.f32.mrb[29].mxu0  ;;  %v590_v4 = vmul.f32 0.17677669, %v470_v61  ;;  %v4442_v61 = vadd.s32 72, %v4329_v13 }
 0x19d   : > { %v474_v3 = vpop.f32.mrb[30].mxu0 }
 0x19e   : > { %v591_v5 = vmul.f32 0.17677669, %v474_v3  ;;  %v476_v6 = vpop.f32.mrb[31].mxu0  ;;  %5733 = vst [vmem:[#allocation28_spill] sm:$0xff] %v4442_v61  ;;  %vm644_vm14 = vcmp.le.s32.totalorder %v4331_v17, %v4442_v61 }
 0x19f   : > { %v4303_v7 = vpack.c.bf16 %v476_v6, %v472_v2 }
 0x1a0   : > { %v4305_v8 = vpack.c.bf16 %v591_v5, %v590_v4  ;;  %v4450_v5 = vadd.s32 112, %v4329_v13 }
 0x1a1   : > { %3436 = vmatprep.subr.msk.bf16.mxu0 %vm651_vm0, %v4303_v7  ;;  %v698_v10 = vsel %vm651_vm0, %v4303_v7, 0 }
 0x1a2   : > { %3140 = vmatpush3.bf16.xpose.msra.mxu0 %v698_v10  ;;  %5734 = vst [vmem:[#allocation29_spill] sm:$0xff] %v4450_v5  ;;  %vm649_vm15 = vcmp.le.s32.totalorder %v4331_v17, %v4450_v5 }
 0x1a9   : > { %3142 = vmatmul.mubr.msk.bf16.vlgmr.msra.gmra.mrb[32].mxu0 %vm651_vm0, %v4223_v49 }
 0x1aa   : > { %3145 = vmatprep.mubr.msk.bf16.mxu0 %vm651_vm0, %v4237_v1 }
 0x1b1   : > { %3146 = vmatmul.mubr.msk.bf16.gmra.mrb[36].mxu0 %vm651_vm0, %v4253_v16 }
 0x1b2   : > { %3149 = vmatprep.mubr.msk.bf16.mxu0 %vm651_vm0, %v4269_v31 }
 0x1b9   : > { %3150 = vmatmul.mubr.msk.bf16.gmra.mrb[40].mxu0 %vm651_vm0, %v4285_v47 }
 0x1ba   : > { %3153 = vmatprep.mubr.msk.bf16.mxu0 %vm651_vm0, %v4297_v59 }
 0x1c1   : > { %3154 = vmatmul.mubr.msk.bf16.gmra.mrb[44].mxu0 %vm651_vm0, %v4305_v8 }
 0x1db   : > { %v4325_v11 = vpop.permute.xlu0 %1102 }
 0x1dc   : > { %3437 = vmatprep.subr.msk.bf16.mxu1 %vm651_vm0, %v4325_v11 }
 0x27c   : > { %v3143_v23 = vpop.f32.mrb[32].mxu0 }
 0x27d   : > { %v734_v25 = vpop.f32.mrb[33].mxu0  ;;  %v4359_v26 = vsel %vm637_vm3, %v3143_v23, -inf }
 0x27e   : > { %817 = vmax.xlane.f32.xlu1 %v4359_v26  ;;  %v3144_v27 = vpop.f32.mrb[34].mxu0  ;;  %v4365_v28 = vsel %vm635_vm4, %v734_v25, -inf  ;;  %v4477_v25 = vadd.s32 96, %v4329_v13 }
 0x27f   : > { %813 = vmax.xlane.f32.xlu0 %v4365_v28  ;;  %v737_v33 = vpop.f32.mrb[35].mxu0  ;;  %v4381_v35 = vsel %vm638_vm5, %v3144_v27, -inf }
 0x280   : > { %v4387_v36 = vsel %vm636_vm6, %v737_v33, -inf  ;;  %5735 = vst [vmem:[#allocation30_spill] sm:$0xff] %v4477_v25 }
 0x282   : > { %819 = vmax.xlane.f32.xlu1 %v4381_v35 }
 0x283   : > { %815 = vmax.xlane.f32.xlu0 %v4387_v36 }
 0x284   : > { %v3147_v38 = vpop.f32.mrb[36].mxu0 }
 0x285   : > { %v750_v42 = vpop.f32.mrb[37].mxu0  ;;  %v4403_v43 = vsel %vm641_vm7, %v3147_v38, -inf }
 0x286   : > { %v3148_v44 = vpop.f32.mrb[38].mxu0  ;;  %v4425_v54 = vsel %vm639_vm9, %v750_v42, -inf }
 0x287   : > { %825 = vmax.xlane.f32.xlu0 %v4403_v43  ;;  %v753_v51 = vpop.f32.mrb[39].mxu0  ;;  %v4412_v52 = vsel %vm642_vm8, %v3148_v44, -inf }
 0x288   : > { %827 = vmax.xlane.f32.xlu1 %v4412_v52  ;;  %v4433_v55 = vsel %vm640_vm10, %v753_v51, -inf }
 0x28b   : > { %821 = vmax.xlane.f32.xlu0 %v4425_v54 }
 0x28c   : > { %823 = vmax.xlane.f32.xlu1 %v4433_v55  ;;  %v3151_v60 = vpop.f32.mrb[40].mxu0 }
 0x28d   : > { %v766_v2 = vpop.f32.mrb[41].mxu0  ;;  %v4447_v3 = vsel %vm645_vm11, %v3151_v60, -inf }
 0x28e   : > { %v3152_v4 = vpop.f32.mrb[42].mxu0  ;;  %v4466_v12 = vsel %vm5640_vm13, %v766_v2, -inf  ;;  %vm647_vm13 = vcmp.le.s32.totalorder %v4331_v17, %v4477_v25 }
 0x28f   : > { %833 = vmax.xlane.f32.xlu0 %v4447_v3  ;;  %v769_v6 = vpop.f32.mrb[43].mxu0  ;;  %v4456_v10 = vsel %vm5671_vm12, %v3152_v4, -inf  ;;  %v4510_v4 = vpop.permute.xlu1 %1104 }
 0x290   : > { %835 = vmax.xlane.f32.xlu1 %v4456_v10  ;;  %v4474_v23 = vsel %vm644_vm14, %v769_v6, -inf }
 0x293   : > { %829 = vmax.xlane.f32.xlu0 %v4466_v12 }
 0x294   : > { %831 = vmax.xlane.f32.xlu1 %v4474_v23  ;;  %v3155_v27 = vpop.f32.mrb[44].mxu0 }
 0x295   : > { %v782_v33 = vpop.f32.mrb[45].mxu0  ;;  %v4483_v38 = vsel %vm649_vm15, %v3155_v27, -inf }
 0x296   : > { %v3156_v42 = vpop.f32.mrb[46].mxu0  ;;  %v4491_v51 = vsel %vm647_vm13, %v782_v33, -inf }
 0x297   : > { %841 = vmax.xlane.f32.xlu0 %v4483_v38  ;;  %v785_v44 = vpop.f32.mrb[47].mxu0  ;;  %v4501_v60 = vsel %vm650_vm1, %v3156_v42, -inf }
 0x298   : > { %v4507_v2 = vsel %vm648_vm2, %v785_v44, -inf }
 0x29b   : > { %837 = vmax.xlane.f32.xlu0 %v4491_v51 }
 0x2a5   : > { %1108 = vrot.lane.b32.xlu1 %v4251_v15, %s3960_s21 }
 0x2b1   : > { %1106 = vrot.lane.b32.xlu0 %v4235_v63, %s3960_s21 }
 0x2c9   : > { %843 = vmax.xlane.f32.xlu1 %v4501_v60 }
 0x2cd   : > { %839 = vmax.xlane.f32.xlu1 %v4507_v2 }
 0x30b   : > { %v818_v6 = vpop.xlane.xlu1 %817 }
 0x30c   : > { %v847_v27 = vsub.f32 %v4359_v26, %v818_v6  ;;  %v814_v33 = vpop.xlane.xlu0 %813 }
 0x30d   : > { %v845_v63 = vsub.f32 %v4365_v28, %v814_v33 }
 0x30e   : > { %v865_v18 = vmul.f32 1.442695, %v847_v27 }
 0x30f   : > { %v861_v42 = vmul.f32 1.442695, %v845_v63  ;;  %v820_v15 = vpop.xlane.xlu1 %819 }
 0x310   : > { %3538 = vpow2.f32 %v865_v18  ;;  %v848_v25 = vsub.f32 %v4381_v35, %v820_v15  ;;  %v816_v5 = vpop.xlane.xlu0 %815 }
 0x311   : > { %v846_v44 = vsub.f32 %v4387_v36, %v816_v5  ;;  %3540 = vpow2.f32 %v861_v42 }
 0x312   : > { %v867_v19 = vmul.f32 1.442695, %v848_v25 }
 0x313   : > { %v863_v56 = vmul.f32 1.442695, %v846_v44 }
 0x314   : > { %3542 = vpow2.f32 %v867_v19  ;;  %v826_v15 = vpop.xlane.xlu0 %825 }
 0x315   : > { %3544 = vpow2.f32 %v863_v56  ;;  %v828_v35 = vpop.xlane.xlu1 %827  ;;  %v851_v5 = vsub.f32 %v4403_v43, %v826_v15 }
 0x316   : > { %v852_v44 = vsub.f32 %v4412_v52, %v828_v35 }
 0x317   : > { %v873_v27 = vmul.f32 1.442695, %v851_v5 }
 0x318   : > { %v822_v18 = vpop.xlane.xlu0 %821  ;;  %v875_v37 = vmul.f32 1.442695, %v852_v44 }
 0x319   : > { %v824_v56 = vpop.xlane.xlu1 %823  ;;  %v849_v25 = vsub.f32 %v4425_v54, %v822_v18  ;;  %3546 = vpow2.f32 %v873_v27 }
 0x31a   : > { %v4516_v61 = vpop.eup %3538  ;;  %v850_v33 = vsub.f32 %v4433_v55, %v824_v56 }
 0x31b   : > { %897 = vadd.xlane.f32.xlu0 %v4516_v61  ;;  %v4519_v26 = vpop.eup %3540  ;;  %v869_v50 = vmul.f32 1.442695, %v849_v25 }
 0x31c   : > { %v834_v19 = vpop.xlane.xlu0 %833 }
 0x31d   : > { %v836_v42 = vpop.xlane.xlu1 %835  ;;  %3548 = vpow2.f32 %v869_v50  ;;  %v855_v0 = vsub.f32 %v4447_v3, %v834_v19 }
 0x31e   : > { %v4521_v28 = vpop.eup %3542  ;;  %v856_v50 = vsub.f32 %v4456_v10, %v836_v42 }
 0x31f   : > { %893 = vadd.xlane.f32.xlu0 %v4519_v26  ;;  %899 = vadd.xlane.f32.xlu1 %v4521_v28  ;;  %v4525_v63 = vpop.eup %3544  ;;  %v881_v55 = vmul.f32 1.442695, %v855_v0 }
 0x320   : > { %v830_v36 = vpop.xlane.xlu0 %829 }
 0x321   : > { %v832_v43 = vpop.xlane.xlu1 %831  ;;  %v853_v18 = vsub.f32 %v4466_v12, %v830_v36 }
 0x322   : > { %v854_v12 = vsub.f32 %v4474_v23, %v832_v43 }
 0x323   : > { %895 = vadd.xlane.f32.xlu1 %v4525_v63  ;;  %v4542_v56 = vpop.eup %3546  ;;  %v877_v3 = vmul.f32 1.442695, %v853_v18 }
 0x324   : > { %v842_v6 = vpop.xlane.xlu0 %841 }
 0x325   : > { %v4540_v35 = vpop.permute.xlu1 %1108 }
 0x328   : > { %v838_v53 = vpop.xlane.xlu0 %837 }
 0x329   : > { %v857_v15 = vsub.f32 %v4491_v51, %v838_v53  ;;  %v883_v53 = vmul.f32 1.442695, %v856_v50 }
 0x32b   : > { %v885_v52 = vmul.f32 1.442695, %v857_v15 }
 0x32c   : > { %v1107_v44 = vpop.permute.xlu0 %1106 }
 0x334   : > { %1112 = vrot.lane.b32.xlu1 %v4283_v46, %s3960_s21  ;;  %v871_v46 = vmul.f32 1.442695, %v850_v33 }
 0x335   : > { %1110 = vrot.lane.b32.xlu0 %v4267_v30, %s3960_s21  ;;  %v859_v30 = vsub.f32 %v4483_v38, %v842_v6 }
 0x336   : > { %3550 = vpow2.f32 %v871_v46 }
 0x337   : > { %v889_v54 = vmul.f32 1.442695, %v859_v30  ;;  %3552 = vpow2.f32 %v875_v37  ;;  %v4546_v30 = vpop.eup %3548 }
 0x339   : > { %3554 = vpow2.f32 %v889_v54 }
 0x33a   : > { %3556 = vpow2.f32 %v881_v55 }
 0x33b   : > { %3558 = vpow2.f32 %v885_v52 }
 0x33c   : > { %3560 = vpow2.f32 %v877_v3 }
 0x340   : > { %v4548_v37 = vpop.eup %3550 }
 0x341   : > { %v4554_v51 = vpop.eup %3552 }
 0x343   : > { %v4556_v19 = vpop.eup %3554 }
 0x344   : > { %v4561_v5 = vpop.eup %3556 }
 0x345   : > { %v4563_v25 = vpop.eup %3558 }
 0x346   : > { %v4567_v6 = vpop.eup %3560 }
 0x354   : > { %905 = vadd.xlane.f32.xlu0 %v4542_v56 }
 0x356   : > { %v844_v46 = vpop.xlane.xlu1 %843 }
 0x357   : > { %v860_v0 = vsub.f32 %v4501_v60, %v844_v46  ;;  %v879_v60 = vmul.f32 1.442695, %v854_v12 }
 0x358   : > { %903 = vadd.xlane.f32.xlu0 %v4548_v37  ;;  %901 = vadd.xlane.f32.xlu1 %v4546_v30 }
 0x359   : > { %v891_v38 = vmul.f32 1.442695, %v860_v0 }
 0x35a   : > { %v840_v10 = vpop.xlane.xlu1 %839 }
 0x35b   : > { %3562 = vpow2.f32 %v891_v38  ;;  %v858_v36 = vsub.f32 %v4507_v2, %v840_v10 }
 0x35c   : > { %921 = vadd.xlane.f32.xlu0 %v4556_v19  ;;  %907 = vadd.xlane.f32.xlu1 %v4554_v51  ;;  %3564 = vpow2.f32 %v883_v53 }
 0x35d   : > { %3566 = vpow2.f32 %v879_v60  ;;  %v887_v23 = vmul.f32 1.442695, %v858_v36  ;;  %v1143_v60 = vsel %vm651_vm0, %v4325_v11, 0 }
 0x35f   : > { %3568 = vpow2.f32 %v887_v23 }
 0x360   : > { %917 = vadd.xlane.f32.xlu0 %v4563_v25  ;;  %913 = vadd.xlane.f32.xlu1 %v4561_v5 }
 0x364   : > { %909 = vadd.xlane.f32.xlu1 %v4567_v6 }
 0x365   : > { %v4570_v27 = vpop.eup %3562 }
 0x366   : > { %923 = vadd.xlane.f32.xlu0 %v4570_v27  ;;  %v4573_v2 = vpop.eup %3564 }
 0x367   : > { %v4576_v33 = vpop.eup %3566 }
 0x368   : > { %915 = vadd.xlane.f32.xlu1 %v4573_v2 }
 0x369   : > { %v4579_v42 = vpop.eup %3568 }
 0x36c   : > { %911 = vadd.xlane.f32.xlu1 %v4576_v33 }
 0x370   : > { %919 = vadd.xlane.f32.xlu1 %v4579_v42 }
 0x37c   : > { %1114 = vrot.lane.b32.xlu0 %v4295_v58, %s3960_s21 }
 0x380   : > { %1078 = vrot.lane.b32.xlu0 %v4211_v41, %s3960_s21 }
 0x381   : > { %1116 = vrot.lane.b32.xlu1 %v4303_v7, %s3960_s21 }
 0x384   : > { %1082 = vrot.lane.b32.xlu0 %v4237_v1, %s3960_s21 }
 0x385   : > { %1080 = vrot.lane.b32.xlu1 %v4223_v49, %s3960_s21 }
 0x388   : > { %1086 = vrot.lane.b32.xlu0 %v4269_v31, %s3960_s21 }
 0x389   : > { %1084 = vrot.lane.b32.xlu1 %v4253_v16, %s3960_s21 }
 0x38c   : > { %1090 = vrot.lane.b32.xlu0 %v4297_v59, %s3960_s21 }
 0x38d   : > { %1088 = vrot.lane.b32.xlu1 %v4285_v47, %s3960_s21 }
 0x390   : > { %1439 = vrot.lane.b32.xlu0 %v4233_v62, %s3960_s21 }
 0x391   : > { %1092 = vrot.lane.b32.xlu1 %v4305_v8, %s3960_s21 }
 0x394   : > { %1443 = vrot.lane.b32.xlu0 %v4249_v14, %s3960_s21 }
 0x395   : > { %1441 = vrot.lane.b32.xlu1 %v4231_v57, %s3960_s21 }
 0x398   : > { %1447 = vrot.lane.b32.xlu0 %v4265_v29, %s3960_s21 }
 0x399   : > { %1445 = vrot.lane.b32.xlu1 %v4246_v9, %s3960_s21 }
 0x39c   : > { %1451 = vrot.lane.b32.xlu0 %v4281_v45, %s3960_s21 }
 0x39d   : > { %1449 = vrot.lane.b32.xlu1 %v4262_v24, %s3960_s21 }
 0x3a0   : > { %1584 = vrot.lane.b32.xlu0 %v4209_v40, %s3961_s23 }
 0x3a1   : > { %1453 = vrot.lane.b32.xlu1 %v4278_v39, %s3960_s21 }
 0x3a5   : > { %1586 = vrot.lane.b32.xlu1 %v4221_v48, %s3961_s23 }
 0x3a8   : > { %v898_v43 = vpop.xlane.xlu0 %897 }
 0x3ac   : > { %v894_v54 = vpop.xlane.xlu0 %893  ;;  %v900_v15 = vpop.xlane.xlu1 %899 }
 0x3ad   : > { %3570 = vrcp.f32 %v900_v15 }
 0x3ae   : > { %3572 = vrcp.f32 %v894_v54 }
 0x3af   : > { %3574 = vrcp.f32 %v898_v43 }
 0x3b0   : > { %v896_v55 = vpop.xlane.xlu1 %895  ;;  %v1111_v11 = vpop.permute.xlu0 %1110 }
 0x3b1   : > { %3576 = vrcp.f32 %v896_v55 }
 0x3b7   : > { %v3571_v18 = vpop.eup %3570 }
 0x3b8   : > { %v3573_v52 = vpop.eup %3572  ;;  %v944_v46 = vmul.f32 %v3571_v18, %v4521_v28  ;;  %v1146_v28 = vsel %vm651_vm0, %v4510_v4, 0 }
 0x3b9   : > { %v3575_v50 = vpop.eup %3574  ;;  %v941_v0 = vmul.f32 %v3573_v52, %v4519_v26  ;;  %v1149_v26 = vsel %vm651_vm0, %v1107_v44, 0 }
 0x3ba   : > { %v943_v12 = vmul.f32 %v3575_v50, %v4516_v61  ;;  %v1152_v61 = vsel %vm651_vm0, %v4540_v35, 0 }
 0x3bb   : > { %v3577_v3 = vpop.eup %3576 }
 0x3bc   : > { %v942_v53 = vmul.f32 %v3577_v3, %v4525_v63  ;;  %v958_v10 = vpack.c.bf16 %v944_v46, %v943_v12  ;;  %v1113_v63 = vpop.permute.xlu1 %1112 }
 0x3bd   : > { %v1158_v54 = vsel %vm651_vm0, %v1113_v63, 0 }
 0x3be   : > { %v957_v38 = vpack.c.bf16 %v942_v53, %v941_v0 }
 0x3c0   : > { %3173 = vmatprep.mubr.bf16.mxu1 %v957_v38 }
 0x3c1   : > { %3174 = vmatmul.mubr.bf16.vlgmr.msra.gmra.mrb[16].mxu1 %v958_v10 }
 0x3c2   : > { %3190 = vmatpush3.bf16.xpose.msra.mxu1 %v1143_v60 }
 0x3c3   : > { %3438 = vmatprep.subr.msk.bf16.mxu1 %vm651_vm0, %v4510_v4  ;;  %v1155_v4 = vsel %vm651_vm0, %v1111_v11, 0 }
 0x3ca   : > { %3192 = vmatpush3.bf16.xpose.msra.mxu1 %v1146_v28 }
 0x3cb   : > { %3439 = vmatprep.subr.msk.bf16.mxu1 %vm651_vm0, %v1107_v44 }
 0x3d2   : > { %3194 = vmatpush3.bf16.xpose.msra.mxu1 %v1149_v26 }
 0x3d3   : > { %3440 = vmatprep.subr.msk.bf16.mxu1 %vm651_vm0, %v4540_v35 }
 0x3da   : > { %3196 = vmatpush3.bf16.xpose.msra.mxu1 %v1152_v61 }
 0x3db   : > { %3441 = vmatprep.subr.msk.bf16.mxu1 %vm651_vm0, %v1111_v11 }
 0x3e1   : > { %v906_v36 = vpop.xlane.xlu0 %905 }
 0x3e2   : > { %3198 = vmatpush3.bf16.xpose.msra.mxu1 %v1155_v4 }
 0x3e3   : > { %3442 = vmatprep.subr.msk.bf16.mxu1 %vm651_vm0, %v1113_v63 }
 0x3e5   : > { %v904_v23 = vpop.xlane.xlu0 %903  ;;  %v902_v44 = vpop.xlane.xlu1 %901 }
 0x3e6   : > { %3578 = vrcp.f32 %v904_v23 }
 0x3e7   : > { %3580 = vrcp.f32 %v902_v44 }
 0x3e8   : > { %3582 = vrcp.f32 %v906_v36 }
 0x3e9   : > { %v922_v43 = vpop.xlane.xlu0 %921  ;;  %v908_v35 = vpop.xlane.xlu1 %907 }
 0x3ea   : > { %3200 = vmatpush3.bf16.xpose.msra.mxu1 %v1158_v54  ;;  %3584 = vrcp.f32 %v908_v35 }
 0x3ed   : > { %v914_v15 = vpop.xlane.xlu1 %913  ;;  %v918_v55 = vpop.xlane.xlu0 %917 }
 0x3f0   : > { %v3579_v18 = vpop.eup %3578 }
 0x3f1   : > { %v3581_v52 = vpop.eup %3580  ;;  %v910_v50 = vpop.xlane.xlu1 %909  ;;  %v946_v3 = vmul.f32 %v3579_v18, %v4548_v37 }
 0x3f2   : > { %v945_v46 = vmul.f32 %v3581_v52, %v4546_v30  ;;  %v3583_v0 = vpop.eup %3582 }
 0x3f3   : > { %v924_v53 = vpop.xlane.xlu0 %923  ;;  %v947_v60 = vmul.f32 %v3583_v0, %v4542_v56 }
 0x3f4   : > { %v959_v12 = vpack.c.bf16 %v946_v3, %v945_v46  ;;  %v3585_v38 = vpop.eup %3584 }
 0x3f5   : > { %v916_v10 = vpop.xlane.xlu1 %915  ;;  %v948_v28 = vmul.f32 %v3585_v38, %v4554_v51 }
 0x3f6   : > { %3177 = vmatprep.mubr.bf16.mxu1 %v959_v12  ;;  %3586 = vrcp.f32 %v916_v10 }
 0x3f7   : > { %v1115_v26 = vpop.permute.xlu0 %1114  ;;  %3588 = vrcp.f32 %v910_v50  ;;  %v960_v61 = vpack.c.bf16 %v948_v28, %v947_v60 }
 0x3f8   : > { %3443 = vmatprep.subr.msk.bf16.mxu1 %vm651_vm0, %v1115_v26  ;;  %v1161_v37 = vsel %vm651_vm0, %v1115_v26, 0  ;;  %3590 = vrcp.f32 %v914_v15 }
 0x3f9   : > { %3202 = vmatpush3.bf16.xpose.msra.mxu1 %v1161_v37  ;;  %v912_v30 = vpop.xlane.xlu1 %911 }
 0x3fa   : > { %3178 = vmatmul.mubr.bf16.gmra.mrb[20].mxu1 %v960_v61  ;;  %3592 = vrcp.f32 %v912_v30 }
 0x3fb   : > { %v1079_v11 = vpop.permute.xlu0 %1078  ;;  %3594 = vrcp.f32 %v918_v55 }
 0x3fd   : > { %v920_v63 = vpop.xlane.xlu1 %919 }
 0x3fe   : > { %3596 = vrcp.f32 %v920_v63 }
 0x3ff   : > { %3598 = vrcp.f32 %v924_v53  ;;  %v1083_v56 = vpop.permute.xlu0 %1082 }
 0x400   : > { %v3587_v51 = vpop.eup %3586  ;;  %3600 = vrcp.f32 %v922_v43 }
 0x401   : > { %v1117_v36 = vpop.permute.xlu1 %1116  ;;  %v3589_v4 = vpop.eup %3588  ;;  %v952_v15 = vmul.f32 %v3587_v51, %v4573_v2 }
 0x402   : > { %3444 = vmatprep.subr.msk.bf16.mxu1 %vm651_vm0, %v1117_v36  ;;  %v1164_v23 = vsel %vm651_vm0, %v1117_v36, 0  ;;  %v3591_v44 = vpop.eup %3590  ;;  %v949_v55 = vmul.f32 %v3589_v4, %v4567_v6 }
 0x403   : > { %v1087_v54 = vpop.permute.xlu0 %1086  ;;  %3204 = vmatpush3.bf16.xpose.msra.mxu1 %v1164_v23  ;;  %v951_v43 = vmul.f32 %v3591_v44, %v4561_v5 }
 0x404   : > { %v3593_v35 = vpop.eup %3592 }
 0x405   : > { %v1081_v18 = vpop.permute.xlu1 %1080  ;;  %v950_v52 = vmul.f32 %v3593_v35, %v4576_v33  ;;  %v3595_v50 = vpop.eup %3594  ;;  %v962_v53 = vpack.c.bf16 %v952_v15, %v951_v43 }
 0x406   : > { %v953_v10 = vmul.f32 %v3595_v50, %v4563_v25 }
 0x407   : > { %v1091_v3 = vpop.permute.xlu0 %1090  ;;  %v961_v46 = vpack.c.bf16 %v950_v52, %v949_v55 }
 0x408   : > { %v3597_v0 = vpop.eup %3596 }
 0x409   : > { %v3599_v12 = vpop.eup %3598  ;;  %3181 = vmatprep.mubr.bf16.mxu1 %v961_v46  ;;  %v1085_v38 = vpop.permute.xlu1 %1084  ;;  %v954_v60 = vmul.f32 %v3597_v0, %v4579_v42 }
 0x40a   : > { %3182 = vmatmul.mubr.bf16.gmra.mrb[24].mxu1 %v962_v53  ;;  %v3601_v2 = vpop.eup %3600  ;;  %v956_v33 = vmul.f32 %v3599_v12, %v4570_v27 }
 0x40b   : > { %v1440_v28 = vpop.permute.xlu0 %1439  ;;  %v963_v6 = vpack.c.bf16 %v954_v60, %v953_v10  ;;  %v955_v26 = vmul.f32 %v3601_v2, %v4556_v19 }
 0x40c   : > { %3221 = vmatprep.subr.bf16.mxu0 %v1440_v28 }
 0x40d   : > { %3185 = vmatprep.mubr.bf16.mxu1 %v963_v6  ;;  %v1089_v5 = vpop.permute.xlu1 %1088  ;;  %3222 = vmatpush3.bf16.msra.mxu0 %v1440_v28  ;;  %v964_v61 = vpack.c.bf16 %v956_v33, %v955_v26 }
 0x40f   : > { %v1444_v42 = vpop.permute.xlu0 %1443 }
 0x411   : > { %v1093_v37 = vpop.permute.xlu1 %1092 }
 0x412   : > { %3186 = vmatmul.mubr.bf16.gmra.mrb[28].mxu1 %v964_v61 }
 0x413   : > { %3205 = vmatprep.mubr.msk.bf16.mxu1 %vm651_vm0, %v1079_v11  ;;  %v1448_v27 = vpop.permute.xlu0 %1447 }
 0x415   : > { %v1442_v25 = vpop.permute.xlu1 %1441 }
 0x416   : > { %3223 = vmatprep.subr.bf16.mxu0 %v1442_v25 }
 0x417   : > { %3224 = vmatpush3.bf16.msra.mxu0 %v1442_v25  ;;  %v1452_v11 = vpop.permute.xlu0 %1451 }
 0x418   : > { %3225 = vmatprep.subr.bf16.mxu0 %v1444_v42 }
 0x419   : > { %v1446_v30 = vpop.permute.xlu1 %1445 }
 0x41a   : > { %3206 = vmatmul.mubr.msk.bf16.vlgmr.msra.gmra.mrb[32].mxu1 %vm651_vm0, %v1081_v18 }
 0x41b   : > { %3209 = vmatprep.mubr.msk.bf16.mxu1 %vm651_vm0, %v1083_v56  ;;  %3226 = vmatpush3.bf16.msra.mxu0 %v1444_v42  ;;  %v4665_v56 = vpop.permute.xlu0 %1584 }
 0x41c   : > { %3227 = vmatprep.subr.bf16.mxu0 %v1446_v30 }
 0x41d   : > { %v1450_v19 = vpop.permute.xlu1 %1449 }
 0x41f   : > { %3228 = vmatpush3.bf16.msra.mxu0 %v1446_v30 }
 0x420   : > { %3229 = vmatprep.subr.bf16.mxu0 %v1448_v27 }
 0x421   : > { %v1454_v63 = vpop.permute.xlu1 %1453 }
 0x422   : > { %3210 = vmatmul.mubr.msk.bf16.gmra.mrb[36].mxu1 %vm651_vm0, %v1085_v38 }
 0x423   : > { %3213 = vmatprep.mubr.msk.bf16.mxu1 %vm651_vm0, %v1087_v54  ;;  %3230 = vmatpush3.bf16.msra.mxu0 %v1448_v27 }
 0x424   : > { %3231 = vmatprep.subr.bf16.mxu0 %v1450_v19 }
 0x427   : > { %3232 = vmatpush3.bf16.msra.mxu0 %v1450_v19 }
 0x428   : > { %3233 = vmatprep.subr.bf16.mxu0 %v1452_v11 }
 0x42a   : > { %3214 = vmatmul.mubr.msk.bf16.gmra.mrb[40].mxu1 %vm651_vm0, %v1089_v5 }
 0x42b   : > { %3217 = vmatprep.mubr.msk.bf16.mxu1 %vm651_vm0, %v1091_v3  ;;  %3234 = vmatpush3.bf16.msra.mxu0 %v1452_v11 }
 0x42c   : > { %3235 = vmatprep.subr.bf16.mxu0 %v1454_v63 }
 0x42f   : > { %3236 = vmatpush3.bf16.msra.mxu0 %v1454_v63 }
 0x430   : > { %3445 = vmatprep.subr.msk.bf16.mxu0 %vm651_vm0, %v4665_v56 }
 0x432   : > { %3218 = vmatmul.mubr.msk.bf16.gmra.mrb[44].mxu1 %vm651_vm0, %v1093_v37 }
 0x494   : > { %v4670_v51 = vpop.f32.mrb[16].mxu1 }
 0x495   : > { %5736 = vst [vmem:[#allocation31_spill] sm:$0xff] %v4670_v51  ;;  %v4672_v36 = vpop.f32.mrb[17].mxu1 }
 0x496   : > { %5737 = vst [vmem:[#allocation32_spill] sm:$0xff] %v4672_v36  ;;  %v4674_v4 = vpop.f32.mrb[18].mxu1 }
 0x497   : > { %5738 = vst [vmem:[#allocation33_spill] sm:$0xff] %v4674_v4  ;;  %v4678_v44 = vpop.f32.mrb[19].mxu1 }
 0x498   : > { %5739 = vst [vmem:[#allocation34_spill] sm:$0xff] %v4678_v44 }
 0x4cd   : > { %v4682_v35 = vpop.f32.mrb[20].mxu1 }
 0x4ce   : > { %5740 = vst [vmem:[#allocation35_spill] sm:$0xff] %v4682_v35  ;;  %v4684_v15 = vpop.f32.mrb[21].mxu1 }
 0x4cf   : > { %5741 = vst [vmem:[#allocation36_spill] sm:$0xff] %v4684_v15  ;;  %v4686_v18 = vpop.f32.mrb[22].mxu1  ;;  %v4806_v15 = vpop.permute.xlu1 %1586 }
 0x4d0   : > { %5742 = vst [vmem:[#allocation37_spill] sm:$0xff] %v4686_v18  ;;  %v4690_v52 = vpop.f32.mrb[23].mxu1 }
 0x4d1   : > { %5743 = vst [vmem:[#allocation38_spill] sm:$0xff] %v4690_v52 }
 0x4dd   : > { %v4694_v43 = vpop.f32.mrb[24].mxu1 }
 0x4de   : > { %5744 = vst [vmem:[#allocation39_spill] sm:$0xff] %v4694_v43  ;;  %v4696_v3 = vpop.f32.mrb[25].mxu1 }
 0x4df   : > { %5745 = vst [vmem:[#allocation40_spill] sm:$0xff] %v4696_v3  ;;  %v4698_v46 = vpop.f32.mrb[26].mxu1 }
 0x4e0   : > { %5746 = vst [vmem:[#allocation41_spill] sm:$0xff] %v4698_v46  ;;  %v4702_v53 = vpop.f32.mrb[27].mxu1 }
 0x4e1   : > { %5747 = vst [vmem:[#allocation42_spill] sm:$0xff] %v4702_v53  ;;  %v5762_v53 = vld [vmem:[#allocation12_spill] sm:$0xff] }
 0x4e5   : > { %v4706_v38 = vpop.f32.mrb[28].mxu1 }
 0x4e6   : > { %5748 = vst [vmem:[#allocation43_spill] sm:$0xff] %v4706_v38  ;;  %v4708_v10 = vpop.f32.mrb[29].mxu1 }
 0x4e7   : > { %5749 = vst [vmem:[#allocation44_spill] sm:$0xff] %v4708_v10  ;;  %v4710_v60 = vpop.f32.mrb[30].mxu1 }
 0x4e8   : > { %5750 = vst [vmem:[#allocation45_spill] sm:$0xff] %v4710_v60  ;;  %v4714_v28 = vpop.f32.mrb[31].mxu1 }
 0x4e9   : > { %5751 = vst [vmem:[#allocation46_spill] sm:$0xff] %v4714_v28 }
 0x4ed   : > { %v3207_v33 = vpop.f32.mrb[32].mxu1 }
 0x4ee   : > { %v1200_v5 = vpop.f32.mrb[33].mxu1  ;;  %v1265_v26 = vsel %vm637_vm3, %v3207_v33, -inf }
 0x4ef   : > { %1283 = vmax.xlane.f32.xlu0 %v1265_v26  ;;  %v3208_v61 = vpop.f32.mrb[34].mxu1  ;;  %v1263_v42 = vsel %vm635_vm4, %v1200_v5, -inf }
 0x4f0   : > { %v1203_v37 = vpop.f32.mrb[35].mxu1  ;;  %v1266_v19 = vsel %vm638_vm5, %v3208_v61, -inf }
 0x4f1   : > { %v1264_v25 = vsel %vm636_vm6, %v1203_v37, -inf }
 0x4f2   : > { %1281 = vmax.xlane.f32.xlu1 %v1264_v25 }
 0x4f3   : > { %1279 = vmax.xlane.f32.xlu0 %v1263_v42 }
 0x4f5   : > { %v3211_v30 = vpop.f32.mrb[36].mxu1 }
 0x4f6   : > { %v1216_v27 = vpop.f32.mrb[37].mxu1  ;;  %v4739_v5 = vsel %vm641_vm7, %v3211_v30, -inf }
 0x4f7   : > { %1285 = vmax.xlane.f32.xlu0 %v1266_v19  ;;  %v3212_v11 = vpop.f32.mrb[38].mxu1  ;;  %v4751_v0 = vsel %vm639_vm9, %v1216_v27, -inf }
 0x4f8   : > { %v1219_v63 = vpop.f32.mrb[39].mxu1  ;;  %v4733_v33 = vsel %vm642_vm8, %v3212_v11, -inf }
 0x4f9   : > { %1293 = vmax.xlane.f32.xlu1 %v4733_v33  ;;  %v4745_v61 = vsel %vm640_vm10, %v1219_v63, -inf }
 0x4fb   : > { %1291 = vmax.xlane.f32.xlu0 %v4739_v5 }
 0x4fd   : > { %1289 = vmax.xlane.f32.xlu1 %v4745_v61  ;;  %v3215_v2 = vpop.f32.mrb[40].mxu1 }
 0x4fe   : > { %v1232_v6 = vpop.f32.mrb[41].mxu1  ;;  %v4763_v23 = vsel %vm645_vm11, %v3215_v2, -inf }
 0x4ff   : > { %1287 = vmax.xlane.f32.xlu0 %v4751_v0  ;;  %v3216_v30 = vpop.f32.mrb[42].mxu1 }
 0x500   : > { %v1235_v12 = vpop.f32.mrb[43].mxu1  ;;  %v4757_v50 = vsel %vm5671_vm12, %v3216_v30, -inf  ;;  %v5757_v30 = vld [vmem:[#allocation27_spill] sm:$0xff] }
 0x501   : > { %1301 = vmax.xlane.f32.xlu1 %v4757_v50  ;;  %v4769_v54 = vsel %vm644_vm14, %v1235_v12, -inf  ;;  %vm5758_vm12 = vcmp.le.s32.totalorder %v4331_v17, %v5757_v30 }
 0x502   : > { %v4775_v10 = vsel %vm5758_vm12, %v1232_v6, -inf  ;;  %v5761_v6 = vld [vmem:[#allocation14_spill] sm:$0xff] }
 0x503   : > { %1299 = vmax.xlane.f32.xlu0 %v4763_v23 }
 0x505   : > { %1297 = vmax.xlane.f32.xlu1 %v4769_v54  ;;  %v3219_v38 = vpop.f32.mrb[44].mxu1 }
 0x506   : > { %v1248_v60 = vpop.f32.mrb[45].mxu1  ;;  %v4781_v46 = vsel %vm649_vm15, %v3219_v38, -inf }
 0x507   : > { %1295 = vmax.xlane.f32.xlu0 %v4775_v10  ;;  %v3220_v2 = vpop.f32.mrb[46].mxu1  ;;  %v4787_v3 = vsel %vm647_vm13, %v1248_v60, -inf }
 0x508   : > { %v1251_v28 = vpop.f32.mrb[47].mxu1  ;;  %v4797_v38 = vsel %vm650_vm1, %v3220_v2, -inf }
 0x509   : > { %v4803_v60 = vsel %vm648_vm2, %v1251_v28, -inf }
 0x50b   : > { %1307 = vmax.xlane.f32.xlu0 %v4781_v46 }
 0x50f   : > { %1303 = vmax.xlane.f32.xlu0 %v4787_v3 }
 0x516   : > { %1590 = vrot.lane.b32.xlu1 %v5761_v6, %s3961_s23 }
 0x525   : > { %1588 = vrot.lane.b32.xlu0 %v5762_v53, %s3961_s23 }
 0x53a   : > { %1309 = vmax.xlane.f32.xlu1 %v4797_v38 }
 0x53e   : > { %1305 = vmax.xlane.f32.xlu1 %v4803_v60 }
 0x57c   : > { %v1284_v52 = vpop.xlane.xlu0 %1283 }
 0x57d   : > { %v1313_v51 = vsub.f32 %v1265_v26, %v1284_v52 }
 0x57f   : > { %v1331_v4 = vmul.f32 1.442695, %v1313_v51  ;;  %v1282_v36 = vpop.xlane.xlu1 %1281 }
 0x580   : > { %v1312_v44 = vsub.f32 %v1264_v25, %v1282_v36  ;;  %v1280_v53 = vpop.xlane.xlu0 %1279 }
 0x581   : > { %3602 = vpow2.f32 %v1331_v4  ;;  %v1311_v2 = vsub.f32 %v1263_v42, %v1280_v53 }
 0x582   : > { %v1329_v35 = vmul.f32 1.442695, %v1312_v44  ;;  %v5765_v44 = vld [vmem:[#allocation20_spill] sm:$0xff] }
 0x583   : > { %v1327_v6 = vmul.f32 1.442695, %v1311_v2 }
 0x584   : > { %3604 = vpow2.f32 %v1329_v35  ;;  %v1286_v12 = vpop.xlane.xlu0 %1285  ;;  %v5766_v35 = vld [vmem:[#allocation17_spill] sm:$0xff] }
 0x585   : > { %3606 = vpow2.f32 %v1327_v6  ;;  %v1314_v18 = vsub.f32 %v1266_v19, %v1286_v12 }
 0x586   : > { %v1294_v52 = vpop.xlane.xlu1 %1293 }
 0x587   : > { %v1333_v28 = vmul.f32 1.442695, %v1314_v18  ;;  %v1318_v27 = vsub.f32 %v4733_v33, %v1294_v52 }
 0x588   : > { %v1292_v4 = vpop.xlane.xlu0 %1291 }
 0x589   : > { %3608 = vpow2.f32 %v1333_v28  ;;  %v1317_v26 = vsub.f32 %v4739_v5, %v1292_v4  ;;  %v1341_v55 = vmul.f32 1.442695, %v1318_v27 }
 0x58a   : > { %v1290_v25 = vpop.xlane.xlu1 %1289 }
 0x58b   : > { %v4808_v43 = vpop.eup %3602  ;;  %v1339_v19 = vmul.f32 1.442695, %v1317_v26  ;;  %v1316_v6 = vsub.f32 %v4745_v61, %v1290_v25 }
 0x58c   : > { %1363 = vadd.xlane.f32.xlu1 %v4808_v43  ;;  %v1288_v18 = vpop.xlane.xlu0 %1287 }
 0x58d   : > { %v1315_v12 = vsub.f32 %v4751_v0, %v1288_v18  ;;  %3610 = vpow2.f32 %v1339_v19  ;;  %v1337_v63 = vmul.f32 1.442695, %v1316_v6 }
 0x58e   : > { %v4811_v30 = vpop.eup %3604  ;;  %v1302_v2 = vpop.xlane.xlu1 %1301 }
 0x58f   : > { %v4813_v51 = vpop.eup %3606  ;;  %1361 = vadd.xlane.f32.xlu0 %v4811_v30  ;;  %v1322_v33 = vsub.f32 %v4757_v50, %v1302_v2 }
 0x590   : > { %1359 = vadd.xlane.f32.xlu1 %v4813_v51  ;;  %v1300_v53 = vpop.xlane.xlu0 %1299 }
 0x592   : > { %v1298_v11 = vpop.xlane.xlu1 %1297 }
 0x593   : > { %v4817_v36 = vpop.eup %3608 }
 0x594   : > { %1365 = vadd.xlane.f32.xlu1 %v4817_v36  ;;  %v1296_v42 = vpop.xlane.xlu0 %1295 }
 0x595   : > { %v1319_v0 = vsub.f32 %v4775_v10, %v1296_v42  ;;  %v1320_v10 = vsub.f32 %v4769_v54, %v1298_v11 }
 0x597   : > { %v1343_v52 = vmul.f32 1.442695, %v1319_v0  ;;  %v4833_v25 = vpop.eup %3610 }
 0x598   : > { %v1308_v28 = vpop.xlane.xlu0 %1307 }
 0x599   : > { %v1325_v5 = vsub.f32 %v4781_v46, %v1308_v28 }
 0x59b   : > { %v1355_v61 = vmul.f32 1.442695, %v1325_v5 }
 0x59c   : > { %v1304_v18 = vpop.xlane.xlu0 %1303 }
 0x59d   : > { %v1323_v26 = vsub.f32 %v4787_v3, %v1304_v18 }
 0x59f   : > { %v1351_v46 = vmul.f32 1.442695, %v1323_v26 }
 0x5a5   : > { %1594 = vrot.lane.b32.xlu1 %v5765_v44, %s3961_s23  ;;  %1592 = vrot.lane.b32.xlu0 %v5766_v35, %s3961_s23  ;;  %v1335_v44 = vmul.f32 1.442695, %v1315_v12  ;;  %v1321_v35 = vsub.f32 %v4763_v23, %v1300_v53  ;;  %v4835_v23 = vpop.permute.xlu1 %1590 }
 0x5a7   : > { %3612 = vpow2.f32 %v1335_v44  ;;  %v1347_v4 = vmul.f32 1.442695, %v1321_v35  ;;  %v1345_v44 = vmul.f32 1.442695, %v1320_v10 }
 0x5a8   : > { %3614 = vpow2.f32 %v1337_v63  ;;  %v1349_v63 = vmul.f32 1.442695, %v1322_v33 }
 0x5a9   : > { %3616 = vpow2.f32 %v1341_v55 }
 0x5aa   : > { %3618 = vpow2.f32 %v1347_v4  ;;  %v1589_v4 = vpop.permute.xlu0 %1588 }
 0x5ab   : > { %3620 = vpow2.f32 %v1355_v61 }
 0x5ac   : > { %3622 = vpow2.f32 %v1343_v52 }
 0x5ad   : > { %3624 = vpow2.f32 %v1351_v46 }
 0x5ae   : > { %3626 = vpow2.f32 %v1349_v63 }
 0x5b1   : > { %v4839_v55 = vpop.eup %3612 }
 0x5b2   : > { %v4841_v3 = vpop.eup %3614 }
 0x5b3   : > { %v4846_v53 = vpop.eup %3616 }
 0x5b4   : > { %v4848_v54 = vpop.eup %3618 }
 0x5b5   : > { %v4853_v19 = vpop.eup %3620 }
 0x5b6   : > { %v4855_v12 = vpop.eup %3622 }
 0x5b7   : > { %v4859_v6 = vpop.eup %3624 }
 0x5b8   : > { %v4861_v2 = vpop.eup %3626 }
 0x5c4   : > { %1371 = vadd.xlane.f32.xlu0 %v4833_v25 }
 0x5c7   : > { %v1310_v27 = vpop.xlane.xlu1 %1309 }
 0x5c8   : > { %v1326_v50 = vsub.f32 %v4797_v38, %v1310_v27  ;;  %1367 = vadd.xlane.f32.xlu0 %v4839_v55 }
 0x5c9   : > { %1369 = vadd.xlane.f32.xlu1 %v4841_v3 }
 0x5ca   : > { %v1357_v35 = vmul.f32 1.442695, %v1326_v50 }
 0x5cb   : > { %v1306_v42 = vpop.xlane.xlu1 %1305 }
 0x5cc   : > { %3628 = vpow2.f32 %v1357_v35  ;;  %v1324_v11 = vsub.f32 %v4803_v60, %v1306_v42  ;;  %1373 = vadd.xlane.f32.xlu0 %v4846_v53  ;;  %v1625_v35 = vsel %vm651_vm0, %v4665_v56, 0 }
 0x5cd   : > { %1379 = vadd.xlane.f32.xlu1 %v4848_v54  ;;  %3630 = vpow2.f32 %v1345_v44 }
 0x5ce   : > { %v1353_v38 = vmul.f32 1.442695, %v1324_v11 }
 0x5d0   : > { %1387 = vadd.xlane.f32.xlu0 %v4853_v19  ;;  %3632 = vpow2.f32 %v1353_v38 }
 0x5d1   : > { %1375 = vadd.xlane.f32.xlu1 %v4855_v12 }
 0x5d4   : > { %1383 = vadd.xlane.f32.xlu0 %v4859_v6 }
 0x5d5   : > { %1381 = vadd.xlane.f32.xlu1 %v4861_v2 }
 0x5d6   : > { %v4865_v60 = vpop.eup %3628 }
 0x5d7   : > { %v4867_v28 = vpop.eup %3630 }
 0x5d8   : > { %1389 = vadd.xlane.f32.xlu0 %v4865_v60 }
 0x5d9   : > { %1377 = vadd.xlane.f32.xlu1 %v4867_v28 }
 0x5da   : > { %v4871_v5 = vpop.eup %3632 }
 0x5dd   : > { %1385 = vadd.xlane.f32.xlu1 %v4871_v5 }
 0x5ee   : > { %1596 = vrot.lane.b32.xlu0 %v4295_v58, %s3961_s23  ;;  %1598 = vrot.lane.b32.xlu1 %v4303_v7, %s3961_s23 }
 0x5f2   : > { %1568 = vrot.lane.b32.xlu0 %v4211_v41, %s3961_s23  ;;  %1570 = vrot.lane.b32.xlu1 %v4223_v49, %s3961_s23 }
 0x5f6   : > { %1572 = vrot.lane.b32.xlu0 %v4237_v1, %s3961_s23  ;;  %1574 = vrot.lane.b32.xlu1 %v4253_v16, %s3961_s23 }
 0x5fa   : > { %1576 = vrot.lane.b32.xlu0 %v4269_v31, %s3961_s23  ;;  %1578 = vrot.lane.b32.xlu1 %v4285_v47, %s3961_s23 }
 0x5fe   : > { %1580 = vrot.lane.b32.xlu0 %v4297_v59, %s3961_s23  ;;  %1582 = vrot.lane.b32.xlu1 %v4305_v8, %s3961_s23 }
 0x602   : > { %1913 = vrot.lane.b32.xlu0 %v4233_v62, %s3961_s23  ;;  %1915 = vrot.lane.b32.xlu1 %v4231_v57, %s3961_s23 }
 0x606   : > { %1917 = vrot.lane.b32.xlu0 %v4249_v14, %s3961_s23  ;;  %1919 = vrot.lane.b32.xlu1 %v4246_v9, %s3961_s23 }
 0x60a   : > { %1921 = vrot.lane.b32.xlu0 %v4265_v29, %s3961_s23  ;;  %1923 = vrot.lane.b32.xlu1 %v4262_v24, %s3961_s23 }
 0x60e   : > { %1925 = vrot.lane.b32.xlu0 %v4281_v45, %s3961_s23  ;;  %1927 = vrot.lane.b32.xlu1 %v4278_v39, %s3961_s23 }
 0x612   : > { %2058 = vrot.lane.b32.xlu0 %v4209_v40, %s3962_s7  ;;  %2060 = vrot.lane.b32.xlu1 %v4221_v48, %s3962_s7 }
 0x619   : > { %v1364_v0 = vpop.xlane.xlu1 %1363 }
 0x61c   : > { %v1362_v18 = vpop.xlane.xlu0 %1361 }
 0x61d   : > { %3634 = vrcp.f32 %v1362_v18  ;;  %v1360_v61 = vpop.xlane.xlu1 %1359 }
 0x61e   : > { %3636 = vrcp.f32 %v1360_v61 }
 0x61f   : > { %3638 = vrcp.f32 %v1364_v0 }
 0x620   : > { %v1593_v56 = vpop.permute.xlu0 %1592 }
 0x621   : > { %v1366_v26 = vpop.xlane.xlu1 %1365  ;;  %v1637_v42 = vsel %vm651_vm0, %v1593_v56, 0 }
 0x622   : > { %3640 = vrcp.f32 %v1366_v26 }
 0x627   : > { %v3635_v33 = vpop.eup %3634 }
 0x628   : > { %v3637_v52 = vpop.eup %3636  ;;  %v1408_v46 = vmul.f32 %v3635_v33, %v4811_v30  ;;  %v1628_v30 = vsel %vm651_vm0, %v4806_v15, 0 }
 0x629   : > { %v1407_v63 = vmul.f32 %v3637_v52, %v4813_v51  ;;  %v3639_v10 = vpop.eup %3638  ;;  %v1634_v51 = vsel %vm651_vm0, %v4835_v23, 0 }
 0x62a   : > { %v1409_v48 = vmul.f32 %v3639_v10, %v4808_v43  ;;  %v1631_v43 = vsel %vm651_vm0, %v1589_v4, 0 }
 0x62b   : > { %v1423_v40 = vpack.c.bf16 %v1408_v46, %v1407_v63 }
 0x62c   : > { %v3641_v27 = vpop.eup %3640 }
 0x62d   : > { %v1410_v50 = vmul.f32 %v3641_v27, %v4817_v36  ;;  %3237 = vmatprep.mubr.bf16.mxu0 %v1423_v40 }
 0x62f   : > { %v1424_v44 = vpack.c.bf16 %v1410_v50, %v1409_v48 }
 0x631   : > { %3238 = vmatmul.mubr.bf16.vlgmr.msra.gmra.mrb[48].mxu0 %v1424_v44 }
 0x632   : > { %3254 = vmatpush3.bf16.xpose.msra.mxu0 %v1625_v35 }
 0x633   : > { %3446 = vmatprep.subr.msk.bf16.mxu0 %vm651_vm0, %v4806_v15  ;;  %v1595_v15 = vpop.permute.xlu1 %1594 }
 0x634   : > { %v1640_v0 = vsel %vm651_vm0, %v1595_v15, 0 }
 0x63a   : > { %3256 = vmatpush3.bf16.xpose.msra.mxu0 %v1628_v30 }
 0x63b   : > { %3447 = vmatprep.subr.msk.bf16.mxu0 %vm651_vm0, %v1589_v4 }
 0x642   : > { %3258 = vmatpush3.bf16.xpose.msra.mxu0 %v1631_v43 }
 0x643   : > { %3448 = vmatprep.subr.msk.bf16.mxu0 %vm651_vm0, %v4835_v23 }
 0x64a   : > { %3260 = vmatpush3.bf16.xpose.msra.mxu0 %v1634_v51 }
 0x64b   : > { %3449 = vmatprep.subr.msk.bf16.mxu0 %vm651_vm0, %v1593_v56 }
 0x651   : > { %v1372_v36 = vpop.xlane.xlu0 %1371 }
 0x652   : > { %3262 = vmatpush3.bf16.xpose.msra.mxu0 %v1637_v42 }
 0x653   : > { %3450 = vmatprep.subr.msk.bf16.mxu0 %vm651_vm0, %v1595_v15 }
 0x655   : > { %v1368_v11 = vpop.xlane.xlu0 %1367 }
 0x656   : > { %3642 = vrcp.f32 %v1368_v11  ;;  %v1370_v38 = vpop.xlane.xlu1 %1369 }
 0x657   : > { %3644 = vrcp.f32 %v1370_v38 }
 0x658   : > { %3646 = vrcp.f32 %v1372_v36 }
 0x659   : > { %v1374_v4 = vpop.xlane.xlu0 %1373 }
 0x65a   : > { %3648 = vrcp.f32 %v1374_v4  ;;  %3264 = vmatpush3.bf16.xpose.msra.mxu0 %v1640_v0  ;;  %v1380_v23 = vpop.xlane.xlu1 %1379 }
 0x65d   : > { %v1388_v18 = vpop.xlane.xlu0 %1387 }
 0x65e   : > { %v1376_v61 = vpop.xlane.xlu1 %1375 }
 0x660   : > { %v3643_v26 = vpop.eup %3642 }
 0x661   : > { %v3645_v33 = vpop.eup %3644  ;;  %v1384_v52 = vpop.xlane.xlu0 %1383  ;;  %v1411_v46 = vmul.f32 %v3643_v26, %v4839_v55 }
 0x662   : > { %v3647_v63 = vpop.eup %3646  ;;  %v1382_v10 = vpop.xlane.xlu1 %1381  ;;  %v1412_v40 = vmul.f32 %v3645_v33, %v4841_v3 }
 0x663   : > { %3650 = vrcp.f32 %v1382_v10  ;;  %v1413_v44 = vmul.f32 %v3647_v63, %v4833_v25 }
 0x664   : > { %v3649_v27 = vpop.eup %3648  ;;  %v1425_v48 = vpack.c.bf16 %v1412_v40, %v1411_v46  ;;  %3652 = vrcp.f32 %v1376_v61 }
 0x665   : > { %v1390_v50 = vpop.xlane.xlu0 %1389  ;;  %v1414_v35 = vmul.f32 %v3649_v27, %v4846_v53  ;;  %3654 = vrcp.f32 %v1380_v23 }
 0x666   : > { %3241 = vmatprep.mubr.bf16.mxu0 %v1425_v48  ;;  %v1378_v30 = vpop.xlane.xlu1 %1377 }
 0x667   : > { %3656 = vrcp.f32 %v1378_v30  ;;  %v1426_v43 = vpack.c.bf16 %v1414_v35, %v1413_v44 }
 0x668   : > { %3658 = vrcp.f32 %v1384_v52 }
 0x669   : > { %v1597_v55 = vpop.permute.xlu0 %1596  ;;  %3242 = vmatmul.mubr.bf16.gmra.mrb[52].mxu0 %v1426_v43 }
 0x66a   : > { %3451 = vmatprep.subr.msk.bf16.mxu0 %vm651_vm0, %v1597_v55  ;;  %v1386_v3 = vpop.xlane.xlu1 %1385  ;;  %v1643_v51 = vsel %vm651_vm0, %v1597_v55, 0 }
 0x66b   : > { %3660 = vrcp.f32 %v1386_v3  ;;  %3266 = vmatpush3.bf16.xpose.msra.mxu0 %v1643_v51 }
 0x66c   : > { %3662 = vrcp.f32 %v1390_v50 }
 0x66d   : > { %v1569_v56 = vpop.permute.xlu0 %1568  ;;  %v3651_v25 = vpop.eup %3650  ;;  %3664 = vrcp.f32 %v1388_v18 }
 0x66e   : > { %v1599_v53 = vpop.permute.xlu1 %1598  ;;  %v3653_v36 = vpop.eup %3652  ;;  %v1418_v38 = vmul.f32 %v3651_v25, %v4861_v2 }
 0x66f   : > { %3452 = vmatprep.subr.msk.bf16.mxu0 %vm651_vm0, %v1599_v53  ;;  %v3655_v42 = vpop.eup %3654  ;;  %v1646_v0 = vsel %vm651_vm0, %v1599_v53, 0  ;;  %v1415_v23 = vmul.f32 %v3653_v36, %v4855_v12 }
 0x670   : > { %v1417_v18 = vmul.f32 %v3655_v42, %v4848_v54 }
 0x671   : > { %v3657_v15 = vpop.eup %3656  ;;  %v1573_v11 = vpop.permute.xlu0 %1572 }
 0x672   : > { %v1571_v4 = vpop.permute.xlu1 %1570  ;;  %v1416_v61 = vmul.f32 %v3657_v15, %v4867_v28  ;;  %v3659_v26 = vpop.eup %3658  ;;  %v1428_v63 = vpack.c.bf16 %v1418_v38, %v1417_v18 }
 0x673   : > { %3268 = vmatpush3.bf16.xpose.msra.mxu0 %v1646_v0  ;;  %v1419_v2 = vmul.f32 %v3659_v26, %v4859_v6  ;;  %v5784_v26 = vld [vmem:[#allocation26_spill] sm:$0xff] }
 0x674   : > { %v1427_v33 = vpack.c.bf16 %v1416_v61, %v1415_v23  ;;  %vm5785_vm12 = vcmp.le.s32.totalorder %v4331_v17, %v5784_v26 }
 0x675   : > { %v3661_v52 = vpop.eup %3660  ;;  %v1577_v46 = vpop.permute.xlu0 %1576 }
 0x676   : > { %v3663_v10 = vpop.eup %3662  ;;  %3245 = vmatprep.mubr.bf16.mxu0 %v1427_v33  ;;  %v1575_v40 = vpop.permute.xlu1 %1574  ;;  %v1420_v27 = vmul.f32 %v3661_v52, %v4871_v5 }
 0x677   : > { %3246 = vmatmul.mubr.bf16.gmra.mrb[56].mxu0 %v1428_v63  ;;  %v3665_v48 = vpop.eup %3664  ;;  %v1422_v28 = vmul.f32 %v3663_v10, %v4865_v60 }
 0x678   : > { %v1429_v12 = vpack.c.bf16 %v1420_v27, %v1419_v2  ;;  %v1421_v54 = vmul.f32 %v3665_v48, %v4853_v19 }
 0x679   : > { %v1581_v50 = vpop.permute.xlu0 %1580 }
 0x67a   : > { %3249 = vmatprep.mubr.bf16.mxu0 %v1429_v12  ;;  %v1579_v44 = vpop.permute.xlu1 %1578  ;;  %v1430_v30 = vpack.c.bf16 %v1422_v28, %v1421_v54 }
 0x67d   : > { %v1914_v35 = vpop.permute.xlu0 %1913 }
 0x67e   : > { %3285 = vmatprep.subr.bf16.mxu1 %v1914_v35  ;;  %v1583_v43 = vpop.permute.xlu1 %1582 }
 0x67f   : > { %3250 = vmatmul.mubr.bf16.gmra.mrb[60].mxu0 %v1430_v30  ;;  %3286 = vmatpush3.bf16.msra.mxu1 %v1914_v35 }
 0x680   : > { %3269 = vmatprep.mubr.msk.bf16.mxu0 %vm651_vm0, %v1569_v56 }
 0x681   : > { %v1918_v5 = vpop.permute.xlu0 %1917 }
 0x682   : > { %v1916_v6 = vpop.permute.xlu1 %1915 }
 0x683   : > { %3287 = vmatprep.subr.bf16.mxu1 %v1916_v6 }
 0x684   : > { %3288 = vmatpush3.bf16.msra.mxu1 %v1916_v6 }
 0x685   : > { %3289 = vmatprep.subr.bf16.mxu1 %v1918_v5  ;;  %v1922_v19 = vpop.permute.xlu0 %1921 }
 0x686   : > { %v1920_v60 = vpop.permute.xlu1 %1919 }
 0x687   : > { %3270 = vmatmul.mubr.msk.bf16.vlgmr.msra.gmra.mrb[64].mxu0 %vm651_vm0, %v1571_v4 }
 0x688   : > { %3273 = vmatprep.mubr.msk.bf16.mxu0 %vm651_vm0, %v1573_v11  ;;  %3290 = vmatpush3.bf16.msra.mxu1 %v1918_v5 }
 0x689   : > { %3291 = vmatprep.subr.bf16.mxu1 %v1920_v60  ;;  %v1926_v3 = vpop.permute.xlu0 %1925 }
 0x68a   : > { %v1924_v55 = vpop.permute.xlu1 %1923 }
 0x68c   : > { %3292 = vmatpush3.bf16.msra.mxu1 %v1920_v60 }
 0x68d   : > { %3293 = vmatprep.subr.bf16.mxu1 %v1922_v19  ;;  %v4957_v56 = vpop.permute.xlu0 %2058 }
 0x68e   : > { %v1928_v51 = vpop.permute.xlu1 %1927 }
 0x68f   : > { %3274 = vmatmul.mubr.msk.bf16.gmra.mrb[68].mxu0 %vm651_vm0, %v1575_v40 }
 0x690   : > { %3277 = vmatprep.mubr.msk.bf16.mxu0 %vm651_vm0, %v1577_v46  ;;  %3294 = vmatpush3.bf16.msra.mxu1 %v1922_v19 }
 0x691   : > { %3295 = vmatprep.subr.bf16.mxu1 %v1924_v55 }
 0x694   : > { %3296 = vmatpush3.bf16.msra.mxu1 %v1924_v55 }
 0x695   : > { %3297 = vmatprep.subr.bf16.mxu1 %v1926_v3 }
 0x697   : > { %3278 = vmatmul.mubr.msk.bf16.gmra.mrb[72].mxu0 %vm651_vm0, %v1579_v44 }
 0x698   : > { %3281 = vmatprep.mubr.msk.bf16.mxu0 %vm651_vm0, %v1581_v50  ;;  %3298 = vmatpush3.bf16.msra.mxu1 %v1926_v3 }
 0x699   : > { %3299 = vmatprep.subr.bf16.mxu1 %v1928_v51 }
 0x69c   : > { %3300 = vmatpush3.bf16.msra.mxu1 %v1928_v51 }
 0x69d   : > { %3453 = vmatprep.subr.msk.bf16.mxu1 %vm651_vm0, %v4957_v56 }
 0x69f   : > { %3282 = vmatmul.mubr.msk.bf16.gmra.mrb[76].mxu0 %vm651_vm0, %v1583_v43 }
 0x704   : > { %v4962_v25 = vpop.f32.mrb[48].mxu0 }
 0x705   : > { %5767 = vst [vmem:[#allocation24_spill] sm:$0xff] %v4962_v25  ;;  %v4964_v53 = vpop.f32.mrb[49].mxu0 }
 0x706   : > { %5768 = vst [vmem:[#allocation47_spill] sm:$0xff] %v4964_v53  ;;  %v4966_v36 = vpop.f32.mrb[50].mxu0 }
 0x707   : > { %5769 = vst [vmem:[#allocation48_spill] sm:$0xff] %v4966_v36  ;;  %v4970_v15 = vpop.f32.mrb[51].mxu0 }
 0x708   : > { %5770 = vst [vmem:[#allocation49_spill] sm:$0xff] %v4970_v15  ;;  %v5793_v15 = vld [vmem:[#allocation12_spill] sm:$0xff] }
 0x73c   : > { %v4974_v38 = vpop.f32.mrb[52].mxu0 }
 0x73d   : > { %5771 = vst [vmem:[#allocation50_spill] sm:$0xff] %v4974_v38  ;;  %v4976_v4 = vpop.f32.mrb[53].mxu0 }
 0x73e   : > { %5772 = vst [vmem:[#allocation51_spill] sm:$0xff] %v4976_v4  ;;  %v4978_v0 = vpop.f32.mrb[54].mxu0 }
 0x73f   : > { %5773 = vst [vmem:[#allocation52_spill] sm:$0xff] %v4978_v0  ;;  %v4982_v61 = vpop.f32.mrb[55].mxu0 }
 0x740   : > { %5774 = vst [vmem:[#allocation53_spill] sm:$0xff] %v4982_v61 }
 0x74a   : > { %v4986_v18 = vpop.f32.mrb[56].mxu0 }
 0x74b   : > { %5775 = vst [vmem:[#allocation54_spill] sm:$0xff] %v4986_v18  ;;  %v4988_v33 = vpop.f32.mrb[57].mxu0 }
 0x74c   : > { %5776 = vst [vmem:[#allocation55_spill] sm:$0xff] %v4988_v33  ;;  %v4990_v52 = vpop.f32.mrb[58].mxu0 }
 0x74d   : > { %5777 = vst [vmem:[#allocation56_spill] sm:$0xff] %v4990_v52  ;;  %v4994_v63 = vpop.f32.mrb[59].mxu0 }
 0x74e   : > { %5778 = vst [vmem:[#allocation57_spill] sm:$0xff] %v4994_v63 }
 0x752   : > { %v4998_v40 = vpop.f32.mrb[60].mxu0 }
 0x753   : > { %5779 = vst [vmem:[#allocation58_spill] sm:$0xff] %v4998_v40  ;;  %v5000_v2 = vpop.f32.mrb[61].mxu0 }
 0x754   : > { %5780 = vst [vmem:[#allocation59_spill] sm:$0xff] %v5000_v2  ;;  %v5002_v27 = vpop.f32.mrb[62].mxu0  ;;  %v5098_v2 = vpop.permute.xlu1 %2060 }
 0x755   : > { %5781 = vst [vmem:[#allocation60_spill] sm:$0xff] %v5002_v27  ;;  %v5006_v12 = vpop.f32.mrb[63].mxu0 }
 0x756   : > { %5782 = vst [vmem:[#allocation61_spill] sm:$0xff] %v5006_v12 }
 0x75a   : > { %v3271_v28 = vpop.f32.mrb[64].mxu0 }
 0x75b   : > { %v1747_v44 = vsel %vm637_vm3, %v3271_v28, -inf  ;;  %v1682_v54 = vpop.f32.mrb[65].mxu0 }
 0x75c   : > { %1765 = vmax.xlane.f32.xlu0 %v1747_v44  ;;  %v3272_v35 = vpop.f32.mrb[66].mxu0  ;;  %v1745_v6 = vsel %vm635_vm4, %v1682_v54, -inf }
 0x75d   : > { %v1685_v30 = vpop.f32.mrb[67].mxu0  ;;  %v1748_v60 = vsel %vm638_vm5, %v3272_v35, -inf }
 0x75e   : > { %v1746_v43 = vsel %vm636_vm6, %v1685_v30, -inf }
 0x75f   : > { %1763 = vmax.xlane.f32.xlu1 %v1746_v43 }
 0x760   : > { %1761 = vmax.xlane.f32.xlu0 %v1745_v6 }
 0x762   : > { %v3275_v5 = vpop.f32.mrb[68].mxu0 }
 0x763   : > { %v1698_v19 = vpop.f32.mrb[69].mxu0  ;;  %v5031_v28 = vsel %vm641_vm7, %v3275_v5, -inf }
 0x764   : > { %1767 = vmax.xlane.f32.xlu0 %v1748_v60  ;;  %v3276_v55 = vpop.f32.mrb[70].mxu0 }
 0x765   : > { %v5025_v3 = vsel %vm642_vm8, %v3276_v55, -inf  ;;  %v1701_v51 = vpop.f32.mrb[71].mxu0  ;;  %v5043_v55 = vsel %vm639_vm9, %v1698_v19, -inf }
 0x766   : > { %1775 = vmax.xlane.f32.xlu1 %v5025_v3  ;;  %v5037_v54 = vsel %vm640_vm10, %v1701_v51, -inf }
 0x768   : > { %1773 = vmax.xlane.f32.xlu0 %v5031_v28 }
 0x76a   : > { %1771 = vmax.xlane.f32.xlu1 %v5037_v54  ;;  %v3279_v35 = vpop.f32.mrb[72].mxu0 }
 0x76b   : > { %v1714_v23 = vpop.f32.mrb[73].mxu0  ;;  %v5055_v50 = vsel %vm645_vm11, %v3279_v35, -inf }
 0x76c   : > { %1769 = vmax.xlane.f32.xlu0 %v5043_v55  ;;  %v3280_v5 = vpop.f32.mrb[74].mxu0 }
 0x76d   : > { %v5049_v11 = vsel %vm5785_vm12, %v3280_v5, -inf  ;;  %v1717_v48 = vpop.f32.mrb[75].mxu0  ;;  %v5788_v5 = vld [vmem:[#allocation27_spill] sm:$0xff] }
 0x76e   : > { %1783 = vmax.xlane.f32.xlu1 %v5049_v11  ;;  %v5061_v46 = vsel %vm644_vm14, %v1717_v48, -inf  ;;  %vm5789_vm12 = vcmp.le.s32.totalorder %v4331_v17, %v5788_v5  ;;  %v5800_v5 = vld [vmem:[#allocation16_spill] sm:$0xff] }
 0x76f   : > { %v5067_v10 = vsel %vm5789_vm12, %v1714_v23, -inf  ;;  %v5792_v23 = vld [vmem:[#allocation14_spill] sm:$0xff] }
 0x770   : > { %1781 = vmax.xlane.f32.xlu0 %v5055_v50 }
 0x772   : > { %1779 = vmax.xlane.f32.xlu1 %v5061_v46  ;;  %v3283_v42 = vpop.f32.mrb[76].mxu0 }
 0x773   : > { %v1730_v38 = vpop.f32.mrb[77].mxu0  ;;  %v5073_v61 = vsel %vm649_vm15, %v3283_v42, -inf }
 0x774   : > { %1777 = vmax.xlane.f32.xlu0 %v5067_v10  ;;  %v3284_v35 = vpop.f32.mrb[78].mxu0  ;;  %v5079_v53 = vsel %vm647_vm13, %v1730_v38, -inf }
 0x775   : > { %v1733_v0 = vpop.f32.mrb[79].mxu0  ;;  %v5089_v42 = vsel %vm650_vm1, %v3284_v35, -inf }
 0x776   : > { %v5095_v38 = vsel %vm648_vm2, %v1733_v0, -inf }
 0x778   : > { %1789 = vmax.xlane.f32.xlu0 %v5073_v61 }
 0x77c   : > { %1785 = vmax.xlane.f32.xlu0 %v5079_v53 }
 0x783   : > { %2064 = vrot.lane.b32.xlu1 %v5792_v23, %s3962_s7 }
 0x792   : > { %2062 = vrot.lane.b32.xlu0 %v5793_v15, %s3962_s7 }
 0x7a7   : > { %1791 = vmax.xlane.f32.xlu1 %v5089_v42 }
 0x7ab   : > { %1787 = vmax.xlane.f32.xlu1 %v5095_v38 }
 0x7e9   : > { %v1766_v23 = vpop.xlane.xlu0 %1765 }
 0x7ea   : > { %v1795_v12 = vsub.f32 %v1747_v44, %v1766_v23 }
 0x7ec   : > { %v1813_v18 = vmul.f32 1.442695, %v1795_v12  ;;  %v1764_v15 = vpop.xlane.xlu1 %1763 }
 0x7ed   : > { %v1794_v52 = vsub.f32 %v1746_v43, %v1764_v15  ;;  %v1762_v25 = vpop.xlane.xlu0 %1761 }
 0x7ee   : > { %3666 = vpow2.f32 %v1813_v18  ;;  %v1793_v35 = vsub.f32 %v1745_v6, %v1762_v25  ;;  %v5797_v18 = vld [vmem:[#allocation17_spill] sm:$0xff] }
 0x7ef   : > { %v1811_v36 = vmul.f32 1.442695, %v1794_v52 }
 0x7f0   : > { %v1809_v45 = vmul.f32 1.442695, %v1793_v35 }
 0x7f1   : > { %3668 = vpow2.f32 %v1811_v36  ;;  %v1768_v33 = vpop.xlane.xlu0 %1767  ;;  %v5796_v36 = vld [vmem:[#allocation20_spill] sm:$0xff] }
 0x7f2   : > { %3670 = vpow2.f32 %v1809_v45  ;;  %v1796_v63 = vsub.f32 %v1748_v60, %v1768_v33 }
 0x7f3   : > { %v1776_v52 = vpop.xlane.xlu1 %1775 }
 0x7f4   : > { %v1815_v0 = vmul.f32 1.442695, %v1796_v63  ;;  %v1800_v27 = vsub.f32 %v5025_v3, %v1776_v52 }
 0x7f5   : > { %v1774_v45 = vpop.xlane.xlu0 %1773 }
 0x7f6   : > { %3672 = vpow2.f32 %v1815_v0  ;;  %v1799_v44 = vsub.f32 %v5031_v28, %v1774_v45  ;;  %v1823_v9 = vmul.f32 1.442695, %v1800_v27 }
 0x7f7   : > { %v1772_v43 = vpop.xlane.xlu1 %1771 }
 0x7f8   : > { %v5100_v39 = vpop.eup %3666  ;;  %v1821_v60 = vmul.f32 1.442695, %v1799_v44  ;;  %v1798_v15 = vsub.f32 %v5037_v54, %v1772_v43 }
 0x7f9   : > { %1845 = vadd.xlane.f32.xlu1 %v5100_v39  ;;  %v1770_v33 = vpop.xlane.xlu0 %1769 }
 0x7fa   : > { %v1797_v23 = vsub.f32 %v5043_v55, %v1770_v33  ;;  %3674 = vpow2.f32 %v1821_v60  ;;  %v1819_v40 = vmul.f32 1.442695, %v1798_v15 }
 0x7fb   : > { %v5103_v24 = vpop.eup %3668  ;;  %v1784_v35 = vpop.xlane.xlu1 %1783 }
 0x7fc   : > { %v5105_v12 = vpop.eup %3670  ;;  %1843 = vadd.xlane.f32.xlu0 %v5103_v24  ;;  %v1804_v3 = vsub.f32 %v5049_v11, %v1784_v35 }
 0x7fd   : > { %1841 = vadd.xlane.f32.xlu1 %v5105_v12  ;;  %v1782_v63 = vpop.xlane.xlu0 %1781 }
 0x7ff   : > { %v1780_v29 = vpop.xlane.xlu1 %1779 }
 0x800   : > { %v5109_v25 = vpop.eup %3672 }
 0x801   : > { %1847 = vadd.xlane.f32.xlu1 %v5109_v25  ;;  %v1778_v6 = vpop.xlane.xlu0 %1777 }
 0x802   : > { %v1801_v55 = vsub.f32 %v5067_v10, %v1778_v6  ;;  %v1802_v10 = vsub.f32 %v5061_v46, %v1780_v29 }
 0x803   : > { %v5127_v27 = vpop.permute.xlu1 %2064 }
 0x804   : > { %v1825_v52 = vmul.f32 1.442695, %v1801_v55  ;;  %v5125_v43 = vpop.eup %3674 }
 0x805   : > { %v1790_v0 = vpop.xlane.xlu0 %1789 }
 0x806   : > { %v1807_v28 = vsub.f32 %v5073_v61, %v1790_v0 }
 0x808   : > { %v1837_v54 = vmul.f32 1.442695, %v1807_v28 }
 0x809   : > { %v1786_v33 = vpop.xlane.xlu0 %1785 }
 0x80a   : > { %v1805_v44 = vsub.f32 %v5079_v53, %v1786_v33  ;;  %v2099_v33 = vsel %vm651_vm0, %v4957_v56, 0 }
 0x80c   : > { %v1833_v61 = vmul.f32 1.442695, %v1805_v44 }
 0x812   : > { %2068 = vrot.lane.b32.xlu1 %v5796_v36, %s3962_s7  ;;  %2066 = vrot.lane.b32.xlu0 %v5797_v18, %s3962_s7  ;;  %v1817_v36 = vmul.f32 1.442695, %v1797_v23  ;;  %v1803_v18 = vsub.f32 %v5055_v50, %v1782_v63  ;;  %v1827_v63 = vmul.f32 1.442695, %v1802_v10 }
 0x814   : > { %3676 = vpow2.f32 %v1817_v36  ;;  %v1829_v45 = vmul.f32 1.442695, %v1803_v18 }
 0x815   : > { %3678 = vpow2.f32 %v1819_v40  ;;  %v1831_v40 = vmul.f32 1.442695, %v1804_v3 }
 0x816   : > { %3680 = vpow2.f32 %v1823_v9 }
 0x817   : > { %3682 = vpow2.f32 %v1829_v45 }
 0x818   : > { %3684 = vpow2.f32 %v1837_v54 }
 0x819   : > { %3686 = vpow2.f32 %v1825_v52 }
 0x81a   : > { %3688 = vpow2.f32 %v1833_v61 }
 0x81b   : > { %3690 = vpow2.f32 %v1831_v40 }
 0x81e   : > { %v5131_v9 = vpop.eup %3676 }
 0x81f   : > { %v5133_v53 = vpop.eup %3678 }
 0x820   : > { %v5138_v60 = vpop.eup %3680 }
 0x821   : > { %v5140_v29 = vpop.eup %3682 }
 0x822   : > { %v5145_v15 = vpop.eup %3684 }
 0x823   : > { %v5147_v35 = vpop.eup %3686 }
 0x824   : > { %v5151_v0 = vpop.eup %3688 }
 0x825   : > { %v5153_v36 = vpop.eup %3690 }
 0x831   : > { %1853 = vadd.xlane.f32.xlu0 %v5125_v43 }
 0x834   : > { %v1792_v50 = vpop.xlane.xlu1 %1791 }
 0x835   : > { %v1808_v11 = vsub.f32 %v5089_v42, %v1792_v50  ;;  %1849 = vadd.xlane.f32.xlu0 %v5131_v9 }
 0x836   : > { %1851 = vadd.xlane.f32.xlu1 %v5133_v53 }
 0x837   : > { %v1839_v6 = vmul.f32 1.442695, %v1808_v11 }
 0x838   : > { %v1788_v23 = vpop.xlane.xlu1 %1787 }
 0x839   : > { %3692 = vpow2.f32 %v1839_v6  ;;  %v1806_v46 = vsub.f32 %v5095_v38, %v1788_v23  ;;  %1855 = vadd.xlane.f32.xlu0 %v5138_v60 }
 0x83a   : > { %1861 = vadd.xlane.f32.xlu1 %v5140_v29  ;;  %3694 = vpow2.f32 %v1827_v63 }
 0x83b   : > { %v1835_v42 = vmul.f32 1.442695, %v1806_v46 }
 0x83d   : > { %1869 = vadd.xlane.f32.xlu0 %v5145_v15  ;;  %3696 = vpow2.f32 %v1835_v42 }
 0x83e   : > { %1857 = vadd.xlane.f32.xlu1 %v5147_v35 }
 0x841   : > { %1865 = vadd.xlane.f32.xlu0 %v5151_v0 }
 0x842   : > { %1863 = vadd.xlane.f32.xlu1 %v5153_v36 }
 0x843   : > { %v5157_v38 = vpop.eup %3692 }
 0x844   : > { %v5159_v18 = vpop.eup %3694 }
 0x845   : > { %1871 = vadd.xlane.f32.xlu0 %v5157_v38 }
 0x846   : > { %1859 = vadd.xlane.f32.xlu1 %v5159_v18 }
 0x847   : > { %v5163_v28 = vpop.eup %3696 }
 0x84a   : > { %1867 = vadd.xlane.f32.xlu1 %v5163_v28 }
 0x85b   : > { %2070 = vrot.lane.b32.xlu0 %v4295_v58, %s3962_s7  ;;  %2072 = vrot.lane.b32.xlu1 %v4303_v7, %s3962_s7 }
 0x85f   : > { %2042 = vrot.lane.b32.xlu0 %v4211_v41, %s3962_s7  ;;  %2044 = vrot.lane.b32.xlu1 %v4223_v49, %s3962_s7  ;;  %v2063_v41 = vpop.permute.xlu0 %2062 }
 0x863   : > { %2046 = vrot.lane.b32.xlu0 %v4237_v1, %s3962_s7  ;;  %2048 = vrot.lane.b32.xlu1 %v4253_v16, %s3962_s7 }
 0x867   : > { %2050 = vrot.lane.b32.xlu0 %v4269_v31, %s3962_s7  ;;  %2052 = vrot.lane.b32.xlu1 %v4285_v47, %s3962_s7 }
 0x86b   : > { %2054 = vrot.lane.b32.xlu0 %v4297_v59, %s3962_s7  ;;  %2056 = vrot.lane.b32.xlu1 %v4305_v8, %s3962_s7 }
 0x86f   : > { %2387 = vrot.lane.b32.xlu0 %v4233_v62, %s3962_s7  ;;  %2389 = vrot.lane.b32.xlu1 %v4231_v57, %s3962_s7 }
 0x873   : > { %2391 = vrot.lane.b32.xlu0 %v4249_v14, %s3962_s7 }
 0x886   : > { %v1846_v49 = vpop.xlane.xlu1 %1845 }
 0x889   : > { %v1844_v1 = vpop.xlane.xlu0 %1843 }
 0x88a   : > { %3698 = vrcp.f32 %v1844_v1  ;;  %v1842_v16 = vpop.xlane.xlu1 %1841 }
 0x88b   : > { %3700 = vrcp.f32 %v1842_v16 }
 0x88c   : > { %3702 = vrcp.f32 %v1846_v49 }
 0x88d   : > { %v2067_v56 = vpop.permute.xlu0 %2066 }
 0x88e   : > { %v1848_v31 = vpop.xlane.xlu1 %1847 }
 0x88f   : > { %3704 = vrcp.f32 %v1848_v31 }
 0x894   : > { %v3699_v47 = vpop.eup %3698 }
 0x895   : > { %v3701_v58 = vpop.eup %3700  ;;  %v1890_v59 = vmul.f32 %v3699_v47, %v5103_v24  ;;  %v2102_v24 = vsel %vm651_vm0, %v5098_v2, 0 }
 0x896   : > { %v1889_v62 = vmul.f32 %v3701_v58, %v5105_v12  ;;  %v3703_v7 = vpop.eup %3702  ;;  %v2108_v12 = vsel %vm651_vm0, %v5127_v27, 0 }
 0x897   : > { %v1891_v14 = vmul.f32 %v3703_v7, %v5100_v39  ;;  %v2105_v39 = vsel %vm651_vm0, %v2063_v41, 0 }
 0x898   : > { %v1905_v57 = vpack.c.bf16 %v1890_v59, %v1889_v62 }
 0x899   : > { %v3705_v8 = vpop.eup %3704 }
 0x89a   : > { %v1892_v45 = vmul.f32 %v3705_v8, %v5109_v25  ;;  %3301 = vmatprep.mubr.bf16.mxu1 %v1905_v57  ;;  %v2111_v25 = vsel %vm651_vm0, %v2067_v56, 0 }
 0x89c   : > { %v1906_v55 = vpack.c.bf16 %v1892_v45, %v1891_v14 }
 0x89e   : > { %3302 = vmatmul.mubr.bf16.vlgmr.msra.gmra.mrb[48].mxu1 %v1906_v55 }
 0x89f   : > { %3318 = vmatpush3.bf16.xpose.msra.mxu1 %v2099_v33 }
 0x8a0   : > { %3454 = vmatprep.subr.msk.bf16.mxu1 %vm651_vm0, %v5098_v2  ;;  %v2069_v2 = vpop.permute.xlu1 %2068 }
 0x8a1   : > { %v2114_v52 = vsel %vm651_vm0, %v2069_v2, 0 }
 0x8a7   : > { %3320 = vmatpush3.bf16.xpose.msra.mxu1 %v2102_v24 }
 0x8a8   : > { %3455 = vmatprep.subr.msk.bf16.mxu1 %vm651_vm0, %v2063_v41 }
 0x8af   : > { %3322 = vmatpush3.bf16.xpose.msra.mxu1 %v2105_v39 }
 0x8b0   : > { %3456 = vmatprep.subr.msk.bf16.mxu1 %vm651_vm0, %v5127_v27 }
 0x8b7   : > { %3324 = vmatpush3.bf16.xpose.msra.mxu1 %v2108_v12 }
 0x8b8   : > { %3457 = vmatprep.subr.msk.bf16.mxu1 %vm651_vm0, %v2067_v56 }
 0x8be   : > { %v1854_v54 = vpop.xlane.xlu0 %1853 }
 0x8bf   : > { %3326 = vmatpush3.bf16.xpose.msra.mxu1 %v2111_v25 }
 0x8c0   : > { %3458 = vmatprep.subr.msk.bf16.mxu1 %vm651_vm0, %v2069_v2 }
 0x8c2   : > { %v1850_v44 = vpop.xlane.xlu0 %1849 }
 0x8c3   : > { %3706 = vrcp.f32 %v1850_v44  ;;  %v1852_v3 = vpop.xlane.xlu1 %1851 }
 0x8c4   : > { %3708 = vrcp.f32 %v1852_v3 }
 0x8c5   : > { %3710 = vrcp.f32 %v1854_v54 }
 0x8c6   : > { %v1856_v61 = vpop.xlane.xlu0 %1855 }
 0x8c7   : > { %3712 = vrcp.f32 %v1856_v61  ;;  %3328 = vmatpush3.bf16.xpose.msra.mxu1 %v2114_v52  ;;  %v1862_v27 = vpop.xlane.xlu1 %1861 }
 0x8ca   : > { %v1870_v40 = vpop.xlane.xlu0 %1869 }
 0x8cb   : > { %v1858_v10 = vpop.xlane.xlu1 %1857 }
 0x8cd   : > { %v3707_v50 = vpop.eup %3706 }
 0x8ce   : > { %v3709_v11 = vpop.eup %3708  ;;  %v1866_v63 = vpop.xlane.xlu0 %1865  ;;  %v1893_v6 = vmul.f32 %v3707_v50, %v5131_v9 }
 0x8cf   : > { %v3711_v23 = vpop.eup %3710  ;;  %v1864_v46 = vpop.xlane.xlu1 %1863  ;;  %v1894_v42 = vmul.f32 %v3709_v11, %v5133_v53 }
 0x8d0   : > { %3714 = vrcp.f32 %v1864_v46  ;;  %v1895_v16 = vmul.f32 %v3711_v23, %v5125_v43 }
 0x8d1   : > { %v3713_v41 = vpop.eup %3712  ;;  %v1907_v49 = vpack.c.bf16 %v1894_v42, %v1893_v6  ;;  %3716 = vrcp.f32 %v1858_v10 }
 0x8d2   : > { %v1872_v1 = vpop.xlane.xlu0 %1871  ;;  %v1896_v31 = vmul.f32 %v3713_v41, %v5138_v60  ;;  %3718 = vrcp.f32 %v1862_v27 }
 0x8d3   : > { %3305 = vmatprep.mubr.bf16.mxu1 %v1907_v49  ;;  %v1860_v47 = vpop.xlane.xlu1 %1859 }
 0x8d4   : > { %3720 = vrcp.f32 %v1860_v47  ;;  %v1908_v58 = vpack.c.bf16 %v1896_v31, %v1895_v16 }
 0x8d5   : > { %3722 = vrcp.f32 %v1866_v63 }
 0x8d6   : > { %v2071_v9 = vpop.permute.xlu0 %2070  ;;  %3306 = vmatmul.mubr.bf16.gmra.mrb[52].mxu1 %v1908_v58 }
 0x8d7   : > { %v2117_v59 = vsel %vm651_vm0, %v2071_v9, 0  ;;  %3459 = vmatprep.subr.msk.bf16.mxu1 %vm651_vm0, %v2071_v9  ;;  %v1868_v53 = vpop.xlane.xlu1 %1867 }
 0x8d8   : > { %3724 = vrcp.f32 %v1868_v53  ;;  %3330 = vmatpush3.bf16.xpose.msra.mxu1 %v2117_v59 }
 0x8d9   : > { %3726 = vrcp.f32 %v1872_v1 }
 0x8da   : > { %v2043_v62 = vpop.permute.xlu0 %2042  ;;  %v3715_v43 = vpop.eup %3714  ;;  %3728 = vrcp.f32 %v1870_v40 }
 0x8db   : > { %v2073_v60 = vpop.permute.xlu1 %2072  ;;  %v3717_v7 = vpop.eup %3716  ;;  %v1900_v45 = vmul.f32 %v3715_v43, %v5153_v36 }
 0x8dc   : > { %3460 = vmatprep.subr.msk.bf16.mxu1 %vm651_vm0, %v2073_v60  ;;  %v3719_v57 = vpop.eup %3718  ;;  %v2120_v55 = vsel %vm651_vm0, %v2073_v60, 0  ;;  %v1897_v24 = vmul.f32 %v3717_v7, %v5147_v35 }
 0x8dd   : > { %v1899_v56 = vmul.f32 %v3719_v57, %v5140_v29 }
 0x8de   : > { %v3721_v8 = vpop.eup %3720  ;;  %v2047_v14 = vpop.permute.xlu0 %2046 }
 0x8df   : > { %v2045_v33 = vpop.permute.xlu1 %2044  ;;  %v1898_v39 = vmul.f32 %v3721_v8, %v5159_v18  ;;  %v3723_v12 = vpop.eup %3722  ;;  %v1910_v44 = vpack.c.bf16 %v1900_v45, %v1899_v56 }
 0x8e0   : > { %3332 = vmatpush3.bf16.xpose.msra.mxu1 %v2120_v55  ;;  %v1901_v36 = vmul.f32 %v3723_v12, %v5151_v0 }
 0x8e1   : > { %v1909_v25 = vpack.c.bf16 %v1898_v39, %v1897_v24 }
 0x8e2   : > { %v3725_v54 = vpop.eup %3724  ;;  %v2051_v2 = vpop.permute.xlu0 %2050 }
 0x8e3   : > { %v3727_v3 = vpop.eup %3726  ;;  %3309 = vmatprep.mubr.bf16.mxu1 %v1909_v25  ;;  %v2049_v52 = vpop.permute.xlu1 %2048  ;;  %v1902_v61 = vmul.f32 %v3725_v54, %v5163_v28 }
 0x8e4   : > { %3310 = vmatmul.mubr.bf16.gmra.mrb[56].mxu1 %v1910_v44  ;;  %v3729_v27 = vpop.eup %3728  ;;  %v1904_v18 = vmul.f32 %v3727_v3, %v5157_v38 }
 0x8e5   : > { %v1911_v35 = vpack.c.bf16 %v1902_v61, %v1901_v36  ;;  %v1903_v29 = vmul.f32 %v3729_v27, %v5145_v15 }
 0x8e6   : > { %v2055_v40 = vpop.permute.xlu0 %2054 }
 0x8e7   : > { %3313 = vmatprep.mubr.bf16.mxu1 %v1911_v35  ;;  %v2053_v10 = vpop.permute.xlu1 %2052  ;;  %v1912_v11 = vpack.c.bf16 %v1904_v18, %v1903_v29  ;;  %v5801_v29 = vld [vmem:[#allocation13_spill] sm:$0xff] }
 0x8ea   : > { %v2388_v50 = vpop.permute.xlu0 %2387 }
 0x8eb   : > { %3349 = vmatprep.subr.bf16.mxu0 %v2388_v50  ;;  %v2057_v63 = vpop.permute.xlu1 %2056 }
 0x8ec   : > { %3314 = vmatmul.mubr.bf16.gmra.mrb[60].mxu1 %v1912_v11  ;;  %3350 = vmatpush3.bf16.msra.mxu0 %v2388_v50 }
 0x8ed   : > { %3333 = vmatprep.mubr.msk.bf16.mxu1 %vm651_vm0, %v2043_v62 }
 0x8ee   : > { %v2392_v28 = vpop.permute.xlu0 %2391 }
 0x8ef   : > { %v2390_v0 = vpop.permute.xlu1 %2389 }
 0x8f0   : > { %3351 = vmatprep.subr.bf16.mxu0 %v2390_v0 }
 0x8f1   : > { %3352 = vmatpush3.bf16.msra.mxu0 %v2390_v0 }
 0x8f2   : > { %3353 = vmatprep.subr.bf16.mxu0 %v2392_v28 }
 0x8f4   : > { %3334 = vmatmul.mubr.msk.bf16.vlgmr.msra.gmra.mrb[64].mxu1 %vm651_vm0, %v2045_v33 }
 0x8f5   : > { %3337 = vmatprep.mubr.msk.bf16.mxu1 %vm651_vm0, %v2047_v14  ;;  %3354 = vmatpush3.bf16.msra.mxu0 %v2392_v28 }
 0x8fc   : > { %3338 = vmatmul.mubr.msk.bf16.gmra.mrb[68].mxu1 %vm651_vm0, %v2049_v52 }
 0x8fd   : > { %3341 = vmatprep.mubr.msk.bf16.mxu1 %vm651_vm0, %v2051_v2 }
 0x904   : > { %3342 = vmatmul.mubr.msk.bf16.gmra.mrb[72].mxu1 %vm651_vm0, %v2053_v10 }
 0x905   : > { %3345 = vmatprep.mubr.msk.bf16.mxu1 %vm651_vm0, %v2055_v40 }
 0x90c   : > { %3346 = vmatmul.mubr.msk.bf16.gmra.mrb[76].mxu1 %vm651_vm0, %v2057_v63  ;;  %v5804_v63 = vld [vmem:[#allocation15_spill] sm:$0xff] }
 0x971   : > { %v5236_v15 = vpop.f32.mrb[48].mxu1 }
 0x972   : > { %v5238_v38 = vpop.f32.mrb[49].mxu1 }
 0x973   : > { %v5240_v6 = vpop.f32.mrb[50].mxu1 }
 0x974   : > { %v2035_v23 = vpack.c.bf16 %v5240_v6, %v5236_v15  ;;  %v5244_v46 = vpop.f32.mrb[51].mxu1 }
 0x975   : > { %v2034_v42 = vpack.c.bf16 %v5244_v46, %v5238_v38 }
 0x9a9   : > { %v5248_v41 = vpop.f32.mrb[52].mxu1 }
 0x9aa   : > { %v5250_v49 = vpop.f32.mrb[53].mxu1 }
 0x9ab   : > { %v5252_v1 = vpop.f32.mrb[54].mxu1 }
 0x9ac   : > { %v2037_v16 = vpack.c.bf16 %v5252_v1, %v5248_v41  ;;  %v5256_v31 = vpop.f32.mrb[55].mxu1 }
 0x9ad   : > { %v2036_v47 = vpack.c.bf16 %v5256_v31, %v5250_v49 }
 0x9b7   : > { %v5260_v58 = vpop.f32.mrb[56].mxu1 }
 0x9b8   : > { %v5262_v9 = vpop.f32.mrb[57].mxu1 }
 0x9b9   : > { %v5264_v59 = vpop.f32.mrb[58].mxu1 }
 0x9ba   : > { %v2039_v53 = vpack.c.bf16 %v5264_v59, %v5260_v58  ;;  %v5268_v62 = vpop.f32.mrb[59].mxu1 }
 0x9bb   : > { %v2038_v43 = vpack.c.bf16 %v5268_v62, %v5262_v9  ;;  %v5819_v62 = vld [vmem:[#allocation60_spill] sm:$0xff] }
 0x9bf   : > { %v5272_v60 = vpop.f32.mrb[60].mxu1 }
 0x9c0   : > { %v5274_v7 = vpop.f32.mrb[61].mxu1 }
 0x9c1   : > { %v5276_v57 = vpop.f32.mrb[62].mxu1 }
 0x9c2   : > { %v2041_v8 = vpack.c.bf16 %v5276_v57, %v5272_v60  ;;  %v5280_v14 = vpop.f32.mrb[63].mxu1 }
 0x9c3   : > { %v2040_v45 = vpack.c.bf16 %v5280_v14, %v5274_v7  ;;  %v5825_v7 = vld [vmem:[#allocation53_spill] sm:$0xff]  ;;  %v5826_v14 = vld [vmem:[#allocation51_spill] sm:$0xff] }
 0x9c7   : > { %v3335_v55 = vpop.f32.mrb[64].mxu1 }
 0x9c8   : > { %v2221_v33 = vsel %vm637_vm3, %v3335_v55, -inf  ;;  %v2156_v24 = vpop.f32.mrb[65].mxu1  ;;  %vm5798_vm3 = vcmp.le.s32.totalorder %v4331_v17, %v5784_v26 }
 0x9c9   : > { %2239 = vmax.xlane.f32.xlu0 %v2221_v33  ;;  %v3336_v39 = vpop.f32.mrb[66].mxu1  ;;  %v2219_v25 = vsel %vm635_vm4, %v2156_v24, -inf  ;;  %vm5799_vm4 = vmmov %vm5789_vm12 }
 0x9ca   : > { %v2159_v12 = vpop.f32.mrb[67].mxu1  ;;  %v2222_v20 = vsel %vm638_vm5, %v3336_v39, -inf }
 0x9cb   : > { %v2220_v56 = vsel %vm636_vm6, %v2159_v12, -inf }
 0x9cc   : > { %2237 = vmax.xlane.f32.xlu1 %v2220_v56 }
 0x9cd   : > { %2235 = vmax.xlane.f32.xlu0 %v2219_v25 }
 0x9cf   : > { %v3339_v54 = vpop.f32.mrb[68].mxu1 }
 0x9d0   : > { %v2172_v2 = vpop.f32.mrb[69].mxu1  ;;  %v2225_v13 = vsel %vm641_vm7, %v3339_v54, -inf }
 0x9d1   : > { %2241 = vmax.xlane.f32.xlu0 %v2222_v20  ;;  %v3340_v44 = vpop.f32.mrb[70].mxu1  ;;  %v2223_v34 = vsel %vm639_vm9, %v2172_v2, -inf }
 0x9d2   : > { %v5299_v3 = vsel %vm642_vm8, %v3340_v44, -inf  ;;  %v2175_v22 = vpop.f32.mrb[71].mxu1 }
 0x9d3   : > { %2249 = vmax.xlane.f32.xlu1 %v5299_v3  ;;  %v2224_v21 = vsel %vm640_vm10, %v2175_v22, -inf }
 0x9d5   : > { %2247 = vmax.xlane.f32.xlu0 %v2225_v13 }
 0x9d7   : > { %2245 = vmax.xlane.f32.xlu1 %v2224_v21  ;;  %v3343_v52 = vpop.f32.mrb[72].mxu1 }
 0x9d8   : > { %v2188_v36 = vpop.f32.mrb[73].mxu1  ;;  %v2229_v37 = vsel %vm645_vm11, %v3343_v52, -inf }
 0x9d9   : > { %2243 = vmax.xlane.f32.xlu0 %v2223_v34  ;;  %v3344_v61 = vpop.f32.mrb[74].mxu1  ;;  %v5329_v26 = vsel %vm5799_vm4, %v2188_v36, -inf }
 0x9da   : > { %v5314_v27 = vsel %vm5798_vm3, %v3344_v61, -inf  ;;  %v2191_v32 = vpop.f32.mrb[75].mxu1 }
 0x9db   : > { %2257 = vmax.xlane.f32.xlu1 %v5314_v27  ;;  %v5323_v30 = vsel %vm644_vm14, %v2191_v32, -inf }
 0x9dd   : > { %2255 = vmax.xlane.f32.xlu0 %v2229_v37 }
 0x9df   : > { %2253 = vmax.xlane.f32.xlu1 %v5323_v30  ;;  %v3347_v35 = vpop.f32.mrb[76].mxu1 }
 0x9e0   : > { %v2204_v40 = vpop.f32.mrb[77].mxu1  ;;  %v5335_v10 = vsel %vm649_vm15, %v3347_v35, -inf }
 0x9e1   : > { %2251 = vmax.xlane.f32.xlu0 %v5329_v26  ;;  %v3348_v18 = vpop.f32.mrb[78].mxu1  ;;  %v5341_v19 = vsel %vm647_vm13, %v2204_v40, -inf }
 0x9e2   : > { %v2207_v51 = vpop.f32.mrb[79].mxu1  ;;  %v5351_v4 = vsel %vm650_vm1, %v3348_v18, -inf  ;;  %vm2612_vm1 = vcmask 523264  }
 0x9e3   : > { %v5357_v48 = vsel %vm648_vm2, %v2207_v51, -inf  ;;  %vm2629_vm2 = vcmask 785408  }
 0x9e5   : > { %2263 = vmax.xlane.f32.xlu0 %v5335_v10 }
 0x9e9   : > { %2259 = vmax.xlane.f32.xlu0 %v5341_v19 }
 0x9f0   : > { %2395 = vrot.lane.b32.xlu1 %v5800_v5, %s3962_s7 }
 0x9ff   : > { %2393 = vrot.lane.b32.xlu0 %v5801_v29, %s3962_s7 }
 0xa14   : > { %2265 = vmax.xlane.f32.xlu1 %v5351_v4 }
 0xa18   : > { %2261 = vmax.xlane.f32.xlu1 %v5357_v48 }
 0xa29   : > { %2397 = vrot.lane.b32.xlu1 %v5804_v63, %s3962_s7 }
 0xa56   : > { %v2240_v0 = vpop.xlane.xlu0 %2239 }
 0xa57   : > { %v2269_v28 = vsub.f32 %v2221_v33, %v2240_v0 }
 0xa59   : > { %v2287_v55 = vmul.f32 1.442695, %v2269_v28  ;;  %v2238_v39 = vpop.xlane.xlu1 %2237 }
 0xa5a   : > { %v2236_v24 = vpop.xlane.xlu0 %2235  ;;  %v2268_v2 = vsub.f32 %v2220_v56, %v2238_v39 }
 0xa5b   : > { %3730 = vpow2.f32 %v2287_v55  ;;  %v2267_v12 = vsub.f32 %v2219_v25, %v2236_v24 }
 0xa5c   : > { %v2285_v36 = vmul.f32 1.442695, %v2268_v2 }
 0xa5d   : > { %v2283_v54 = vmul.f32 1.442695, %v2267_v12 }
 0xa5e   : > { %v2242_v44 = vpop.xlane.xlu0 %2241 }
 0xa5f   : > { %3732 = vpow2.f32 %v2283_v54  ;;  %v2270_v22 = vsub.f32 %v2222_v20, %v2242_v44 }
 0xa60   : > { %v2250_v17 = vpop.xlane.xlu1 %2249 }
 0xa61   : > { %v2289_v52 = vmul.f32 1.442695, %v2270_v22  ;;  %v2274_v56 = vsub.f32 %v5299_v3, %v2250_v17 }
 0xa62   : > { %v2248_v61 = vpop.xlane.xlu0 %2247 }
 0xa63   : > { %3734 = vpow2.f32 %v2289_v52  ;;  %v2273_v32 = vsub.f32 %v2225_v13, %v2248_v61  ;;  %v2297_v11 = vmul.f32 1.442695, %v2274_v56 }
 0xa64   : > { %v2246_v35 = vpop.xlane.xlu1 %2245  ;;  %3736 = vpow2.f32 %v2285_v36 }
 0xa65   : > { %v5362_v40 = vpop.eup %3730  ;;  %v2295_v33 = vmul.f32 1.442695, %v2273_v32  ;;  %v2272_v18 = vsub.f32 %v2224_v21, %v2246_v35 }
 0xa66   : > { %v2244_v51 = vpop.xlane.xlu0 %2243  ;;  %2319 = vadd.xlane.f32.xlu1 %v5362_v40 }
 0xa67   : > { %3738 = vpow2.f32 %v2295_v33  ;;  %v2293_v25 = vmul.f32 1.442695, %v2272_v18  ;;  %v2271_v20 = vsub.f32 %v2223_v34, %v2244_v51 }
 0xa68   : > { %v2258_v50 = vpop.xlane.xlu1 %2257 }
 0xa69   : > { %v5366_v5 = vpop.eup %3732  ;;  %v2291_v29 = vmul.f32 1.442695, %v2271_v20  ;;  %3740 = vpow2.f32 %v2293_v25  ;;  %v2278_v0 = vsub.f32 %v5314_v27, %v2258_v50  ;;  %v5805_v25 = vld [vmem:[#allocation18_spill] sm:$0xff]  ;;  %v5806_v20 = vld [vmem:[#allocation57_spill] sm:$0xff] }
 0xa6a   : > { %v2256_v13 = vpop.xlane.xlu0 %2255  ;;  %2315 = vadd.xlane.f32.xlu1 %v5366_v5 }
 0xa6b   : > { %3742 = vpow2.f32 %v2291_v29  ;;  %v2277_v21 = vsub.f32 %v2229_v37, %v2256_v13  ;;  %v2305_v54 = vmul.f32 1.442695, %v2278_v0  ;;  %v5807_v29 = vld [vmem:[#allocation55_spill] sm:$0xff] }
 0xa6c   : > { %3744 = vpow2.f32 %v2297_v11  ;;  %v2254_v34 = vpop.xlane.xlu1 %2253  ;;  %v5808_v50 = vpack.c.bf16 %v5806_v20, %v5807_v29  ;;  %v5809_v13 = vld [vmem:[#allocation19_spill] sm:$0xff]  ;;  %v5810_v11 = vld [vmem:[#allocation48_spill] sm:$0xff] }
 0xa6d   : > { %v5369_v63 = vpop.eup %3734  ;;  %v2303_v28 = vmul.f32 1.442695, %v2277_v21  ;;  %v2276_v37 = vsub.f32 %v5323_v30, %v2254_v34  ;;  %v5811_v21 = vld [vmem:[#allocation24_spill] sm:$0xff]  ;;  %v5814_v34 = vld [vmem:[#allocation54_spill] sm:$0xff] }
 0xa6e   : > { %v2252_v3 = vpop.xlane.xlu0 %2251  ;;  %2321 = vadd.xlane.f32.xlu1 %v5369_v63  ;;  %v5374_v24 = vpop.eup %3736  ;;  %v5812_v0 = vpack.c.bf16 %v5810_v11, %v5811_v21 }
 0xa6f   : > { %v2275_v55 = vsub.f32 %v5329_v26, %v2252_v3  ;;  %3746 = vpow2.f32 %v2303_v28  ;;  %v2301_v17 = vmul.f32 1.442695, %v2276_v37  ;;  %v5813_v3 = vld [vmem:[#allocation56_spill] sm:$0xff] }
 0xa70   : > { %v2396_v35 = vpop.permute.xlu1 %2395 }
 0xa71   : > { %v5376_v39 = vpop.eup %3738  ;;  %v2299_v12 = vmul.f32 1.442695, %v2275_v55  ;;  %v5815_v55 = vpack.c.bf16 %v5813_v3, %v5814_v34 }
 0xa72   : > { %v2264_v2 = vpop.xlane.xlu0 %2263  ;;  %2327 = vadd.xlane.f32.xlu0 %v5376_v39  ;;  %2317 = vadd.xlane.f32.xlu1 %v5374_v24 }
 0xa73   : > { %3748 = vpow2.f32 %v2299_v12  ;;  %v2281_v27 = vsub.f32 %v5335_v10, %v2264_v2  ;;  %v5382_v44 = vpop.eup %3740 }
 0xa74   : > { %3750 = vpow2.f32 %v2305_v54 }
 0xa75   : > { %v5384_v26 = vpop.eup %3742  ;;  %v2311_v22 = vmul.f32 1.442695, %v2281_v27 }
 0xa76   : > { %2323 = vadd.xlane.f32.xlu0 %v5384_v26  ;;  %v2260_v52 = vpop.xlane.xlu0 %2259  ;;  %2325 = vadd.xlane.f32.xlu1 %v5382_v44  ;;  %v5389_v36 = vpop.eup %3744 }
 0xa77   : > { %3752 = vpow2.f32 %v2311_v22  ;;  %v2279_v30 = vsub.f32 %v5341_v19, %v2260_v52  ;;  %v5816_v22 = vld [vmem:[#allocation61_spill] sm:$0xff] }
 0xa78   : > { %3754 = vpow2.f32 %v2301_v17  ;;  %v5817_v17 = vld [vmem:[#allocation59_spill] sm:$0xff] }
 0xa79   : > { %v2307_v61 = vmul.f32 1.442695, %v2279_v30  ;;  %v5392_v32 = vpop.eup %3746  ;;  %v5818_v52 = vpack.c.bf16 %v5816_v22, %v5817_v17 }
 0xa7a   : > { %v2394_v10 = vpop.permute.xlu0 %2393  ;;  %2329 = vadd.xlane.f32.xlu0 %v5389_v36 }
 0xa7b   : > { %3756 = vpow2.f32 %v2307_v61  ;;  %3355 = vmatprep.subr.bf16.mxu0 %v2394_v10  ;;  %v5828_v61 = vld [vmem:[#allocation52_spill] sm:$0xff] }
 0xa7c   : > { %3356 = vmatpush3.bf16.msra.mxu0 %v2394_v10  ;;  %v5829_v10 = vld [vmem:[#allocation50_spill] sm:$0xff] }
 0xa7d   : > { %v5394_v33 = vpop.eup %3748  ;;  %3357 = vmatprep.subr.bf16.mxu0 %v2396_v35 }
 0xa7e   : > { %2335 = vadd.xlane.f32.xlu0 %v5392_v32  ;;  %2331 = vadd.xlane.f32.xlu1 %v5394_v33  ;;  %v5398_v19 = vpop.eup %3750 }
 0xa80   : > { %3358 = vmatpush3.bf16.msra.mxu0 %v2396_v35  ;;  %v5830_v35 = vpack.c.bf16 %v5828_v61, %v5829_v10 }
 0xa81   : > { %v5400_v18 = vpop.eup %3752 }
 0xa82   : > { %2343 = vadd.xlane.f32.xlu1 %v5400_v18  ;;  %2337 = vadd.xlane.f32.xlu0 %v5398_v19  ;;  %v5404_v51 = vpop.eup %3754 }
 0xa85   : > { %v5406_v56 = vpop.eup %3756 }
 0xa86   : > { %2339 = vadd.xlane.f32.xlu1 %v5406_v56  ;;  %2333 = vadd.xlane.f32.xlu0 %v5404_v51 }
 0xa97   : > { %2401 = vrot.lane.b32.xlu1 %v5805_v25, %s3962_s7 }
 0xa9b   : > { %2532 = vrot.lane.b32.xlu1 %v5808_v50, %s3962_s7 }
 0xa9c   : > { %2399 = vrot.lane.b32.xlu0 %v5809_v13, %s3962_s7 }
 0xa9f   : > { %2526 = vrot.lane.b32.xlu1 %v5812_v0, %s3962_s7 }
 0xaa1   : > { %v2266_v28 = vpop.xlane.xlu1 %2265 }
 0xaa2   : > { %v2282_v2 = vsub.f32 %v5351_v4, %v2266_v28  ;;  %v5823_v4 = vld [vmem:[#allocation47_spill] sm:$0xff] }
 0xaa3   : > { %2534 = vrot.lane.b32.xlu1 %v5815_v55, %s3962_s7 }
 0xaa4   : > { %v2313_v9 = vmul.f32 1.442695, %v2282_v2 }
 0xaa5   : > { %v2262_v12 = vpop.xlane.xlu1 %2261 }
 0xaa6   : > { %v2280_v54 = vsub.f32 %v5357_v48, %v2262_v12 }
 0xaa7   : > { %2556 = vrot.lane.b32.xlu1 %v2038_v43, %s3961_s23  ;;  %v5820_v43 = vld [vmem:[#allocation58_spill] sm:$0xff] }
 0xaa8   : > { %v2309_v27 = vmul.f32 1.442695, %v2280_v54  ;;  %v5821_v48 = vpack.c.bf16 %v5819_v62, %v5820_v43 }
 0xaa9   : > { %v2398_v37 = vpop.permute.xlu1 %2397 }
 0xaaa   : > { %3359 = vmatprep.subr.bf16.mxu0 %v2398_v37  ;;  %3758 = vpow2.f32 %v2309_v27 }
 0xaab   : > { %2558 = vrot.lane.b32.xlu1 %v2039_v53, %s3961_s23  ;;  %3360 = vmatpush3.bf16.msra.mxu0 %v2398_v37  ;;  %3760 = vpow2.f32 %v2313_v9  ;;  %v5822_v53 = vld [vmem:[#allocation49_spill] sm:$0xff] }
 0xaac   : > { %v5824_v30 = vpack.c.bf16 %v5822_v53, %v5823_v4 }
 0xaaf   : > { %2536 = vrot.lane.b32.xlu1 %v5818_v52, %s3962_s7 }
 0xab3   : > { %2538 = vrot.lane.b32.xlu1 %v5821_v48, %s3962_s7 }
 0xab4   : > { %v5448_v58 = vpop.eup %3758 }
 0xab5   : > { %v5451_v59 = vpop.eup %3760 }
 0xab7   : > { %2560 = vrot.lane.b32.xlu1 %v2040_v45, %s3961_s23  ;;  %v5827_v45 = vpack.c.bf16 %v5825_v7, %v5826_v14 }
 0xabb   : > { %2341 = vadd.xlane.f32.xlu0 %v5448_v58 }
 0xabf   : > { %2345 = vadd.xlane.f32.xlu0 %v5451_v59 }
 0xad5   : > { %2524 = vrot.lane.b32.xlu0 %v5824_v30, %s3962_s7 }
 0xad9   : > { %2548 = vrot.lane.b32.xlu0 %v2034_v42, %s3961_s23 }
 0xadd   : > { %2550 = vrot.lane.b32.xlu0 %v2035_v23, %s3961_s23 }
 0xae1   : > { %2528 = vrot.lane.b32.xlu0 %v5827_v45, %s3962_s7 }
 0xae5   : > { %2530 = vrot.lane.b32.xlu0 %v5830_v35, %s3962_s7 }
 0xae9   : > { %2552 = vrot.lane.b32.xlu0 %v2036_v47, %s3961_s23 }
 0xaf3   : > { %v2320_v38 = vpop.xlane.xlu1 %2319 }
 0xaf7   : > { %v2316_v46 = vpop.xlane.xlu1 %2315 }
 0xaf8   : > { %3762 = vrcp.f32 %v2316_v46 }
 0xafb   : > { %v2322_v42 = vpop.xlane.xlu1 %2321 }
 0xaff   : > { %v2328_v15 = vpop.xlane.xlu0 %2327  ;;  %v2318_v6 = vpop.xlane.xlu1 %2317 }
 0xb00   : > { %3764 = vrcp.f32 %v2318_v6  ;;  %v342_v6 = vld [vmem:[#allocation7] sm:$0xff] }
 0xb01   : > { %3766 = vrcp.f32 %v2322_v42 }
 0xb02   : > { %v3763_v29 = vpop.eup %3762 }
 0xb03   : > { %v2324_v23 = vpop.xlane.xlu0 %2323  ;;  %v2326_v25 = vpop.xlane.xlu1 %2325  ;;  %v2363_v21 = vmul.f32 %v3763_v29, %v5366_v5  ;;  %v345_v29 = vld [vmem:[#allocation7 + $0x18] sm:$0xff] }
 0xb04   : > { %3768 = vrcp.f32 %v2324_v23  ;;  %v343_v23 = vld [vmem:[#allocation7 + $0x8] sm:$0xff] }
 0xb05   : > { %3770 = vrcp.f32 %v2326_v25  ;;  %v344_v25 = vld [vmem:[#allocation7 + $0x10] sm:$0xff] }
 0xb06   : > { %3772 = vrcp.f32 %v2320_v38 }
 0xb07   : > { %v2330_v20 = vpop.xlane.xlu0 %2329 }
 0xb08   : > { %3774 = vrcp.f32 %v2330_v20  ;;  %v358_v20 = vpack.c.bf16 %v343_v23, %v342_v6  ;;  %v5834_v23 = vld [vmem:[#allocation33_spill] sm:$0xff] }
 0xb0a   : > { %v3765_v50 = vpop.eup %3764  ;;  %3413 = vmatprep.subr.bf16.mxu1 %v358_v20 }
 0xb0b   : > { %v2336_v13 = vpop.xlane.xlu0 %2335  ;;  %v2332_v11 = vpop.xlane.xlu1 %2331  ;;  %v2364_v49 = vmul.f32 %v3765_v50, %v5374_v24  ;;  %v359_v50 = vpack.c.bf16 %v345_v29, %v344_v25  ;;  %3421 = vmatpush3.bf16.msra.mxu1 %v358_v20  ;;  %v5835_v25 = vld [vmem:[#allocation31_spill] sm:$0xff] }
 0xb0c   : > { %v3767_v34 = vpop.eup %3766 }
 0xb0d   : > { %v2379_v31 = vpack.c.bf16 %v2364_v49, %v2363_v21  ;;  %v2366_v37 = vmul.f32 %v3767_v34, %v5369_v63  ;;  %3414 = vmatprep.subr.bf16.mxu1 %v359_v50  ;;  %v350_v21 = vld [vmem:[#allocation7 + $0x40] sm:$0xff]  ;;  %v351_v49 = vld [vmem:[#allocation7 + $0x48] sm:$0xff] }
 0xb0e   : > { %v3769_v55 = vpop.eup %3768  ;;  %v355_v34 = vld [vmem:[#allocation7 + $0x68] sm:$0xff] }
 0xb0f   : > { %v2338_v47 = vpop.xlane.xlu0 %2337  ;;  %v2344_v0 = vpop.xlane.xlu1 %2343  ;;  %3365 = vmatprep.mubr.bf16.mxu0 %v2379_v31  ;;  %v2367_v2 = vmul.f32 %v3769_v55, %v5384_v26  ;;  %3422 = vmatpush3.bf16.msra.mxu1 %v359_v50  ;;  %v362_v31 = vpack.c.bf16 %v351_v49, %v350_v21  ;;  %v5837_v21 = vld [vmem:[#allocation38_spill] sm:$0xff]  ;;  %v5838_v49 = vld [vmem:[#allocation36_spill] sm:$0xff] }
 0xb10   : > { %v3771_v54 = vpop.eup %3770 }
 0xb11   : > { %v3773_v5 = vpop.eup %3772  ;;  %v2368_v27 = vmul.f32 %v3771_v54, %v5382_v44  ;;  %v357_v54 = vld [vmem:[#allocation7 + $0x78] sm:$0xff] }
 0xb12   : > { %v2365_v22 = vmul.f32 %v3773_v5, %v5362_v40  ;;  %v3775_v52 = vpop.eup %3774 }
 0xb13   : > { %v2334_v28 = vpop.xlane.xlu0 %2333  ;;  %v2340_v3 = vpop.xlane.xlu1 %2339  ;;  %v2381_v9 = vpack.c.bf16 %v2368_v27, %v2367_v2  ;;  %v2370_v63 = vmul.f32 %v3775_v52, %v5389_v36 }
 0xb14   : > { %3776 = vrcp.f32 %v2334_v28  ;;  %v2380_v17 = vpack.c.bf16 %v2366_v37, %v2365_v22 }
 0xb15   : > { %3778 = vrcp.f32 %v2328_v15 }
 0xb16   : > { %3780 = vrcp.f32 %v2332_v11  ;;  %v349_v11 = vld [vmem:[#allocation7 + $0x38] sm:$0xff] }
 0xb17   : > { %v2400_v12 = vpop.permute.xlu0 %2399  ;;  %v2402_v24 = vpop.permute.xlu1 %2401  ;;  %3782 = vrcp.f32 %v2338_v47  ;;  %v352_v47 = vld [vmem:[#allocation7 + $0x50] sm:$0xff] }
 0xb18   : > { %3361 = vmatprep.subr.bf16.mxu0 %v2400_v12  ;;  %3784 = vrcp.f32 %v2336_v13  ;;  %v346_v13 = vld [vmem:[#allocation7 + $0x20] sm:$0xff] }
 0xb19   : > { %3362 = vmatpush3.bf16.msra.mxu0 %v2400_v12  ;;  %3786 = vrcp.f32 %v2340_v3  ;;  %v354_v3 = vld [vmem:[#allocation7 + $0x60] sm:$0xff]  ;;  %v356_v12 = vld [vmem:[#allocation7 + $0x70] sm:$0xff] }
 0xb1a   : > { %3363 = vmatprep.subr.bf16.mxu0 %v2402_v24  ;;  %v364_v55 = vpack.c.bf16 %v355_v34, %v354_v3  ;;  %v365_v5 = vpack.c.bf16 %v357_v54, %v356_v12  ;;  %v5841_v12 = vld [vmem:[#allocation35_spill] sm:$0xff] }
 0xb1d   : > { %3364 = vmatpush3.bf16.msra.mxu0 %v2402_v24 }
 0xb1e   : > { %v3777_v62 = vpop.eup %3776  ;;  %3381 = vmatprep.subr.bf16.mxu0 %v358_v20 }
 0xb1f   : > { %v3779_v43 = vpop.eup %3778  ;;  %v2372_v53 = vmul.f32 %v3777_v62, %v5404_v51 }
 0xb20   : > { %3366 = vmatmul.mubr.bf16.vlgmr.msra.gmra.mrb[80].mxu0 %v2380_v17  ;;  %v3781_v48 = vpop.eup %3780  ;;  %v2369_v26 = vmul.f32 %v3779_v43, %v5376_v39 }
 0xb21   : > { %3369 = vmatprep.mubr.bf16.mxu0 %v2381_v9  ;;  %v2371_v44 = vmul.f32 %v3781_v48, %v5394_v33  ;;  %v3783_v4 = vpop.eup %3782  ;;  %3382 = vmatpush3.bf16.msra.mxu0 %v358_v20  ;;  %v5836_v20 = vpack.c.bf16 %v5834_v23, %v5835_v25 }
 0xb22   : > { %v2382_v40 = vpack.c.bf16 %v2370_v63, %v2369_v26  ;;  %v3785_v7 = vpop.eup %3784  ;;  %v2374_v14 = vmul.f32 %v3783_v4, %v5398_v19  ;;  %3383 = vmatprep.subr.bf16.mxu0 %v359_v50 }
 0xb23   : > { %v2383_v30 = vpack.c.bf16 %v2372_v53, %v2371_v44  ;;  %v2373_v45 = vmul.f32 %v3785_v7, %v5392_v32  ;;  %v3787_v39 = vpop.eup %3786 }
 0xb24   : > { %v2375_v10 = vmul.f32 %v3787_v39, %v5406_v56  ;;  %v347_v56 = vld [vmem:[#allocation7 + $0x28] sm:$0xff] }
 0xb25   : > { %v2384_v61 = vpack.c.bf16 %v2374_v14, %v2373_v45  ;;  %3384 = vmatpush3.bf16.msra.mxu0 %v359_v50 }
 0xb28   : > { %3370 = vmatmul.mubr.bf16.gmra.mrb[84].mxu0 %v2382_v40 }
 0xb29   : > { %3373 = vmatprep.mubr.bf16.mxu0 %v2383_v30 }
 0xb30   : > { %3374 = vmatmul.mubr.bf16.gmra.mrb[88].mxu0 %v2384_v61 }
 0xb48   : > { %v2342_v36 = vpop.xlane.xlu0 %2341 }
 0xb49   : > { %3788 = vrcp.f32 %v2342_v36  ;;  %v2533_v36 = vpop.permute.xlu1 %2532 }
 0xb4a   : > { %3790 = vrcp.f32 %v2344_v0  ;;  %v353_v0 = vld [vmem:[#allocation7 + $0x58] sm:$0xff] }
 0xb4b   : > { %v363_v28 = vpack.c.bf16 %v353_v0, %v352_v47 }
 0xb4c   : > { %v2346_v51 = vpop.xlane.xlu0 %2345 }
 0xb4d   : > { %3792 = vrcp.f32 %v2346_v51  ;;  %v2527_v39 = vpop.permute.xlu1 %2526 }
 0xb4e   : > { %v2593_v29 = vsel %vm651_vm0, %v5836_v20, %v2527_v39 }
 0xb50   : > { %v2525_v61 = vpop.permute.xlu0 %2524 }
 0xb53   : > { %v3789_v33 = vpop.eup %3788 }
 0xb54   : > { %v2376_v35 = vmul.f32 %v3789_v33, %v5448_v58  ;;  %v3791_v38 = vpop.eup %3790  ;;  %v360_v58 = vpack.c.bf16 %v347_v56, %v346_v13  ;;  %v2549_v51 = vpop.permute.xlu0 %2548 }
 0xb55   : > { %v2377_v32 = vmul.f32 %v3791_v38, %v5400_v18  ;;  %v348_v18 = vld [vmem:[#allocation7 + $0x30] sm:$0xff] }
 0xb56   : > { %v2385_v46 = vpack.c.bf16 %v2376_v35, %v2375_v10  ;;  %3385 = vmatprep.subr.bf16.mxu0 %v360_v58  ;;  %3415 = vmatprep.subr.bf16.mxu1 %v360_v58  ;;  %v2535_v10 = vpop.permute.xlu1 %2534 }
 0xb57   : > { %v3793_v42 = vpop.eup %3792  ;;  %3386 = vmatpush3.bf16.msra.mxu0 %v360_v58  ;;  %3423 = vmatpush3.bf16.msra.mxu1 %v360_v58 }
 0xb58   : > { %3377 = vmatprep.mubr.bf16.mxu0 %v2385_v46  ;;  %v2378_v19 = vmul.f32 %v3793_v42, %v5451_v59  ;;  %v361_v59 = vpack.c.bf16 %v349_v11, %v348_v18  ;;  %v2551_v33 = vpop.permute.xlu0 %2550 }
 0xb59   : > { %v2616_v56 = vsel %vm2612_vm1, %v2593_v29, %v2551_v33 }
 0xb5a   : > { %v2386_v15 = vpack.c.bf16 %v2378_v19, %v2377_v32  ;;  %3387 = vmatprep.subr.bf16.mxu0 %v361_v59  ;;  %3416 = vmatprep.subr.bf16.mxu1 %v361_v59  ;;  %v2557_v38 = vpop.permute.xlu1 %2556  ;;  %v5831_v32 = vld [vmem:[#allocation34_spill] sm:$0xff]  ;;  %v5832_v19 = vld [vmem:[#allocation32_spill] sm:$0xff] }
 0xb5b   : > { %3388 = vmatpush3.bf16.msra.mxu0 %v361_v59  ;;  %3424 = vmatpush3.bf16.msra.mxu1 %v361_v59 }
 0xb5c   : > { %3378 = vmatmul.mubr.bf16.gmra.mrb[92].mxu0 %v2386_v15  ;;  %3389 = vmatprep.subr.bf16.mxu0 %v362_v31  ;;  %v2529_v35 = vpop.permute.xlu0 %2528  ;;  %v5833_v15 = vpack.c.bf16 %v5831_v32, %v5832_v19 }
 0xb5d   : > { %3417 = vmatprep.subr.bf16.mxu1 %v362_v31 }
 0xb5e   : > { %v2559_v57 = vpop.permute.xlu1 %2558  ;;  %v2590_v6 = vsel %vm651_vm0, %v5833_v15, %v2525_v61 }
 0xb5f   : > { %3390 = vmatpush3.bf16.msra.mxu0 %v362_v31  ;;  %3425 = vmatpush3.bf16.msra.mxu1 %v362_v31  ;;  %v2614_v50 = vsel %vm2612_vm1, %v2590_v6, %v2549_v51  ;;  %v5839_v31 = vpack.c.bf16 %v5837_v21, %v5838_v49  ;;  %v5853_v51 = vld [vmem:[#allocation43_spill] sm:$0xff] }
 0xb60   : > { %3391 = vmatprep.subr.bf16.mxu0 %v363_v28  ;;  %3418 = vmatprep.subr.bf16.mxu1 %v363_v28  ;;  %v2531_v60 = vpop.permute.xlu0 %2530 }
 0xb61   : > { %v2596_v47 = vsel %vm651_vm0, %v5839_v31, %v2529_v35 }
 0xb62   : > { %v2537_v46 = vpop.permute.xlu1 %2536 }
 0xb63   : > { %3392 = vmatpush3.bf16.msra.mxu0 %v363_v28  ;;  %3426 = vmatpush3.bf16.msra.mxu1 %v363_v28 }
 0xb64   : > { %3393 = vmatprep.subr.bf16.mxu0 %v364_v55  ;;  %3419 = vmatprep.subr.bf16.mxu1 %v364_v55 }
 0xb66   : > { %v2539_v18 = vpop.permute.xlu1 %2538 }
 0xb67   : > { %3394 = vmatpush3.bf16.msra.mxu0 %v364_v55  ;;  %3427 = vmatpush3.bf16.msra.mxu1 %v364_v55  ;;  %v5840_v55 = vld [vmem:[#allocation37_spill] sm:$0xff] }
 0xb68   : > { %3395 = vmatprep.subr.bf16.mxu0 %v365_v5  ;;  %3420 = vmatprep.subr.bf16.mxu1 %v365_v5  ;;  %v5842_v54 = vpack.c.bf16 %v5840_v55, %v5841_v12 }
 0xb6a   : > { %v2561_v0 = vpop.permute.xlu1 %2560 }
 0xb6b   : > { %3396 = vmatpush3.bf16.msra.mxu0 %v365_v5  ;;  %3428 = vmatpush3.bf16.msra.mxu1 %v365_v5  ;;  %v2599_v5 = vsel %vm651_vm0, %v5842_v54, %v2531_v60  ;;  %v2925_v60 = vld [vmem:[%s5635_s3] ss:$0 sm:$0xff] }
 0xbf3   : > { %v3367_v24 = vpop.f32.mrb[80].mxu0 }
 0xbf4   : > { %v2445_v37 = vpop.f32.mrb[81].mxu0 }
 0xbf5   : > { %v3368_v2 = vpop.f32.mrb[82].mxu0 }
 0xbf6   : > { %v2509_v27 = vpack.c.bf16 %v3368_v2, %v3367_v24  ;;  %v2448_v22 = vpop.f32.mrb[83].mxu0 }
 0xbf7   : > { %v2508_v17 = vpack.c.bf16 %v2448_v22, %v2445_v37  ;;  %v5843_v22 = vld [vmem:[#allocation42_spill] sm:$0xff] }
 0xbf8   : > { %2574 = vrot.lane.b32.xlu0 %v2509_v27, %s3960_s21 }
 0xbfb   : > { %v3371_v52 = vpop.f32.mrb[84].mxu0 }
 0xbfc   : > { %2572 = vrot.lane.b32.xlu0 %v2508_v17, %s3960_s21  ;;  %v2461_v9 = vpop.f32.mrb[85].mxu0  ;;  %v5844_v17 = vld [vmem:[#allocation40_spill] sm:$0xff] }
 0xbfd   : > { %v3372_v62 = vpop.f32.mrb[86].mxu0 }
 0xbfe   : > { %v2511_v43 = vpack.c.bf16 %v3372_v62, %v3371_v52  ;;  %v2464_v48 = vpop.f32.mrb[87].mxu0  ;;  %v5845_v52 = vpack.c.bf16 %v5843_v22, %v5844_v17  ;;  %v5846_v62 = vld [vmem:[#allocation41_spill] sm:$0xff] }
 0xbff   : > { %v2510_v63 = vpack.c.bf16 %v2464_v48, %v2461_v9 }
 0xc00   : > { %2554 = vrot.lane.b32.xlu0 %v2037_v16, %s3961_s23  ;;  %v2602_v9 = vsel %vm651_vm0, %v5845_v52, %v2533_v36  ;;  %v5852_v36 = vld [vmem:[#allocation45_spill] sm:$0xff] }
 0xc01   : > { %v5854_v39 = vpack.c.bf16 %v5852_v36, %v5853_v51 }
 0xc03   : > { %v3375_v53 = vpop.f32.mrb[88].mxu0  ;;  %v2611_v33 = vsel %vm651_vm0, %v5854_v39, %v2539_v18 }
 0xc04   : > { %2576 = vrot.lane.b32.xlu0 %v2510_v63, %s3960_s21  ;;  %v2477_v26 = vpop.f32.mrb[89].mxu0 }
 0xc05   : > { %v3376_v44 = vpop.f32.mrb[90].mxu0 }
 0xc06   : > { %v2513_v40 = vpack.c.bf16 %v3376_v44, %v3375_v53  ;;  %v2480_v4 = vpop.f32.mrb[91].mxu0  ;;  %v2622_v53 = vsel %vm2612_vm1, %v2602_v9, %v2557_v38 }
 0xc07   : > { %v2512_v30 = vpack.c.bf16 %v2480_v4, %v2477_v26 }
 0xc08   : > { %2578 = vrot.lane.b32.xlu0 %v2511_v43, %s3960_s21  ;;  %2582 = vrot.lane.b32.xlu1 %v2513_v40, %s3960_s21  ;;  %v5847_v43 = vld [vmem:[#allocation39_spill] sm:$0xff] }
 0xc09   : > { %v5848_v48 = vpack.c.bf16 %v5846_v62, %v5847_v43 }
 0xc0b   : > { %v2605_v63 = vsel %vm651_vm0, %v5848_v48, %v2535_v10 }
 0xc0c   : > { %2580 = vrot.lane.b32.xlu1 %v2512_v30, %s3960_s21  ;;  %v2624_v44 = vsel %vm2612_vm1, %v2605_v63, %v2559_v57 }
 0xc10   : > { %2562 = vrot.lane.b32.xlu1 %v2041_v8, %s3961_s23  ;;  %v2553_v8 = vpop.permute.xlu0 %2552 }
 0xc11   : > { %v2618_v28 = vsel %vm2612_vm1, %v2596_v47, %v2553_v8 }
 0xc2f   : > { %v3379_v41 = vpop.f32.mrb[92].mxu0 }
 0xc30   : > { %v2493_v1 = vpop.f32.mrb[93].mxu0 }
 0xc31   : > { %v3380_v16 = vpop.f32.mrb[94].mxu0 }
 0xc32   : > { %v2515_v7 = vpack.c.bf16 %v3380_v16, %v3379_v41  ;;  %v2496_v14 = vpop.f32.mrb[95].mxu0  ;;  %v5849_v41 = vld [vmem:[#allocation46_spill] sm:$0xff] }
 0xc33   : > { %v2514_v45 = vpack.c.bf16 %v2496_v14, %v2493_v1  ;;  %v5850_v1 = vld [vmem:[#allocation44_spill] sm:$0xff] }
 0xc34   : > { %v5851_v16 = vpack.c.bf16 %v5849_v41, %v5850_v1 }
 0xc35   : > { %2584 = vrot.lane.b32.xlu1 %v2514_v45, %s3960_s21 }
 0xc39   : > { %2586 = vrot.lane.b32.xlu1 %v2515_v7, %s3960_s21  ;;  %v2608_v7 = vsel %vm651_vm0, %v5851_v16, %v2537_v46 }
 0xc3a   : > { %v2626_v14 = vsel %vm2612_vm1, %v2608_v7, %v2561_v0 }
 0xc6a   : > { %v2575_v42 = vpop.permute.xlu0 %2574 }
 0xc6b   : > { %v2634_v11 = vsel %vm2629_vm2, %v2616_v56, %v2575_v42 }
 0xc6e   : > { %v2573_v13 = vpop.permute.xlu0 %2572 }
 0xc6f   : > { %v2631_v58 = vsel %vm2629_vm2, %v2614_v50, %v2573_v13 }
 0xc70   : > { %3397 = vmatprep.mubr.bf16.mxu0 %v2631_v58 }
 0xc71   : > { %3398 = vmatmul.mubr.bf16.vlgmr.msra.gmra.mrb[96].mxu0 %v2634_v11 }
 0xc72   : > { %v2555_v59 = vpop.permute.xlu0 %2554 }
 0xc73   : > { %v2620_v24 = vsel %vm2612_vm1, %v2599_v5, %v2555_v59 }
 0xc76   : > { %v2577_v3 = vpop.permute.xlu0 %2576 }
 0xc77   : > { %v2637_v34 = vsel %vm2629_vm2, %v2618_v28, %v2577_v3 }
 0xc78   : > { %3401 = vmatprep.mubr.bf16.mxu0 %v2637_v34 }
 0xc7a   : > { %v2579_v37 = vpop.permute.xlu0 %2578  ;;  %v2583_v2 = vpop.permute.xlu1 %2582 }
 0xc7b   : > { %v2640_v27 = vsel %vm2629_vm2, %v2620_v24, %v2579_v37  ;;  %v2646_v4 = vsel %vm2629_vm2, %v2624_v44, %v2583_v2 }
 0xc7c   : > { %3402 = vmatmul.mubr.bf16.gmra.mrb[100].mxu0 %v2640_v27 }
 0xc7e   : > { %v2581_v26 = vpop.permute.xlu1 %2580 }
 0xc7f   : > { %v2643_v40 = vsel %vm2629_vm2, %v2622_v53, %v2581_v26 }
 0xc80   : > { %3405 = vmatprep.mubr.bf16.mxu1 %v2643_v40 }
 0xc81   : > { %3406 = vmatmul.mubr.bf16.vlgmr.msra.gmra.mrb[80].mxu1 %v2646_v4 }
 0xc82   : > { %v2563_v30 = vpop.permute.xlu1 %2562 }
 0xc83   : > { %v2628_v10 = vsel %vm2612_vm1, %v2611_v33, %v2563_v30 }
 0xca7   : > { %v2585_v45 = vpop.permute.xlu1 %2584 }
 0xca8   : > { %v2649_v61 = vsel %vm2629_vm2, %v2626_v14, %v2585_v45 }
 0xca9   : > { %3409 = vmatprep.mubr.bf16.mxu1 %v2649_v61 }
 0xcab   : > { %v2587_v35 = vpop.permute.xlu1 %2586 }
 0xcac   : > { %v2652_v38 = vsel %vm2629_vm2, %v2628_v10, %v2587_v35 }
 0xcad   : > { %3410 = vmatmul.mubr.bf16.gmra.mrb[84].mxu1 %v2652_v38 }
 0xd44   : > { %v3399_v57 = vpop.f32.mrb[96].mxu0 }
 0xd45   : > { %v2704_v8 = vadd.f32 %v3399_v57, %v2925_v60  ;;  %v2695_v46 = vpop.f32.mrb[97].mxu0 }
 0xd46   : > { %v2696_v42 = vadd.f32 %v2925_v60, %v2695_v46  ;;  %v3400_v32 = vpop.f32.mrb[98].mxu0 }
 0xd47   : > { %2760 = vst [vmem:[%s5563_s6 + $0x10] sm:$0xff] %v2704_v8  ;;  %v2707_v19 = vadd.f32 %v3400_v32, %v2925_v60  ;;  %v2698_v15 = vpop.f32.mrb[99].mxu0 }
 0xd48   : > { %2758 = vst [vmem:[%s5563_s6] sm:$0xff] %v2696_v42  ;;  %v2699_v6 = vadd.f32 %v2925_v60, %v2698_v15 }
 0xd49   : > { %2761 = vst [vmem:[%s5563_s6 + $0x18] sm:$0xff] %v2707_v19 }
 0xd4a   : > { %2759 = vst [vmem:[%s5563_s6 + $0x8] sm:$0xff] %v2699_v6 }
 0xd4f   : > { %v3403_v23 = vpop.f32.mrb[100].mxu0 }
 0xd50   : > { %v2720_v25 = vadd.f32 %v3403_v23, %v2925_v60  ;;  %v2711_v20 = vpop.f32.mrb[101].mxu0 }
 0xd51   : > { %v2712_v29 = vadd.f32 %v2925_v60, %v2711_v20  ;;  %v3404_v50 = vpop.f32.mrb[102].mxu0 }
 0xd52   : > { %2764 = vst [vmem:[%s5563_s6 + $0x30] sm:$0xff] %v2720_v25  ;;  %v2723_v13 = vadd.f32 %v3404_v50, %v2925_v60  ;;  %v2714_v56 = vpop.f32.mrb[103].mxu0 }
 0xd53   : > { %2762 = vst [vmem:[%s5563_s6 + $0x20] sm:$0xff] %v2712_v29  ;;  %v2715_v58 = vadd.f32 %v2925_v60, %v2714_v56 }
 0xd54   : > { %2765 = vst [vmem:[%s5563_s6 + $0x38] sm:$0xff] %v2723_v13  ;;  %v3407_v18 = vpop.f32.mrb[80].mxu1 }
 0xd55   : > { %2763 = vst [vmem:[%s5563_s6 + $0x28] sm:$0xff] %v2715_v58  ;;  %v2736_v11 = vadd.f32 %v3407_v18, %v2925_v60  ;;  %v2727_v59 = vpop.f32.mrb[81].mxu1 }
 0xd56   : > { %v2728_v21 = vadd.f32 %v2925_v60, %v2727_v59  ;;  %v3408_v49 = vpop.f32.mrb[82].mxu1 }
 0xd57   : > { %2768 = vst [vmem:[%s5563_s6 + $0x50] sm:$0xff] %v2736_v11  ;;  %v2739_v31 = vadd.f32 %v3408_v49, %v2925_v60  ;;  %v2730_v47 = vpop.f32.mrb[83].mxu1 }
 0xd58   : > { %2766 = vst [vmem:[%s5563_s6 + $0x40] sm:$0xff] %v2728_v21  ;;  %v2731_v0 = vadd.f32 %v2925_v60, %v2730_v47 }
 0xd59   : > { %2769 = vst [vmem:[%s5563_s6 + $0x58] sm:$0xff] %v2739_v31 }
 0xd5a   : > { %2767 = vst [vmem:[%s5563_s6 + $0x48] sm:$0xff] %v2731_v0 }
 0xd80   : > { %v3411_v28 = vpop.f32.mrb[84].mxu1 }
 0xd81   : > { %v2752_v3 = vadd.f32 %v3411_v28, %v2925_v60  ;;  %v2743_v34 = vpop.f32.mrb[85].mxu1 }
 0xd82   : > { %v2744_v55 = vadd.f32 %v2925_v60, %v2743_v34  ;;  %v3412_v12 = vpop.f32.mrb[86].mxu1 }
 0xd83   : > { %2772 = vst [vmem:[%s5563_s6 + $0x70] sm:$0xff] %v2752_v3  ;;  %v2755_v54 = vadd.f32 %v3412_v12, %v2925_v60  ;;  %v2746_v5 = vpop.f32.mrb[87].mxu1 }
 0xd84   : > { %2770 = vst [vmem:[%s5563_s6 + $0x60] sm:$0xff] %v2744_v55  ;;  %v2747_v24 = vadd.f32 %v2925_v60, %v2746_v5 }
 0xd85   : > { %2773 = vst [vmem:[%s5563_s6 + $0x78] sm:$0xff] %v2755_v54 }
 0xd86   : > { %2771 = vst [vmem:[%s5563_s6 + $0x68] sm:$0xff] %v2747_v24 }
 0xd87   : > { %3893 = shalt.err (!%p3890_p2)
}
 0xd88   : > { %s3894_s25 = scalar_lea.hbm %s5583_s29, 2048  ;;  %s3898_s7 = scalar_lea.hbm %s5636_s4, 4096 }
 0xd89   : > { %p3895_p13 = scmp.ne.s32.totalorder %s5583_s29, %s3894_s25  ;;  %p3899_p4 = scmp.lt.u32.totalorder %s5583_s29, %s5636_s4 }
 0xd8a   : > { %p3900_p7 = scmp.lt.u32.totalorder %s3898_s7, %s3894_s25  ;;  %p3902_p11 = scmp.lt.u32.totalorder %s3894_s25, %s5583_s29 }
 0xd8b   : > { %p3896_p6 = pnand %p3895_p13, %p5855_p0 }
 0xd8c   : > { %p3901_p8 = por %p3900_p7, %p3899_p4 }
 0xd8d   : > { %p3897_p10 = pneg %p3896_p6 }
 0xd8e   : > { %p3903_p1 = por %p3902_p11, %p3901_p8 }
 0xd90   : > { %p3904_p3 = pnand %p3903_p1, %p3897_p10 }
 0xd92   : > { %3907 = shalt.err (!%p3904_p3)
}
 0xd93   : > { %s3964_s6 = smov 128   ;;  %s3965_s9 = smov 8  }
 0xd94   : > { %3471 = dma.vmem_to_hbm [thread:$0]  (%p5855_p0), %s5585_s28, 2048, %s5583_s29, %s2775_s19, %s3964_s6, %s3964_s6, %s3965_s9  }
 0xd95 PF: > { %s2803_s27 = sand.u32 1, %s3938_s15   ;;  %p5856_p5 = scmp.ne.s32.totalorder %s5708_s22, 0 }
 0xd96   : > { %p5857_p9 = scmp.ge.s32.totalorder %s3950_s18, 2  ;;  %s2804_s20 = scalar_lea.sflag [#allocation4], %s2803_s27 }
 0xd98   : > { %p3485_p12 = pnand %p5857_p9, %p5856_p5 }
 0xd9a   : > { %3933 = dma.done.wait (!%p3485_p12), %s2804_s20, 2048  }
 0xd9b   : > { %3935 = vsyncadd (!%p3485_p12), %s2804_s20, 4294965248  ;;  %p18_p2 = scmp.ge.s32.totalorder %s4104_s11, 4   ;;  %s5858_s15 = smov %s3942_s16 }
 0xd9c   : > { %s5859_s16 = smov %s3946_s17  ;;  %s5860_s17 = smov %s4113_s14 }
 0xd9d   : > { %s5861_s18 = smov %s4104_s11  ;;  %20 = sbr.rel (!%p18_p2) target bundleno = 6 (0x6), region = 89 }
 0xda4   :  { %2809 = vsyncpa [#allocation3], 1 }
 0xda5   :  { %2811 = vsyncpa [#allocation3 + $0x1], 1 }
 0xda6   :  { %2812 = vsyncpa [#allocation6], 1 }
 0xda7   :  { %2813 = vsyncpa [#allocation4], 1 }
 0xda8   :  { %2815 = vsyncpa [#allocation4 + $0x1], 1 }

</bundles_post_ra>
